<compile_context>
chip_gen: v5e
topology: v5e:2x2
jax: 0.10.0
libtpu: 0.0.40
codegen_flags: <defaults>
</compile_context>

<pallas_src>
import numpy as np
import jax
import jax.numpy as jnp
from jax import lax
from jax.experimental import pallas as pl
from jax.experimental.pallas import tpu as pltpu

# Module hyper-parameters (from __init__ defaults).
SPLIT_LIST = [2, 4, 8]            # -> total sequence length 14
NUM_SPLITS = len(SPLIT_LIST)
TOTAL_S = sum(SPLIT_LIST)         # 14
S_PAD = max(SPLIT_LIST)           # 8, per-split padded sequence length
D = 80                            # d_model
H = 4                             # nhead
HD = D // H                       # head dim = 20
FF = 1024                         # dim_feedforward
LN_EPS = 1e-5
ATTN_SCALE = 1.0 / float(np.sqrt(HD))
NEG_INF = -1e30


def _fused_mapper_kernel(
    lens_ref,                     # SMEM scalar prefetch: (NUM_SPLITS,) int32
    tgt_ref, mem_ref,             # (B, S_PAD, D) f32
    in_w_ref,                     # (6, D, D)  bf16  [self q,k,v, cross q,k,v], pre-transposed (Din, Dout)
    in_b_ref,                     # (6, 1, D)  f32
    out_w_ref,                    # (2, D, D)  bf16  Wo^T for [self, cross]
    vec_ref,                      # (9, 1, D)  f32   [sa_ob, ca_ob, l2_b, n1g, n1b, n2g, n2b, n3g, n3b]
    l1_w_ref,                     # (D, FF)    bf16
    l1_b_ref,                     # (1, FF)    f32
    l2_w_ref,                     # (FF, D)    bf16
    out_ref,                      # (B, D)     f32   accumulated across the 3 grid steps
):
    i = pl.program_id(0)
    slen = lens_ref[i]            # valid length of this split (tgt and mem share it)

    tgt = tgt_ref[...]
    mem = mem_ref[...]
    b, s, _ = tgt.shape

    # Masks for padded positions (keys masked out of softmax, rows out of the mean).
    k_idx = lax.broadcasted_iota(jnp.int32, (1, 1, s), 2)
    key_bias = jnp.where(k_idx < slen, 0.0, NEG_INF).astype(jnp.float32)   # (1,1,S_PAD)
    r_idx = lax.broadcasted_iota(jnp.int32, (1, s, 1), 1)
    row_mask = (r_idx < slen).astype(jnp.float32)                          # (1,S_PAD,1)

    def linear2d(x2d, w_bf16, bias_2d):
        y = jnp.dot(x2d.astype(jnp.bfloat16), w_bf16,
                    preferred_element_type=jnp.float32)
        return y + bias_2d

    def layernorm(x, g, beta):
        mu = jnp.mean(x, axis=-1, keepdims=True)
        var = jnp.mean(jnp.square(x - mu), axis=-1, keepdims=True)
        return (x - mu) * lax.rsqrt(var + LN_EPS) * g + beta

    def mha(q_in, kv_in, a):
        # a = 0: self-attention, a = 1: cross-attention.
        q2 = q_in.reshape(b * s, D)
        m2 = kv_in.reshape(b * s, D)
        q = linear2d(q2, in_w_ref[3 * a + 0], in_b_ref[3 * a + 0]).reshape(b, s, D)
        k = linear2d(m2, in_w_ref[3 * a + 1], in_b_ref[3 * a + 1]).reshape(b, s, D)
        v = linear2d(m2, in_w_ref[3 * a + 2], in_b_ref[3 * a + 2]).reshape(b, s, D)
        wo = out_w_ref[a]                                  # (D, D) bf16 = Wo^T
        ctx = None
        for h in range(H):                                 # unrolled at trace time
            sl = slice(h * HD, (h + 1) * HD)
            sc = jnp.einsum("bqd,bkd->bqk", q[..., sl], k[..., sl],
                            preferred_element_type=jnp.float32) * ATTN_SCALE
            sc = sc + key_bias                             # mask padded keys
            sc = sc - jnp.max(sc, axis=-1, keepdims=True)
            p = jnp.exp(sc)
            p = p * pl.reciprocal(jnp.sum(p, axis=-1, keepdims=True), approx=True)
            oh = jnp.einsum("bqk,bkd->bqd", p, v[..., sl],
                            preferred_element_type=jnp.float32)
            # Fold output projection per head: concat(heads) @ Wo^T == sum_h oh @ (Wo^T)[h*HD:(h+1)*HD]
            part = jnp.dot(oh.reshape(b * s, HD).astype(jnp.bfloat16), wo[sl, :],
                           preferred_element_type=jnp.float32)
            ctx = part if ctx is None else ctx + part
        ctx = ctx + vec_ref[a]                             # + out_proj bias (1, D)
        return ctx.reshape(b, s, D)

    # --- self attention + residual + norm1 (forward_post) ---
    x = layernorm(tgt + mha(tgt, tgt, 0), vec_ref[3], vec_ref[4])
    # --- cross attention (query = x, key/value = memory) + residual + norm2 ---
    x = layernorm(x + mha(x, mem, 1), vec_ref[5], vec_ref[6])
    # --- feed-forward (linear1 -> relu -> linear2) + residual + norm3 ---
    x2 = x.reshape(b * s, D)
    h1 = jnp.maximum(linear2d(x2, l1_w_ref[...], l1_b_ref[...]), 0.0)
    ff = linear2d(h1, l2_w_ref[...], vec_ref[2]).reshape(b, s, D)
    x = layernorm(x + ff, vec_ref[7], vec_ref[8])

    # --- fused concat + mean: accumulate masked row-sums across the 3 splits ---
    part_sum = jnp.sum(x * row_mask, axis=1)               # (B, D)

    @pl.when(i == 0)
    def _():
        out_ref[...] = jnp.zeros_like(out_ref)

    out_ref[...] += part_sum

    @pl.when(i == pl.num_programs(0) - 1)
    def _():
        out_ref[...] = out_ref[...] * np.float32(1.0 / TOTAL_S)


def transformer_mapper_split(input_tensor, packed_params):
    """TransformerMapperSplit.forward (add_linear=False, add_pos_embedding=False).

    input_tensor: (B, sum(SPLIT_LIST)=14, 2*D=160) float32.
    Returns: (B, D) float32.
    """
    in_w, in_b, out_w, vecs, l1_w, l1_b, l2_w = packed_params
    bsz = input_tensor.shape[0]

    # chunk(input, 2, dim=-1) -> w_ori, w_pwd each (B, 14, 80)
    w_ori, w_pwd = jnp.split(input_tensor, 2, axis=-1)

    # Pad each split to S_PAD and stack over the split axis: (3, B, S_PAD, D).
    offs = np.cumsum([0] + SPLIT_LIST)
    tgt_blocks, mem_blocks = [], []
    for idx, s in enumerate(SPLIT_LIST):
        pad = S_PAD - s
        tgt_blocks.append(jnp.pad(w_ori[:, offs[idx]:offs[idx + 1], :],
                                  ((0, 0), (0, pad), (0, 0))))
        mem_blocks.append(jnp.pad(w_pwd[:, offs[idx]:offs[idx + 1], :],
                                  ((0, 0), (0, pad), (0, 0))))
    tgt = jnp.stack(tgt_blocks, axis=0)
    mem = jnp.stack(mem_blocks, axis=0)
    lens = jnp.asarray(SPLIT_LIST, dtype=jnp.int32)

    grid_spec = pltpu.PrefetchScalarGridSpec(
        num_scalar_prefetch=1,
        grid=(NUM_SPLITS,),
        in_specs=[
            pl.BlockSpec((None, bsz, S_PAD, D), lambda i, _: (i, 0, 0, 0)),  # tgt
            pl.BlockSpec((None, bsz, S_PAD, D), lambda i, _: (i, 0, 0, 0)),  # mem
            pl.BlockSpec((None, 6, D, D),       lambda i, _: (i, 0, 0, 0)),  # in_w
            pl.BlockSpec((None, 6, 1, D),       lambda i, _: (i, 0, 0, 0)),  # in_b
            pl.BlockSpec((None, 2, D, D),       lambda i, _: (i, 0, 0, 0)),  # out_w
            pl.BlockSpec((None, 9, 1, D),       lambda i, _: (i, 0, 0, 0)),  # vecs
            pl.BlockSpec((None, D, FF),         lambda i, _: (i, 0, 0)),     # l1_w
            pl.BlockSpec((None, 1, FF),         lambda i, _: (i, 0, 0)),     # l1_b
            pl.BlockSpec((None, FF, D),         lambda i, _: (i, 0, 0)),     # l2_w
        ],
        out_specs=pl.BlockSpec((bsz, D), lambda i, _: (0, 0)),
    )
    return pl.pallas_call(
        _fused_mapper_kernel,
        out_shape=jax.ShapeDtypeStruct((bsz, D), jnp.float32),
        grid_spec=grid_spec,
        compiler_params=pltpu.CompilerParams(
            dimension_semantics=("arbitrary",)),   # output block accumulates across splits
    )(lens, tgt, mem, in_w, in_b, out_w, vecs, l1_w, l1_b, l2_w)


def init_layer_params(key):
    """Deterministic synthetic params in the PyTorch module's native layout."""
    ks = jax.random.split(key, 12)

    def w(k, shape, scale=0.05):
        return jax.random.normal(k, shape, jnp.float32) * scale

    return dict(
        sa_in_w=w(ks[0], (3 * D, D)), sa_in_b=w(ks[1], (3 * D,), 0.01),
        sa_out_w=w(ks[2], (D, D)),    sa_out_b=w(ks[3], (D,), 0.01),
        ca_in_w=w(ks[4], (3 * D, D)), ca_in_b=w(ks[5], (3 * D,), 0.01),
        ca_out_w=w(ks[6], (D, D)),    ca_out_b=w(ks[7], (D,), 0.01),
        l1_w=w(ks[8], (FF, D)),       l1_b=w(ks[9], (FF,), 0.01),
        l2_w=w(ks[10], (D, FF)),      l2_b=w(ks[11], (D,), 0.01),
        n1_g=jnp.ones((D,), jnp.float32), n1_b=jnp.zeros((D,), jnp.float32),
        n2_g=jnp.ones((D,), jnp.float32), n2_b=jnp.zeros((D,), jnp.float32),
        n3_g=jnp.ones((D,), jnp.float32), n3_b=jnp.zeros((D,), jnp.float32),
    )


def pack_params(layer_params):
    """Stack per-layer PyTorch-layout params into pre-transposed, DMA-friendly buffers."""
    in_w, in_b, out_w, vecs, l1_w, l1_b, l2_w = [], [], [], [], [], [], []
    for p in layer_params:
        qkv_w, qkv_b = [], []
        for prefix in ("sa", "ca"):
            W, bvec = p[f"{prefix}_in_w"], p[f"{prefix}_in_b"]
            for j in range(3):                                   # q, k, v
                qkv_w.append(W[j * D:(j + 1) * D, :].T)          # (D, D) pre-transposed
                qkv_b.append(bvec[j * D:(j + 1) * D][None, :])   # (1, D)
        in_w.append(jnp.stack(qkv_w, 0).astype(jnp.bfloat16))    # (6, D, D)
        in_b.append(jnp.stack(qkv_b, 0))                         # (6, 1, D)
        out_w.append(jnp.stack([p["sa_out_w"].T, p["ca_out_w"].T], 0)
                     .astype(jnp.bfloat16))                      # (2, D, D)
        rows = [p["sa_out_b"], p["ca_out_b"], p["l2_b"],
                p["n1_g"], p["n1_b"], p["n2_g"], p["n2_b"], p["n3_g"], p["n3_b"]]
        vecs.append(jnp.stack([r[None, :] for r in rows], 0))    # (9, 1, D)
        l1_w.append(p["l1_w"].T.astype(jnp.bfloat16))            # (D, FF)
        l1_b.append(p["l1_b"][None, :])                          # (1, FF)
        l2_w.append(p["l2_w"].T.astype(jnp.bfloat16))            # (FF, D)
    return (jnp.stack(in_w, 0), jnp.stack(in_b, 0), jnp.stack(out_w, 0),
            jnp.stack(vecs, 0), jnp.stack(l1_w, 0), jnp.stack(l1_b, 0),
            jnp.stack(l2_w, 0))


if __name__ == "__main__":
    B = 2
    x = jax.random.normal(jax.random.PRNGKey(0), (B, TOTAL_S, 2 * D), jnp.float32)

    param_keys = jax.random.split(jax.random.PRNGKey(1), NUM_SPLITS)
    layer_params = [init_layer_params(k) for k in param_keys]
    packed = pack_params(layer_params)

    fwd = jax.jit(transformer_mapper_split)
    out = jax.block_until_ready(fwd(x, packed))

    assert out.shape == (B, D), out.shape
    assert bool(jnp.all(jnp.isfinite(out)))
    print("KERNEL_OK")
</pallas_src>

<mosaic_0001>
module attributes {stable_mosaic.version = 11 : i64} {
  func.func @_fused_mapper_kernel(%arg0: i32, %arg1: memref<3xi32, #tpu.memory_space<smem>>, %arg2: memref<1x2x8x80xf32, #tpu.memory_space<vmem>>, %arg3: memref<1x2x8x80xf32, #tpu.memory_space<vmem>>, %arg4: memref<1x6x80x80xbf16, #tpu.memory_space<vmem>>, %arg5: memref<1x6x1x80xf32, #tpu.memory_space<vmem>>, %arg6: memref<1x2x80x80xbf16, #tpu.memory_space<vmem>>, %arg7: memref<1x9x1x80xf32, #tpu.memory_space<vmem>>, %arg8: memref<1x80x1024xbf16, #tpu.memory_space<vmem>>, %arg9: memref<1x1x1024xf32, #tpu.memory_space<vmem>>, %arg10: memref<1x1024x80xbf16, #tpu.memory_space<vmem>>, %arg11: memref<2x80xf32, #tpu.memory_space<vmem>>) attributes {dimension_semantics = [#tpu.dimension_semantics<arbitrary>], iteration_bounds = array<i64: 3>, scalar_prefetch = 1 : i64, scratch_operands = 0 : i64, tpu.core_type = #tpu.core_type<tc>, window_params = [{transform_indices = @transform_0, window_bounds = array<i64: 1, 2, 8, 80>}, {transform_indices = @transform_1, window_bounds = array<i64: 1, 2, 8, 80>}, {transform_indices = @transform_2, window_bounds = array<i64: 1, 6, 80, 80>}, {transform_indices = @transform_3, window_bounds = array<i64: 1, 6, 1, 80>}, {transform_indices = @transform_4, window_bounds = array<i64: 1, 2, 80, 80>}, {transform_indices = @transform_5, window_bounds = array<i64: 1, 9, 1, 80>}, {transform_indices = @transform_6, window_bounds = array<i64: 1, 80, 1024>}, {transform_indices = @transform_7, window_bounds = array<i64: 1, 1, 1024>}, {transform_indices = @transform_8, window_bounds = array<i64: 1, 1024, 80>}, {pipeline_mode = #tpu.pipeline_mode<synchronous>, transform_indices = @transform_9, window_bounds = array<i64: 2, 80>}]} {
    %0 = arith.index_cast %arg0 : i32 to index
    %1 = memref.load %arg1[%0] : memref<3xi32, #tpu.memory_space<smem>>
    %c0 = arith.constant 0 : index
    %c0_0 = arith.constant 0 : index
    %c0_1 = arith.constant 0 : index
    %c0_2 = arith.constant 0 : index
    %2 = vector.load %arg2[%c0, %c0_0, %c0_1, %c0_2] : memref<1x2x8x80xf32, #tpu.memory_space<vmem>>, vector<1x2x8x80xf32>
    %3 = vector.shape_cast %2 : vector<1x2x8x80xf32> to vector<2x8x80xf32>
    %c0_3 = arith.constant 0 : index
    %c0_4 = arith.constant 0 : index
    %c0_5 = arith.constant 0 : index
    %c0_6 = arith.constant 0 : index
    %4 = vector.load %arg3[%c0_3, %c0_4, %c0_5, %c0_6] : memref<1x2x8x80xf32, #tpu.memory_space<vmem>>, vector<1x2x8x80xf32>
    %5 = vector.shape_cast %4 : vector<1x2x8x80xf32> to vector<2x8x80xf32>
    %6 = tpu.iota {dimensions = array<i32: 2>} : vector<1x1x8xi32>
    %7 = vector.broadcast %1 : i32 to vector<1x1x8xi32>
    %8 = arith.cmpi slt, %6, %7 : vector<1x1x8xi32>
    %cst = arith.constant 0.000000e+00 : f32
    %cst_7 = arith.constant -1.000000e+30 : f32
    %9 = vector.broadcast %cst : f32 to vector<1x1x8xf32>
    %10 = vector.broadcast %cst_7 : f32 to vector<1x1x8xf32>
    %11 = arith.select %8, %9, %10 : vector<1x1x8xi1>, vector<1x1x8xf32>
    %12 = tpu.iota {dimensions = array<i32: 1>} : vector<1x8x1xi32>
    %13 = vector.broadcast %1 : i32 to vector<1x8x1xi32>
    %14 = arith.cmpi slt, %12, %13 : vector<1x8x1xi32>
    %15 = arith.extui %14 : vector<1x8x1xi1> to vector<1x8x1xi32>
    %16 = arith.sitofp %15 : vector<1x8x1xi32> to vector<1x8x1xf32>
    %17 = vector.shape_cast %3 : vector<2x8x80xf32> to vector<16x80xf32>
    %18 = vector.shape_cast %3 : vector<2x8x80xf32> to vector<16x80xf32>
    %c0_8 = arith.constant 0 : index
    %c0_9 = arith.constant 0 : index
    %c0_10 = arith.constant 0 : index
    %c0_11 = arith.constant 0 : index
    %19 = vector.load %arg4[%c0_8, %c0_9, %c0_10, %c0_11] : memref<1x6x80x80xbf16, #tpu.memory_space<vmem>>, vector<1x1x80x80xbf16>
    %20 = vector.shape_cast %19 : vector<1x1x80x80xbf16> to vector<80x80xbf16>
    %c0_12 = arith.constant 0 : index
    %c0_13 = arith.constant 0 : index
    %c0_14 = arith.constant 0 : index
    %c0_15 = arith.constant 0 : index
    %21 = vector.load %arg5[%c0_12, %c0_13, %c0_14, %c0_15] : memref<1x6x1x80xf32, #tpu.memory_space<vmem>>, vector<1x1x1x80xf32>
    %22 = vector.shape_cast %21 : vector<1x1x1x80xf32> to vector<1x80xf32>
    %23 = arith.truncf %17 : vector<16x80xf32> to vector<16x80xbf16>
    %cst_16 = arith.constant dense<0.000000e+00> : vector<16x80xf32>
    %24 = tpu.matmul %23, %20, %cst_16 {dimension_numbers = #tpu.dot_dimension_numbers<[1], [0], [0], [1], [0, 0, 1, 1], [], []>} : vector<16x80xbf16>, vector<80x80xbf16>, vector<16x80xf32> -> vector<16x80xf32>
    %25 = vector.broadcast %22 : vector<1x80xf32> to vector<16x80xf32>
    %26 = arith.addf %24, %25 : vector<16x80xf32>
    %27 = vector.shape_cast %26 : vector<16x80xf32> to vector<2x8x80xf32>
    %c0_17 = arith.constant 0 : index
    %c1 = arith.constant 1 : index
    %c0_18 = arith.constant 0 : index
    %c0_19 = arith.constant 0 : index
    %28 = vector.load %arg4[%c0_17, %c1, %c0_18, %c0_19] : memref<1x6x80x80xbf16, #tpu.memory_space<vmem>>, vector<1x1x80x80xbf16>
    %29 = vector.shape_cast %28 : vector<1x1x80x80xbf16> to vector<80x80xbf16>
    %c0_20 = arith.constant 0 : index
    %c1_21 = arith.constant 1 : index
    %c0_22 = arith.constant 0 : index
    %c0_23 = arith.constant 0 : index
    %30 = vector.load %arg5[%c0_20, %c1_21, %c0_22, %c0_23] : memref<1x6x1x80xf32, #tpu.memory_space<vmem>>, vector<1x1x1x80xf32>
    %31 = vector.shape_cast %30 : vector<1x1x1x80xf32> to vector<1x80xf32>
    %32 = arith.truncf %18 : vector<16x80xf32> to vector<16x80xbf16>
    %cst_24 = arith.constant dense<0.000000e+00> : vector<16x80xf32>
    %33 = tpu.matmul %32, %29, %cst_24 {dimension_numbers = #tpu.dot_dimension_numbers<[1], [0], [0], [1], [0, 0, 1, 1], [], []>} : vector<16x80xbf16>, vector<80x80xbf16>, vector<16x80xf32> -> vector<16x80xf32>
    %34 = vector.broadcast %31 : vector<1x80xf32> to vector<16x80xf32>
    %35 = arith.addf %33, %34 : vector<16x80xf32>
    %36 = vector.shape_cast %35 : vector<16x80xf32> to vector<2x8x80xf32>
    %c0_25 = arith.constant 0 : index
    %c2 = arith.constant 2 : index
    %c0_26 = arith.constant 0 : index
    %c0_27 = arith.constant 0 : index
    %37 = vector.load %arg4[%c0_25, %c2, %c0_26, %c0_27] : memref<1x6x80x80xbf16, #tpu.memory_space<vmem>>, vector<1x1x80x80xbf16>
    %38 = vector.shape_cast %37 : vector<1x1x80x80xbf16> to vector<80x80xbf16>
    %c0_28 = arith.constant 0 : index
    %c2_29 = arith.constant 2 : index
    %c0_30 = arith.constant 0 : index
    %c0_31 = arith.constant 0 : index
    %39 = vector.load %arg5[%c0_28, %c2_29, %c0_30, %c0_31] : memref<1x6x1x80xf32, #tpu.memory_space<vmem>>, vector<1x1x1x80xf32>
    %40 = vector.shape_cast %39 : vector<1x1x1x80xf32> to vector<1x80xf32>
    %41 = arith.truncf %18 : vector<16x80xf32> to vector<16x80xbf16>
    %cst_32 = arith.constant dense<0.000000e+00> : vector<16x80xf32>
    %42 = tpu.matmul %41, %38, %cst_32 {dimension_numbers = #tpu.dot_dimension_numbers<[1], [0], [0], [1], [0, 0, 1, 1], [], []>} : vector<16x80xbf16>, vector<80x80xbf16>, vector<16x80xf32> -> vector<16x80xf32>
    %43 = vector.broadcast %40 : vector<1x80xf32> to vector<16x80xf32>
    %44 = arith.addf %42, %43 : vector<16x80xf32>
    %45 = vector.shape_cast %44 : vector<16x80xf32> to vector<2x8x80xf32>
    %c0_33 = arith.constant 0 : index
    %c0_34 = arith.constant 0 : index
    %c0_35 = arith.constant 0 : index
    %c0_36 = arith.constant 0 : index
    %46 = vector.load %arg6[%c0_33, %c0_34, %c0_35, %c0_36] : memref<1x2x80x80xbf16, #tpu.memory_space<vmem>>, vector<1x1x80x80xbf16>
    %47 = vector.shape_cast %46 : vector<1x1x80x80xbf16> to vector<80x80xbf16>
    %48 = vector.extract_strided_slice %27 {offsets = [0, 0, 0], sizes = [2, 8, 20], strides = [1, 1, 1]} : vector<2x8x80xf32> to vector<2x8x20xf32>
    %49 = vector.extract_strided_slice %36 {offsets = [0, 0, 0], sizes = [2, 8, 20], strides = [1, 1, 1]} : vector<2x8x80xf32> to vector<2x8x20xf32>
    "tpu.trace_start"() <{level = 10 : i32, message = "bqd,bkd->bqk"}> : () -> ()
    %cst_37 = arith.constant dense<0.000000e+00> : vector<2x8x8xf32>
    %50 = tpu.matmul %48, %49, %cst_37 {dimension_numbers = #tpu.dot_dimension_numbers<[2], [2], [1], [1], [0, 0, 0, 1, 1, 1], [0], [0]>} : vector<2x8x20xf32>, vector<2x8x20xf32>, vector<2x8x8xf32> -> vector<2x8x8xf32>
    "tpu.trace_stop"() : () -> ()
    %cst_38 = arith.constant 0.223606795 : f32
    %51 = vector.broadcast %cst_38 : f32 to vector<2x8x8xf32>
    %52 = arith.mulf %50, %51 : vector<2x8x8xf32>
    %53 = vector.broadcast %11 : vector<1x1x8xf32> to vector<2x8x8xf32>
    %54 = arith.addf %52, %53 : vector<2x8x8xf32>
    %cst_39 = arith.constant dense<0xFF800000> : vector<2x8xf32>
    %55 = vector.multi_reduction <maximumf>, %54, %cst_39 [2] : vector<2x8x8xf32> to vector<2x8xf32>
    %56 = vector.shape_cast %55 : vector<2x8xf32> to vector<2x8x1xf32>
    %57 = vector.broadcast %56 : vector<2x8x1xf32> to vector<2x8x8xf32>
    %58 = arith.subf %54, %57 : vector<2x8x8xf32>
    %59 = math.exp %58 : vector<2x8x8xf32>
    %cst_40 = arith.constant dense<0.000000e+00> : vector<2x8xf32>
    %60 = vector.multi_reduction <add>, %59, %cst_40 [2] : vector<2x8x8xf32> to vector<2x8xf32>
    %61 = vector.shape_cast %60 : vector<2x8xf32> to vector<2x8x1xf32>
    %62 = tpu.reciprocal %61 {approx = true} : vector<2x8x1xf32> -> vector<2x8x1xf32>
    %63 = vector.broadcast %62 : vector<2x8x1xf32> to vector<2x8x8xf32>
    %64 = arith.mulf %59, %63 : vector<2x8x8xf32>
    %65 = vector.extract_strided_slice %45 {offsets = [0, 0, 0], sizes = [2, 8, 20], strides = [1, 1, 1]} : vector<2x8x80xf32> to vector<2x8x20xf32>
    "tpu.trace_start"() <{level = 10 : i32, message = "bqk,bkd->bqd"}> : () -> ()
    %cst_41 = arith.constant dense<0.000000e+00> : vector<2x8x20xf32>
    %66 = tpu.matmul %64, %65, %cst_41 {dimension_numbers = #tpu.dot_dimension_numbers<[2], [1], [1], [2], [0, 0, 0, 1, 1, 2], [0], [0]>} : vector<2x8x8xf32>, vector<2x8x20xf32>, vector<2x8x20xf32> -> vector<2x8x20xf32>
    "tpu.trace_stop"() : () -> ()
    %67 = vector.shape_cast %66 : vector<2x8x20xf32> to vector<16x20xf32>
    %68 = arith.truncf %67 : vector<16x20xf32> to vector<16x20xbf16>
    %69 = vector.extract_strided_slice %47 {offsets = [0, 0], sizes = [20, 80], strides = [1, 1]} : vector<80x80xbf16> to vector<20x80xbf16>
    %cst_42 = arith.constant dense<0.000000e+00> : vector<16x80xf32>
    %70 = tpu.matmul %68, %69, %cst_42 {dimension_numbers = #tpu.dot_dimension_numbers<[1], [0], [0], [1], [0, 0, 1, 1], [], []>} : vector<16x20xbf16>, vector<20x80xbf16>, vector<16x80xf32> -> vector<16x80xf32>
    %71 = vector.extract_strided_slice %27 {offsets = [0, 0, 20], sizes = [2, 8, 20], strides = [1, 1, 1]} : vector<2x8x80xf32> to vector<2x8x20xf32>
    %72 = vector.extract_strided_slice %36 {offsets = [0, 0, 20], sizes = [2, 8, 20], strides = [1, 1, 1]} : vector<2x8x80xf32> to vector<2x8x20xf32>
    "tpu.trace_start"() <{level = 10 : i32, message = "bqd,bkd->bqk"}> : () -> ()
    %cst_43 = arith.constant dense<0.000000e+00> : vector<2x8x8xf32>
    %73 = tpu.matmul %71, %72, %cst_43 {dimension_numbers = #tpu.dot_dimension_numbers<[2], [2], [1], [1], [0, 0, 0, 1, 1, 1], [0], [0]>} : vector<2x8x20xf32>, vector<2x8x20xf32>, vector<2x8x8xf32> -> vector<2x8x8xf32>
    "tpu.trace_stop"() : () -> ()
    %cst_44 = arith.constant 0.223606795 : f32
    %74 = vector.broadcast %cst_44 : f32 to vector<2x8x8xf32>
    %75 = arith.mulf %73, %74 : vector<2x8x8xf32>
    %76 = vector.broadcast %11 : vector<1x1x8xf32> to vector<2x8x8xf32>
    %77 = arith.addf %75, %76 : vector<2x8x8xf32>
    %cst_45 = arith.constant dense<0xFF800000> : vector<2x8xf32>
    %78 = vector.multi_reduction <maximumf>, %77, %cst_45 [2] : vector<2x8x8xf32> to vector<2x8xf32>
    %79 = vector.shape_cast %78 : vector<2x8xf32> to vector<2x8x1xf32>
    %80 = vector.broadcast %79 : vector<2x8x1xf32> to vector<2x8x8xf32>
    %81 = arith.subf %77, %80 : vector<2x8x8xf32>
    %82 = math.exp %81 : vector<2x8x8xf32>
    %cst_46 = arith.constant dense<0.000000e+00> : vector<2x8xf32>
    %83 = vector.multi_reduction <add>, %82, %cst_46 [2] : vector<2x8x8xf32> to vector<2x8xf32>
    %84 = vector.shape_cast %83 : vector<2x8xf32> to vector<2x8x1xf32>
    %85 = tpu.reciprocal %84 {approx = true} : vector<2x8x1xf32> -> vector<2x8x1xf32>
    %86 = vector.broadcast %85 : vector<2x8x1xf32> to vector<2x8x8xf32>
    %87 = arith.mulf %82, %86 : vector<2x8x8xf32>
    %88 = vector.extract_strided_slice %45 {offsets = [0, 0, 20], sizes = [2, 8, 20], strides = [1, 1, 1]} : vector<2x8x80xf32> to vector<2x8x20xf32>
    "tpu.trace_start"() <{level = 10 : i32, message = "bqk,bkd->bqd"}> : () -> ()
    %cst_47 = arith.constant dense<0.000000e+00> : vector<2x8x20xf32>
    %89 = tpu.matmul %87, %88, %cst_47 {dimension_numbers = #tpu.dot_dimension_numbers<[2], [1], [1], [2], [0, 0, 0, 1, 1, 2], [0], [0]>} : vector<2x8x8xf32>, vector<2x8x20xf32>, vector<2x8x20xf32> -> vector<2x8x20xf32>
    "tpu.trace_stop"() : () -> ()
    %90 = vector.shape_cast %89 : vector<2x8x20xf32> to vector<16x20xf32>
    %91 = arith.truncf %90 : vector<16x20xf32> to vector<16x20xbf16>
    %92 = vector.extract_strided_slice %47 {offsets = [20, 0], sizes = [20, 80], strides = [1, 1]} : vector<80x80xbf16> to vector<20x80xbf16>
    %cst_48 = arith.constant dense<0.000000e+00> : vector<16x80xf32>
    %93 = tpu.matmul %91, %92, %cst_48 {dimension_numbers = #tpu.dot_dimension_numbers<[1], [0], [0], [1], [0, 0, 1, 1], [], []>} : vector<16x20xbf16>, vector<20x80xbf16>, vector<16x80xf32> -> vector<16x80xf32>
    %94 = arith.addf %70, %93 : vector<16x80xf32>
    %95 = vector.extract_strided_slice %27 {offsets = [0, 0, 40], sizes = [2, 8, 20], strides = [1, 1, 1]} : vector<2x8x80xf32> to vector<2x8x20xf32>
    %96 = vector.extract_strided_slice %36 {offsets = [0, 0, 40], sizes = [2, 8, 20], strides = [1, 1, 1]} : vector<2x8x80xf32> to vector<2x8x20xf32>
    "tpu.trace_start"() <{level = 10 : i32, message = "bqd,bkd->bqk"}> : () -> ()
    %cst_49 = arith.constant dense<0.000000e+00> : vector<2x8x8xf32>
    %97 = tpu.matmul %95, %96, %cst_49 {dimension_numbers = #tpu.dot_dimension_numbers<[2], [2], [1], [1], [0, 0, 0, 1, 1, 1], [0], [0]>} : vector<2x8x20xf32>, vector<2x8x20xf32>, vector<2x8x8xf32> -> vector<2x8x8xf32>
    "tpu.trace_stop"() : () -> ()
    %cst_50 = arith.constant 0.223606795 : f32
    %98 = vector.broadcast %cst_50 : f32 to vector<2x8x8xf32>
    %99 = arith.mulf %97, %98 : vector<2x8x8xf32>
    %100 = vector.broadcast %11 : vector<1x1x8xf32> to vector<2x8x8xf32>
    %101 = arith.addf %99, %100 : vector<2x8x8xf32>
    %cst_51 = arith.constant dense<0xFF800000> : vector<2x8xf32>
    %102 = vector.multi_reduction <maximumf>, %101, %cst_51 [2] : vector<2x8x8xf32> to vector<2x8xf32>
    %103 = vector.shape_cast %102 : vector<2x8xf32> to vector<2x8x1xf32>
    %104 = vector.broadcast %103 : vector<2x8x1xf32> to vector<2x8x8xf32>
    %105 = arith.subf %101, %104 : vector<2x8x8xf32>
    %106 = math.exp %105 : vector<2x8x8xf32>
    %cst_52 = arith.constant dense<0.000000e+00> : vector<2x8xf32>
    %107 = vector.multi_reduction <add>, %106, %cst_52 [2] : vector<2x8x8xf32> to vector<2x8xf32>
    %108 = vector.shape_cast %107 : vector<2x8xf32> to vector<2x8x1xf32>
    %109 = tpu.reciprocal %108 {approx = true} : vector<2x8x1xf32> -> vector<2x8x1xf32>
    %110 = vector.broadcast %109 : vector<2x8x1xf32> to vector<2x8x8xf32>
    %111 = arith.mulf %106, %110 : vector<2x8x8xf32>
    %112 = vector.extract_strided_slice %45 {offsets = [0, 0, 40], sizes = [2, 8, 20], strides = [1, 1, 1]} : vector<2x8x80xf32> to vector<2x8x20xf32>
    "tpu.trace_start"() <{level = 10 : i32, message = "bqk,bkd->bqd"}> : () -> ()
    %cst_53 = arith.constant dense<0.000000e+00> : vector<2x8x20xf32>
    %113 = tpu.matmul %111, %112, %cst_53 {dimension_numbers = #tpu.dot_dimension_numbers<[2], [1], [1], [2], [0, 0, 0, 1, 1, 2], [0], [0]>} : vector<2x8x8xf32>, vector<2x8x20xf32>, vector<2x8x20xf32> -> vector<2x8x20xf32>
    "tpu.trace_stop"() : () -> ()
    %114 = vector.shape_cast %113 : vector<2x8x20xf32> to vector<16x20xf32>
    %115 = arith.truncf %114 : vector<16x20xf32> to vector<16x20xbf16>
    %116 = vector.extract_strided_slice %47 {offsets = [40, 0], sizes = [20, 80], strides = [1, 1]} : vector<80x80xbf16> to vector<20x80xbf16>
    %cst_54 = arith.constant dense<0.000000e+00> : vector<16x80xf32>
    %117 = tpu.matmul %115, %116, %cst_54 {dimension_numbers = #tpu.dot_dimension_numbers<[1], [0], [0], [1], [0, 0, 1, 1], [], []>} : vector<16x20xbf16>, vector<20x80xbf16>, vector<16x80xf32> -> vector<16x80xf32>
    %118 = arith.addf %94, %117 : vector<16x80xf32>
    %119 = vector.extract_strided_slice %27 {offsets = [0, 0, 60], sizes = [2, 8, 20], strides = [1, 1, 1]} : vector<2x8x80xf32> to vector<2x8x20xf32>
    %120 = vector.extract_strided_slice %36 {offsets = [0, 0, 60], sizes = [2, 8, 20], strides = [1, 1, 1]} : vector<2x8x80xf32> to vector<2x8x20xf32>
    "tpu.trace_start"() <{level = 10 : i32, message = "bqd,bkd->bqk"}> : () -> ()
    %cst_55 = arith.constant dense<0.000000e+00> : vector<2x8x8xf32>
    %121 = tpu.matmul %119, %120, %cst_55 {dimension_numbers = #tpu.dot_dimension_numbers<[2], [2], [1], [1], [0, 0, 0, 1, 1, 1], [0], [0]>} : vector<2x8x20xf32>, vector<2x8x20xf32>, vector<2x8x8xf32> -> vector<2x8x8xf32>
    "tpu.trace_stop"() : () -> ()
    %cst_56 = arith.constant 0.223606795 : f32
    %122 = vector.broadcast %cst_56 : f32 to vector<2x8x8xf32>
    %123 = arith.mulf %121, %122 : vector<2x8x8xf32>
    %124 = vector.broadcast %11 : vector<1x1x8xf32> to vector<2x8x8xf32>
    %125 = arith.addf %123, %124 : vector<2x8x8xf32>
    %cst_57 = arith.constant dense<0xFF800000> : vector<2x8xf32>
    %126 = vector.multi_reduction <maximumf>, %125, %cst_57 [2] : vector<2x8x8xf32> to vector<2x8xf32>
    %127 = vector.shape_cast %126 : vector<2x8xf32> to vector<2x8x1xf32>
    %128 = vector.broadcast %127 : vector<2x8x1xf32> to vector<2x8x8xf32>
    %129 = arith.subf %125, %128 : vector<2x8x8xf32>
    %130 = math.exp %129 : vector<2x8x8xf32>
    %cst_58 = arith.constant dense<0.000000e+00> : vector<2x8xf32>
    %131 = vector.multi_reduction <add>, %130, %cst_58 [2] : vector<2x8x8xf32> to vector<2x8xf32>
    %132 = vector.shape_cast %131 : vector<2x8xf32> to vector<2x8x1xf32>
    %133 = tpu.reciprocal %132 {approx = true} : vector<2x8x1xf32> -> vector<2x8x1xf32>
    %134 = vector.broadcast %133 : vector<2x8x1xf32> to vector<2x8x8xf32>
    %135 = arith.mulf %130, %134 : vector<2x8x8xf32>
    %136 = vector.extract_strided_slice %45 {offsets = [0, 0, 60], sizes = [2, 8, 20], strides = [1, 1, 1]} : vector<2x8x80xf32> to vector<2x8x20xf32>
    "tpu.trace_start"() <{level = 10 : i32, message = "bqk,bkd->bqd"}> : () -> ()
    %cst_59 = arith.constant dense<0.000000e+00> : vector<2x8x20xf32>
    %137 = tpu.matmul %135, %136, %cst_59 {dimension_numbers = #tpu.dot_dimension_numbers<[2], [1], [1], [2], [0, 0, 0, 1, 1, 2], [0], [0]>} : vector<2x8x8xf32>, vector<2x8x20xf32>, vector<2x8x20xf32> -> vector<2x8x20xf32>
    "tpu.trace_stop"() : () -> ()
    %138 = vector.shape_cast %137 : vector<2x8x20xf32> to vector<16x20xf32>
    %139 = arith.truncf %138 : vector<16x20xf32> to vector<16x20xbf16>
    %140 = vector.extract_strided_slice %47 {offsets = [60, 0], sizes = [20, 80], strides = [1, 1]} : vector<80x80xbf16> to vector<20x80xbf16>
    %cst_60 = arith.constant dense<0.000000e+00> : vector<16x80xf32>
    %141 = tpu.matmul %139, %140, %cst_60 {dimension_numbers = #tpu.dot_dimension_numbers<[1], [0], [0], [1], [0, 0, 1, 1], [], []>} : vector<16x20xbf16>, vector<20x80xbf16>, vector<16x80xf32> -> vector<16x80xf32>
    %142 = arith.addf %118, %141 : vector<16x80xf32>
    %c0_61 = arith.constant 0 : index
    %c0_62 = arith.constant 0 : index
    %c0_63 = arith.constant 0 : index
    %c0_64 = arith.constant 0 : index
    %143 = vector.load %arg7[%c0_61, %c0_62, %c0_63, %c0_64] : memref<1x9x1x80xf32, #tpu.memory_space<vmem>>, vector<1x1x1x80xf32>
    %144 = vector.shape_cast %143 : vector<1x1x1x80xf32> to vector<1x80xf32>
    %145 = vector.broadcast %144 : vector<1x80xf32> to vector<16x80xf32>
    %146 = arith.addf %142, %145 : vector<16x80xf32>
    %147 = vector.shape_cast %146 : vector<16x80xf32> to vector<2x8x80xf32>
    %148 = arith.addf %3, %147 : vector<2x8x80xf32>
    %c0_65 = arith.constant 0 : index
    %c3 = arith.constant 3 : index
    %c0_66 = arith.constant 0 : index
    %c0_67 = arith.constant 0 : index
    %149 = vector.load %arg7[%c0_65, %c3, %c0_66, %c0_67] : memref<1x9x1x80xf32, #tpu.memory_space<vmem>>, vector<1x1x1x80xf32>
    %150 = vector.shape_cast %149 : vector<1x1x1x80xf32> to vector<1x80xf32>
    %c0_68 = arith.constant 0 : index
    %c4 = arith.constant 4 : index
    %c0_69 = arith.constant 0 : index
    %c0_70 = arith.constant 0 : index
    %151 = vector.load %arg7[%c0_68, %c4, %c0_69, %c0_70] : memref<1x9x1x80xf32, #tpu.memory_space<vmem>>, vector<1x1x1x80xf32>
    %152 = vector.shape_cast %151 : vector<1x1x1x80xf32> to vector<1x80xf32>
    %cst_71 = arith.constant dense<0.000000e+00> : vector<2x8xf32>
    %153 = vector.multi_reduction <add>, %148, %cst_71 [2] : vector<2x8x80xf32> to vector<2x8xf32>
    %154 = vector.shape_cast %153 : vector<2x8xf32> to vector<2x8x1xf32>
    %cst_72 = arith.constant 8.000000e+01 : f32
    %155 = vector.broadcast %cst_72 : f32 to vector<2x8x1xf32>
    %156 = arith.divf %154, %155 : vector<2x8x1xf32>
    %157 = vector.broadcast %156 : vector<2x8x1xf32> to vector<2x8x80xf32>
    %158 = arith.subf %148, %157 : vector<2x8x80xf32>
    %159 = arith.mulf %158, %158 : vector<2x8x80xf32>
    %cst_73 = arith.constant dense<0.000000e+00> : vector<2x8xf32>
    %160 = vector.multi_reduction <add>, %159, %cst_73 [2] : vector<2x8x80xf32> to vector<2x8xf32>
    %161 = vector.shape_cast %160 : vector<2x8xf32> to vector<2x8x1xf32>
    %cst_74 = arith.constant 8.000000e+01 : f32
    %162 = vector.broadcast %cst_74 : f32 to vector<2x8x1xf32>
    %163 = arith.divf %161, %162 : vector<2x8x1xf32>
    %164 = vector.broadcast %156 : vector<2x8x1xf32> to vector<2x8x80xf32>
    %165 = arith.subf %148, %164 : vector<2x8x80xf32>
    %cst_75 = arith.constant 9.99999974E-6 : f32
    %166 = vector.broadcast %cst_75 : f32 to vector<2x8x1xf32>
    %167 = arith.addf %163, %166 : vector<2x8x1xf32>
    %168 = math.rsqrt %167 : vector<2x8x1xf32>
    %169 = vector.broadcast %168 : vector<2x8x1xf32> to vector<2x8x80xf32>
    %170 = arith.mulf %165, %169 : vector<2x8x80xf32>
    %171 = vector.shape_cast %150 : vector<1x80xf32> to vector<1x1x80xf32>
    %172 = vector.broadcast %171 : vector<1x1x80xf32> to vector<2x8x80xf32>
    %173 = arith.mulf %170, %172 : vector<2x8x80xf32>
    %174 = vector.shape_cast %152 : vector<1x80xf32> to vector<1x1x80xf32>
    %175 = vector.broadcast %174 : vector<1x1x80xf32> to vector<2x8x80xf32>
    %176 = arith.addf %173, %175 : vector<2x8x80xf32>
    %177 = vector.shape_cast %176 : vector<2x8x80xf32> to vector<16x80xf32>
    %178 = vector.shape_cast %5 : vector<2x8x80xf32> to vector<16x80xf32>
    %c0_76 = arith.constant 0 : index
    %c3_77 = arith.constant 3 : index
    %c0_78 = arith.constant 0 : index
    %c0_79 = arith.constant 0 : index
    %179 = vector.load %arg4[%c0_76, %c3_77, %c0_78, %c0_79] : memref<1x6x80x80xbf16, #tpu.memory_space<vmem>>, vector<1x1x80x80xbf16>
    %180 = vector.shape_cast %179 : vector<1x1x80x80xbf16> to vector<80x80xbf16>
    %c0_80 = arith.constant 0 : index
    %c3_81 = arith.constant 3 : index
    %c0_82 = arith.constant 0 : index
    %c0_83 = arith.constant 0 : index
    %181 = vector.load %arg5[%c0_80, %c3_81, %c0_82, %c0_83] : memref<1x6x1x80xf32, #tpu.memory_space<vmem>>, vector<1x1x1x80xf32>
    %182 = vector.shape_cast %181 : vector<1x1x1x80xf32> to vector<1x80xf32>
    %183 = arith.truncf %177 : vector<16x80xf32> to vector<16x80xbf16>
    %cst_84 = arith.constant dense<0.000000e+00> : vector<16x80xf32>
    %184 = tpu.matmul %183, %180, %cst_84 {dimension_numbers = #tpu.dot_dimension_numbers<[1], [0], [0], [1], [0, 0, 1, 1], [], []>} : vector<16x80xbf16>, vector<80x80xbf16>, vector<16x80xf32> -> vector<16x80xf32>
    %185 = vector.broadcast %182 : vector<1x80xf32> to vector<16x80xf32>
    %186 = arith.addf %184, %185 : vector<16x80xf32>
    %187 = vector.shape_cast %186 : vector<16x80xf32> to vector<2x8x80xf32>
    %c0_85 = arith.constant 0 : index
    %c4_86 = arith.constant 4 : index
    %c0_87 = arith.constant 0 : index
    %c0_88 = arith.constant 0 : index
    %188 = vector.load %arg4[%c0_85, %c4_86, %c0_87, %c0_88] : memref<1x6x80x80xbf16, #tpu.memory_space<vmem>>, vector<1x1x80x80xbf16>
    %189 = vector.shape_cast %188 : vector<1x1x80x80xbf16> to vector<80x80xbf16>
    %c0_89 = arith.constant 0 : index
    %c4_90 = arith.constant 4 : index
    %c0_91 = arith.constant 0 : index
    %c0_92 = arith.constant 0 : index
    %190 = vector.load %arg5[%c0_89, %c4_90, %c0_91, %c0_92] : memref<1x6x1x80xf32, #tpu.memory_space<vmem>>, vector<1x1x1x80xf32>
    %191 = vector.shape_cast %190 : vector<1x1x1x80xf32> to vector<1x80xf32>
    %192 = arith.truncf %178 : vector<16x80xf32> to vector<16x80xbf16>
    %cst_93 = arith.constant dense<0.000000e+00> : vector<16x80xf32>
    %193 = tpu.matmul %192, %189, %cst_93 {dimension_numbers = #tpu.dot_dimension_numbers<[1], [0], [0], [1], [0, 0, 1, 1], [], []>} : vector<16x80xbf16>, vector<80x80xbf16>, vector<16x80xf32> -> vector<16x80xf32>
    %194 = vector.broadcast %191 : vector<1x80xf32> to vector<16x80xf32>
    %195 = arith.addf %193, %194 : vector<16x80xf32>
    %196 = vector.shape_cast %195 : vector<16x80xf32> to vector<2x8x80xf32>
    %c0_94 = arith.constant 0 : index
    %c5 = arith.constant 5 : index
    %c0_95 = arith.constant 0 : index
    %c0_96 = arith.constant 0 : index
    %197 = vector.load %arg4[%c0_94, %c5, %c0_95, %c0_96] : memref<1x6x80x80xbf16, #tpu.memory_space<vmem>>, vector<1x1x80x80xbf16>
    %198 = vector.shape_cast %197 : vector<1x1x80x80xbf16> to vector<80x80xbf16>
    %c0_97 = arith.constant 0 : index
    %c5_98 = arith.constant 5 : index
    %c0_99 = arith.constant 0 : index
    %c0_100 = arith.constant 0 : index
    %199 = vector.load %arg5[%c0_97, %c5_98, %c0_99, %c0_100] : memref<1x6x1x80xf32, #tpu.memory_space<vmem>>, vector<1x1x1x80xf32>
    %200 = vector.shape_cast %199 : vector<1x1x1x80xf32> to vector<1x80xf32>
    %201 = arith.truncf %178 : vector<16x80xf32> to vector<16x80xbf16>
    %cst_101 = arith.constant dense<0.000000e+00> : vector<16x80xf32>
    %202 = tpu.matmul %201, %198, %cst_101 {dimension_numbers = #tpu.dot_dimension_numbers<[1], [0], [0], [1], [0, 0, 1, 1], [], []>} : vector<16x80xbf16>, vector<80x80xbf16>, vector<16x80xf32> -> vector<16x80xf32>
    %203 = vector.broadcast %200 : vector<1x80xf32> to vector<16x80xf32>
    %204 = arith.addf %202, %203 : vector<16x80xf32>
    %205 = vector.shape_cast %204 : vector<16x80xf32> to vector<2x8x80xf32>
    %c0_102 = arith.constant 0 : index
    %c1_103 = arith.constant 1 : index
    %c0_104 = arith.constant 0 : index
    %c0_105 = arith.constant 0 : index
    %206 = vector.load %arg6[%c0_102, %c1_103, %c0_104, %c0_105] : memref<1x2x80x80xbf16, #tpu.memory_space<vmem>>, vector<1x1x80x80xbf16>
    %207 = vector.shape_cast %206 : vector<1x1x80x80xbf16> to vector<80x80xbf16>
    %208 = vector.extract_strided_slice %187 {offsets = [0, 0, 0], sizes = [2, 8, 20], strides = [1, 1, 1]} : vector<2x8x80xf32> to vector<2x8x20xf32>
    %209 = vector.extract_strided_slice %196 {offsets = [0, 0, 0], sizes = [2, 8, 20], strides = [1, 1, 1]} : vector<2x8x80xf32> to vector<2x8x20xf32>
    "tpu.trace_start"() <{level = 10 : i32, message = "bqd,bkd->bqk"}> : () -> ()
    %cst_106 = arith.constant dense<0.000000e+00> : vector<2x8x8xf32>
    %210 = tpu.matmul %208, %209, %cst_106 {dimension_numbers = #tpu.dot_dimension_numbers<[2], [2], [1], [1], [0, 0, 0, 1, 1, 1], [0], [0]>} : vector<2x8x20xf32>, vector<2x8x20xf32>, vector<2x8x8xf32> -> vector<2x8x8xf32>
    "tpu.trace_stop"() : () -> ()
    %cst_107 = arith.constant 0.223606795 : f32
    %211 = vector.broadcast %cst_107 : f32 to vector<2x8x8xf32>
    %212 = arith.mulf %210, %211 : vector<2x8x8xf32>
    %213 = vector.broadcast %11 : vector<1x1x8xf32> to vector<2x8x8xf32>
    %214 = arith.addf %212, %213 : vector<2x8x8xf32>
    %cst_108 = arith.constant dense<0xFF800000> : vector<2x8xf32>
    %215 = vector.multi_reduction <maximumf>, %214, %cst_108 [2] : vector<2x8x8xf32> to vector<2x8xf32>
    %216 = vector.shape_cast %215 : vector<2x8xf32> to vector<2x8x1xf32>
    %217 = vector.broadcast %216 : vector<2x8x1xf32> to vector<2x8x8xf32>
    %218 = arith.subf %214, %217 : vector<2x8x8xf32>
    %219 = math.exp %218 : vector<2x8x8xf32>
    %cst_109 = arith.constant dense<0.000000e+00> : vector<2x8xf32>
    %220 = vector.multi_reduction <add>, %219, %cst_109 [2] : vector<2x8x8xf32> to vector<2x8xf32>
    %221 = vector.shape_cast %220 : vector<2x8xf32> to vector<2x8x1xf32>
    %222 = tpu.reciprocal %221 {approx = true} : vector<2x8x1xf32> -> vector<2x8x1xf32>
    %223 = vector.broadcast %222 : vector<2x8x1xf32> to vector<2x8x8xf32>
    %224 = arith.mulf %219, %223 : vector<2x8x8xf32>
    %225 = vector.extract_strided_slice %205 {offsets = [0, 0, 0], sizes = [2, 8, 20], strides = [1, 1, 1]} : vector<2x8x80xf32> to vector<2x8x20xf32>
    "tpu.trace_start"() <{level = 10 : i32, message = "bqk,bkd->bqd"}> : () -> ()
    %cst_110 = arith.constant dense<0.000000e+00> : vector<2x8x20xf32>
    %226 = tpu.matmul %224, %225, %cst_110 {dimension_numbers = #tpu.dot_dimension_numbers<[2], [1], [1], [2], [0, 0, 0, 1, 1, 2], [0], [0]>} : vector<2x8x8xf32>, vector<2x8x20xf32>, vector<2x8x20xf32> -> vector<2x8x20xf32>
    "tpu.trace_stop"() : () -> ()
    %227 = vector.shape_cast %226 : vector<2x8x20xf32> to vector<16x20xf32>
    %228 = arith.truncf %227 : vector<16x20xf32> to vector<16x20xbf16>
    %229 = vector.extract_strided_slice %207 {offsets = [0, 0], sizes = [20, 80], strides = [1, 1]} : vector<80x80xbf16> to vector<20x80xbf16>
    %cst_111 = arith.constant dense<0.000000e+00> : vector<16x80xf32>
    %230 = tpu.matmul %228, %229, %cst_111 {dimension_numbers = #tpu.dot_dimension_numbers<[1], [0], [0], [1], [0, 0, 1, 1], [], []>} : vector<16x20xbf16>, vector<20x80xbf16>, vector<16x80xf32> -> vector<16x80xf32>
    %231 = vector.extract_strided_slice %187 {offsets = [0, 0, 20], sizes = [2, 8, 20], strides = [1, 1, 1]} : vector<2x8x80xf32> to vector<2x8x20xf32>
    %232 = vector.extract_strided_slice %196 {offsets = [0, 0, 20], sizes = [2, 8, 20], strides = [1, 1, 1]} : vector<2x8x80xf32> to vector<2x8x20xf32>
    "tpu.trace_start"() <{level = 10 : i32, message = "bqd,bkd->bqk"}> : () -> ()
    %cst_112 = arith.constant dense<0.000000e+00> : vector<2x8x8xf32>
    %233 = tpu.matmul %231, %232, %cst_112 {dimension_numbers = #tpu.dot_dimension_numbers<[2], [2], [1], [1], [0, 0, 0, 1, 1, 1], [0], [0]>} : vector<2x8x20xf32>, vector<2x8x20xf32>, vector<2x8x8xf32> -> vector<2x8x8xf32>
    "tpu.trace_stop"() : () -> ()
    %cst_113 = arith.constant 0.223606795 : f32
    %234 = vector.broadcast %cst_113 : f32 to vector<2x8x8xf32>
    %235 = arith.mulf %233, %234 : vector<2x8x8xf32>
    %236 = vector.broadcast %11 : vector<1x1x8xf32> to vector<2x8x8xf32>
    %237 = arith.addf %235, %236 : vector<2x8x8xf32>
    %cst_114 = arith.constant dense<0xFF800000> : vector<2x8xf32>
    %238 = vector.multi_reduction <maximumf>, %237, %cst_114 [2] : vector<2x8x8xf32> to vector<2x8xf32>
    %239 = vector.shape_cast %238 : vector<2x8xf32> to vector<2x8x1xf32>
    %240 = vector.broadcast %239 : vector<2x8x1xf32> to vector<2x8x8xf32>
    %241 = arith.subf %237, %240 : vector<2x8x8xf32>
    %242 = math.exp %241 : vector<2x8x8xf32>
    %cst_115 = arith.constant dense<0.000000e+00> : vector<2x8xf32>
    %243 = vector.multi_reduction <add>, %242, %cst_115 [2] : vector<2x8x8xf32> to vector<2x8xf32>
    %244 = vector.shape_cast %243 : vector<2x8xf32> to vector<2x8x1xf32>
    %245 = tpu.reciprocal %244 {approx = true} : vector<2x8x1xf32> -> vector<2x8x1xf32>
    %246 = vector.broadcast %245 : vector<2x8x1xf32> to vector<2x8x8xf32>
    %247 = arith.mulf %242, %246 : vector<2x8x8xf32>
    %248 = vector.extract_strided_slice %205 {offsets = [0, 0, 20], sizes = [2, 8, 20], strides = [1, 1, 1]} : vector<2x8x80xf32> to vector<2x8x20xf32>
    "tpu.trace_start"() <{level = 10 : i32, message = "bqk,bkd->bqd"}> : () -> ()
    %cst_116 = arith.constant dense<0.000000e+00> : vector<2x8x20xf32>
    %249 = tpu.matmul %247, %248, %cst_116 {dimension_numbers = #tpu.dot_dimension_numbers<[2], [1], [1], [2], [0, 0, 0, 1, 1, 2], [0], [0]>} : vector<2x8x8xf32>, vector<2x8x20xf32>, vector<2x8x20xf32> -> vector<2x8x20xf32>
    "tpu.trace_stop"() : () -> ()
    %250 = vector.shape_cast %249 : vector<2x8x20xf32> to vector<16x20xf32>
    %251 = arith.truncf %250 : vector<16x20xf32> to vector<16x20xbf16>
    %252 = vector.extract_strided_slice %207 {offsets = [20, 0], sizes = [20, 80], strides = [1, 1]} : vector<80x80xbf16> to vector<20x80xbf16>
    %cst_117 = arith.constant dense<0.000000e+00> : vector<16x80xf32>
    %253 = tpu.matmul %251, %252, %cst_117 {dimension_numbers = #tpu.dot_dimension_numbers<[1], [0], [0], [1], [0, 0, 1, 1], [], []>} : vector<16x20xbf16>, vector<20x80xbf16>, vector<16x80xf32> -> vector<16x80xf32>
    %254 = arith.addf %230, %253 : vector<16x80xf32>
    %255 = vector.extract_strided_slice %187 {offsets = [0, 0, 40], sizes = [2, 8, 20], strides = [1, 1, 1]} : vector<2x8x80xf32> to vector<2x8x20xf32>
    %256 = vector.extract_strided_slice %196 {offsets = [0, 0, 40], sizes = [2, 8, 20], strides = [1, 1, 1]} : vector<2x8x80xf32> to vector<2x8x20xf32>
    "tpu.trace_start"() <{level = 10 : i32, message = "bqd,bkd->bqk"}> : () -> ()
    %cst_118 = arith.constant dense<0.000000e+00> : vector<2x8x8xf32>
    %257 = tpu.matmul %255, %256, %cst_118 {dimension_numbers = #tpu.dot_dimension_numbers<[2], [2], [1], [1], [0, 0, 0, 1, 1, 1], [0], [0]>} : vector<2x8x20xf32>, vector<2x8x20xf32>, vector<2x8x8xf32> -> vector<2x8x8xf32>
    "tpu.trace_stop"() : () -> ()
    %cst_119 = arith.constant 0.223606795 : f32
    %258 = vector.broadcast %cst_119 : f32 to vector<2x8x8xf32>
    %259 = arith.mulf %257, %258 : vector<2x8x8xf32>
    %260 = vector.broadcast %11 : vector<1x1x8xf32> to vector<2x8x8xf32>
    %261 = arith.addf %259, %260 : vector<2x8x8xf32>
    %cst_120 = arith.constant dense<0xFF800000> : vector<2x8xf32>
    %262 = vector.multi_reduction <maximumf>, %261, %cst_120 [2] : vector<2x8x8xf32> to vector<2x8xf32>
    %263 = vector.shape_cast %262 : vector<2x8xf32> to vector<2x8x1xf32>
    %264 = vector.broadcast %263 : vector<2x8x1xf32> to vector<2x8x8xf32>
    %265 = arith.subf %261, %264 : vector<2x8x8xf32>
    %266 = math.exp %265 : vector<2x8x8xf32>
    %cst_121 = arith.constant dense<0.000000e+00> : vector<2x8xf32>
    %267 = vector.multi_reduction <add>, %266, %cst_121 [2] : vector<2x8x8xf32> to vector<2x8xf32>
    %268 = vector.shape_cast %267 : vector<2x8xf32> to vector<2x8x1xf32>
    %269 = tpu.reciprocal %268 {approx = true} : vector<2x8x1xf32> -> vector<2x8x1xf32>
    %270 = vector.broadcast %269 : vector<2x8x1xf32> to vector<2x8x8xf32>
    %271 = arith.mulf %266, %270 : vector<2x8x8xf32>
    %272 = vector.extract_strided_slice %205 {offsets = [0, 0, 40], sizes = [2, 8, 20], strides = [1, 1, 1]} : vector<2x8x80xf32> to vector<2x8x20xf32>
    "tpu.trace_start"() <{level = 10 : i32, message = "bqk,bkd->bqd"}> : () -> ()
    %cst_122 = arith.constant dense<0.000000e+00> : vector<2x8x20xf32>
    %273 = tpu.matmul %271, %272, %cst_122 {dimension_numbers = #tpu.dot_dimension_numbers<[2], [1], [1], [2], [0, 0, 0, 1, 1, 2], [0], [0]>} : vector<2x8x8xf32>, vector<2x8x20xf32>, vector<2x8x20xf32> -> vector<2x8x20xf32>
    "tpu.trace_stop"() : () -> ()
    %274 = vector.shape_cast %273 : vector<2x8x20xf32> to vector<16x20xf32>
    %275 = arith.truncf %274 : vector<16x20xf32> to vector<16x20xbf16>
    %276 = vector.extract_strided_slice %207 {offsets = [40, 0], sizes = [20, 80], strides = [1, 1]} : vector<80x80xbf16> to vector<20x80xbf16>
    %cst_123 = arith.constant dense<0.000000e+00> : vector<16x80xf32>
    %277 = tpu.matmul %275, %276, %cst_123 {dimension_numbers = #tpu.dot_dimension_numbers<[1], [0], [0], [1], [0, 0, 1, 1], [], []>} : vector<16x20xbf16>, vector<20x80xbf16>, vector<16x80xf32> -> vector<16x80xf32>
    %278 = arith.addf %254, %277 : vector<16x80xf32>
    %279 = vector.extract_strided_slice %187 {offsets = [0, 0, 60], sizes = [2, 8, 20], strides = [1, 1, 1]} : vector<2x8x80xf32> to vector<2x8x20xf32>
    %280 = vector.extract_strided_slice %196 {offsets = [0, 0, 60], sizes = [2, 8, 20], strides = [1, 1, 1]} : vector<2x8x80xf32> to vector<2x8x20xf32>
    "tpu.trace_start"() <{level = 10 : i32, message = "bqd,bkd->bqk"}> : () -> ()
    %cst_124 = arith.constant dense<0.000000e+00> : vector<2x8x8xf32>
    %281 = tpu.matmul %279, %280, %cst_124 {dimension_numbers = #tpu.dot_dimension_numbers<[2], [2], [1], [1], [0, 0, 0, 1, 1, 1], [0], [0]>} : vector<2x8x20xf32>, vector<2x8x20xf32>, vector<2x8x8xf32> -> vector<2x8x8xf32>
    "tpu.trace_stop"() : () -> ()
    %cst_125 = arith.constant 0.223606795 : f32
    %282 = vector.broadcast %cst_125 : f32 to vector<2x8x8xf32>
    %283 = arith.mulf %281, %282 : vector<2x8x8xf32>
    %284 = vector.broadcast %11 : vector<1x1x8xf32> to vector<2x8x8xf32>
    %285 = arith.addf %283, %284 : vector<2x8x8xf32>
    %cst_126 = arith.constant dense<0xFF800000> : vector<2x8xf32>
    %286 = vector.multi_reduction <maximumf>, %285, %cst_126 [2] : vector<2x8x8xf32> to vector<2x8xf32>
    %287 = vector.shape_cast %286 : vector<2x8xf32> to vector<2x8x1xf32>
    %288 = vector.broadcast %287 : vector<2x8x1xf32> to vector<2x8x8xf32>
    %289 = arith.subf %285, %288 : vector<2x8x8xf32>
    %290 = math.exp %289 : vector<2x8x8xf32>
    %cst_127 = arith.constant dense<0.000000e+00> : vector<2x8xf32>
    %291 = vector.multi_reduction <add>, %290, %cst_127 [2] : vector<2x8x8xf32> to vector<2x8xf32>
    %292 = vector.shape_cast %291 : vector<2x8xf32> to vector<2x8x1xf32>
    %293 = tpu.reciprocal %292 {approx = true} : vector<2x8x1xf32> -> vector<2x8x1xf32>
    %294 = vector.broadcast %293 : vector<2x8x1xf32> to vector<2x8x8xf32>
    %295 = arith.mulf %290, %294 : vector<2x8x8xf32>
    %296 = vector.extract_strided_slice %205 {offsets = [0, 0, 60], sizes = [2, 8, 20], strides = [1, 1, 1]} : vector<2x8x80xf32> to vector<2x8x20xf32>
    "tpu.trace_start"() <{level = 10 : i32, message = "bqk,bkd->bqd"}> : () -> ()
    %cst_128 = arith.constant dense<0.000000e+00> : vector<2x8x20xf32>
    %297 = tpu.matmul %295, %296, %cst_128 {dimension_numbers = #tpu.dot_dimension_numbers<[2], [1], [1], [2], [0, 0, 0, 1, 1, 2], [0], [0]>} : vector<2x8x8xf32>, vector<2x8x20xf32>, vector<2x8x20xf32> -> vector<2x8x20xf32>
    "tpu.trace_stop"() : () -> ()
    %298 = vector.shape_cast %297 : vector<2x8x20xf32> to vector<16x20xf32>
    %299 = arith.truncf %298 : vector<16x20xf32> to vector<16x20xbf16>
    %300 = vector.extract_strided_slice %207 {offsets = [60, 0], sizes = [20, 80], strides = [1, 1]} : vector<80x80xbf16> to vector<20x80xbf16>
    %cst_129 = arith.constant dense<0.000000e+00> : vector<16x80xf32>
    %301 = tpu.matmul %299, %300, %cst_129 {dimension_numbers = #tpu.dot_dimension_numbers<[1], [0], [0], [1], [0, 0, 1, 1], [], []>} : vector<16x20xbf16>, vector<20x80xbf16>, vector<16x80xf32> -> vector<16x80xf32>
    %302 = arith.addf %278, %301 : vector<16x80xf32>
    %c0_130 = arith.constant 0 : index
    %c1_131 = arith.constant 1 : index
    %c0_132 = arith.constant 0 : index
    %c0_133 = arith.constant 0 : index
    %303 = vector.load %arg7[%c0_130, %c1_131, %c0_132, %c0_133] : memref<1x9x1x80xf32, #tpu.memory_space<vmem>>, vector<1x1x1x80xf32>
    %304 = vector.shape_cast %303 : vector<1x1x1x80xf32> to vector<1x80xf32>
    %305 = vector.broadcast %304 : vector<1x80xf32> to vector<16x80xf32>
    %306 = arith.addf %302, %305 : vector<16x80xf32>
    %307 = vector.shape_cast %306 : vector<16x80xf32> to vector<2x8x80xf32>
    %308 = arith.addf %176, %307 : vector<2x8x80xf32>
    %c0_134 = arith.constant 0 : index
    %c5_135 = arith.constant 5 : index
    %c0_136 = arith.constant 0 : index
    %c0_137 = arith.constant 0 : index
    %309 = vector.load %arg7[%c0_134, %c5_135, %c0_136, %c0_137] : memref<1x9x1x80xf32, #tpu.memory_space<vmem>>, vector<1x1x1x80xf32>
    %310 = vector.shape_cast %309 : vector<1x1x1x80xf32> to vector<1x80xf32>
    %c0_138 = arith.constant 0 : index
    %c6 = arith.constant 6 : index
    %c0_139 = arith.constant 0 : index
    %c0_140 = arith.constant 0 : index
    %311 = vector.load %arg7[%c0_138, %c6, %c0_139, %c0_140] : memref<1x9x1x80xf32, #tpu.memory_space<vmem>>, vector<1x1x1x80xf32>
    %312 = vector.shape_cast %311 : vector<1x1x1x80xf32> to vector<1x80xf32>
    %cst_141 = arith.constant dense<0.000000e+00> : vector<2x8xf32>
    %313 = vector.multi_reduction <add>, %308, %cst_141 [2] : vector<2x8x80xf32> to vector<2x8xf32>
    %314 = vector.shape_cast %313 : vector<2x8xf32> to vector<2x8x1xf32>
    %cst_142 = arith.constant 8.000000e+01 : f32
    %315 = vector.broadcast %cst_142 : f32 to vector<2x8x1xf32>
    %316 = arith.divf %314, %315 : vector<2x8x1xf32>
    %317 = vector.broadcast %316 : vector<2x8x1xf32> to vector<2x8x80xf32>
    %318 = arith.subf %308, %317 : vector<2x8x80xf32>
    %319 = arith.mulf %318, %318 : vector<2x8x80xf32>
    %cst_143 = arith.constant dense<0.000000e+00> : vector<2x8xf32>
    %320 = vector.multi_reduction <add>, %319, %cst_143 [2] : vector<2x8x80xf32> to vector<2x8xf32>
    %321 = vector.shape_cast %320 : vector<2x8xf32> to vector<2x8x1xf32>
    %cst_144 = arith.constant 8.000000e+01 : f32
    %322 = vector.broadcast %cst_144 : f32 to vector<2x8x1xf32>
    %323 = arith.divf %321, %322 : vector<2x8x1xf32>
    %324 = vector.broadcast %316 : vector<2x8x1xf32> to vector<2x8x80xf32>
    %325 = arith.subf %308, %324 : vector<2x8x80xf32>
    %cst_145 = arith.constant 9.99999974E-6 : f32
    %326 = vector.broadcast %cst_145 : f32 to vector<2x8x1xf32>
    %327 = arith.addf %323, %326 : vector<2x8x1xf32>
    %328 = math.rsqrt %327 : vector<2x8x1xf32>
    %329 = vector.broadcast %328 : vector<2x8x1xf32> to vector<2x8x80xf32>
    %330 = arith.mulf %325, %329 : vector<2x8x80xf32>
    %331 = vector.shape_cast %310 : vector<1x80xf32> to vector<1x1x80xf32>
    %332 = vector.broadcast %331 : vector<1x1x80xf32> to vector<2x8x80xf32>
    %333 = arith.mulf %330, %332 : vector<2x8x80xf32>
    %334 = vector.shape_cast %312 : vector<1x80xf32> to vector<1x1x80xf32>
    %335 = vector.broadcast %334 : vector<1x1x80xf32> to vector<2x8x80xf32>
    %336 = arith.addf %333, %335 : vector<2x8x80xf32>
    %337 = vector.shape_cast %336 : vector<2x8x80xf32> to vector<16x80xf32>
    %c0_146 = arith.constant 0 : index
    %c0_147 = arith.constant 0 : index
    %c0_148 = arith.constant 0 : index
    %338 = vector.load %arg8[%c0_146, %c0_147, %c0_148] : memref<1x80x1024xbf16, #tpu.memory_space<vmem>>, vector<1x80x1024xbf16>
    %339 = vector.shape_cast %338 : vector<1x80x1024xbf16> to vector<80x1024xbf16>
    %c0_149 = arith.constant 0 : index
    %c0_150 = arith.constant 0 : index
    %c0_151 = arith.constant 0 : index
    %340 = vector.load %arg9[%c0_149, %c0_150, %c0_151] : memref<1x1x1024xf32, #tpu.memory_space<vmem>>, vector<1x1x1024xf32>
    %341 = vector.shape_cast %340 : vector<1x1x1024xf32> to vector<1x1024xf32>
    %342 = arith.truncf %337 : vector<16x80xf32> to vector<16x80xbf16>
    %cst_152 = arith.constant dense<0.000000e+00> : vector<16x1024xf32>
    %343 = tpu.matmul %342, %339, %cst_152 {dimension_numbers = #tpu.dot_dimension_numbers<[1], [0], [0], [1], [0, 0, 1, 1], [], []>} : vector<16x80xbf16>, vector<80x1024xbf16>, vector<16x1024xf32> -> vector<16x1024xf32>
    %344 = vector.broadcast %341 : vector<1x1024xf32> to vector<16x1024xf32>
    %345 = arith.addf %343, %344 : vector<16x1024xf32>
    %cst_153 = arith.constant 0.000000e+00 : f32
    %346 = vector.broadcast %cst_153 : f32 to vector<16x1024xf32>
    %347 = arith.maximumf %345, %346 : vector<16x1024xf32>
    %c0_154 = arith.constant 0 : index
    %c0_155 = arith.constant 0 : index
    %c0_156 = arith.constant 0 : index
    %348 = vector.load %arg10[%c0_154, %c0_155, %c0_156] : memref<1x1024x80xbf16, #tpu.memory_space<vmem>>, vector<1x1024x80xbf16>
    %349 = vector.shape_cast %348 : vector<1x1024x80xbf16> to vector<1024x80xbf16>
    %c0_157 = arith.constant 0 : index
    %c2_158 = arith.constant 2 : index
    %c0_159 = arith.constant 0 : index
    %c0_160 = arith.constant 0 : index
    %350 = vector.load %arg7[%c0_157, %c2_158, %c0_159, %c0_160] : memref<1x9x1x80xf32, #tpu.memory_space<vmem>>, vector<1x1x1x80xf32>
    %351 = vector.shape_cast %350 : vector<1x1x1x80xf32> to vector<1x80xf32>
    %352 = arith.truncf %347 : vector<16x1024xf32> to vector<16x1024xbf16>
    %cst_161 = arith.constant dense<0.000000e+00> : vector<16x80xf32>
    %353 = tpu.matmul %352, %349, %cst_161 {dimension_numbers = #tpu.dot_dimension_numbers<[1], [0], [0], [1], [0, 0, 1, 1], [], []>} : vector<16x1024xbf16>, vector<1024x80xbf16>, vector<16x80xf32> -> vector<16x80xf32>
    %354 = vector.broadcast %351 : vector<1x80xf32> to vector<16x80xf32>
    %355 = arith.addf %353, %354 : vector<16x80xf32>
    %356 = vector.shape_cast %355 : vector<16x80xf32> to vector<2x8x80xf32>
    %357 = arith.addf %336, %356 : vector<2x8x80xf32>
    %c0_162 = arith.constant 0 : index
    %c7 = arith.constant 7 : index
    %c0_163 = arith.constant 0 : index
    %c0_164 = arith.constant 0 : index
    %358 = vector.load %arg7[%c0_162, %c7, %c0_163, %c0_164] : memref<1x9x1x80xf32, #tpu.memory_space<vmem>>, vector<1x1x1x80xf32>
    %359 = vector.shape_cast %358 : vector<1x1x1x80xf32> to vector<1x80xf32>
    %c0_165 = arith.constant 0 : index
    %c8 = arith.constant 8 : index
    %c0_166 = arith.constant 0 : index
    %c0_167 = arith.constant 0 : index
    %360 = vector.load %arg7[%c0_165, %c8, %c0_166, %c0_167] : memref<1x9x1x80xf32, #tpu.memory_space<vmem>>, vector<1x1x1x80xf32>
    %361 = vector.shape_cast %360 : vector<1x1x1x80xf32> to vector<1x80xf32>
    %cst_168 = arith.constant dense<0.000000e+00> : vector<2x8xf32>
    %362 = vector.multi_reduction <add>, %357, %cst_168 [2] : vector<2x8x80xf32> to vector<2x8xf32>
    %363 = vector.shape_cast %362 : vector<2x8xf32> to vector<2x8x1xf32>
    %cst_169 = arith.constant 8.000000e+01 : f32
    %364 = vector.broadcast %cst_169 : f32 to vector<2x8x1xf32>
    %365 = arith.divf %363, %364 : vector<2x8x1xf32>
    %366 = vector.broadcast %365 : vector<2x8x1xf32> to vector<2x8x80xf32>
    %367 = arith.subf %357, %366 : vector<2x8x80xf32>
    %368 = arith.mulf %367, %367 : vector<2x8x80xf32>
    %cst_170 = arith.constant dense<0.000000e+00> : vector<2x8xf32>
    %369 = vector.multi_reduction <add>, %368, %cst_170 [2] : vector<2x8x80xf32> to vector<2x8xf32>
    %370 = vector.shape_cast %369 : vector<2x8xf32> to vector<2x8x1xf32>
    %cst_171 = arith.constant 8.000000e+01 : f32
    %371 = vector.broadcast %cst_171 : f32 to vector<2x8x1xf32>
    %372 = arith.divf %370, %371 : vector<2x8x1xf32>
    %373 = vector.broadcast %365 : vector<2x8x1xf32> to vector<2x8x80xf32>
    %374 = arith.subf %357, %373 : vector<2x8x80xf32>
    %cst_172 = arith.constant 9.99999974E-6 : f32
    %375 = vector.broadcast %cst_172 : f32 to vector<2x8x1xf32>
    %376 = arith.addf %372, %375 : vector<2x8x1xf32>
    %377 = math.rsqrt %376 : vector<2x8x1xf32>
    %378 = vector.broadcast %377 : vector<2x8x1xf32> to vector<2x8x80xf32>
    %379 = arith.mulf %374, %378 : vector<2x8x80xf32>
    %380 = vector.shape_cast %359 : vector<1x80xf32> to vector<1x1x80xf32>
    %381 = vector.broadcast %380 : vector<1x1x80xf32> to vector<2x8x80xf32>
    %382 = arith.mulf %379, %381 : vector<2x8x80xf32>
    %383 = vector.shape_cast %361 : vector<1x80xf32> to vector<1x1x80xf32>
    %384 = vector.broadcast %383 : vector<1x1x80xf32> to vector<2x8x80xf32>
    %385 = arith.addf %382, %384 : vector<2x8x80xf32>
    %386 = vector.broadcast %16 : vector<1x8x1xf32> to vector<2x8x80xf32>
    %387 = arith.mulf %385, %386 : vector<2x8x80xf32>
    %cst_173 = arith.constant dense<0.000000e+00> : vector<2x80xf32>
    %388 = vector.multi_reduction <add>, %387, %cst_173 [1] : vector<2x8x80xf32> to vector<2x80xf32>
    %c0_i32 = arith.constant 0 : i32
    %389 = arith.cmpi eq, %arg0, %c0_i32 : i32
    %390 = arith.extui %389 : i1 to i32
    %c0_i32_174 = arith.constant 0 : i32
    %391 = arith.cmpi ne, %390, %c0_i32_174 : i32
    scf.if %391 {
      %cst_180 = arith.constant 0.000000e+00 : f32
      %398 = vector.broadcast %cst_180 : f32 to vector<2x80xf32>
      %c0_181 = arith.constant 0 : index
      %c0_182 = arith.constant 0 : index
      %399 = vector.load %arg11[%c0_181, %c0_182] : memref<2x80xf32, #tpu.memory_space<vmem>>, vector<2x80xf32>
      tpu.vector_store %arg11[%c0_181, %c0_182], %398 {strides = array<i32>} : memref<2x80xf32, #tpu.memory_space<vmem>>, vector<2x80xf32>,
    } else {
    }
    %c0_175 = arith.constant 0 : index
    %c0_176 = arith.constant 0 : index
    %392 = vector.load %arg11[%c0_175, %c0_176] : memref<2x80xf32, #tpu.memory_space<vmem>>, vector<2x80xf32>
    %393 = arith.addf %392, %388 : vector<2x80xf32>
    %c0_177 = arith.constant 0 : index
    %c0_178 = arith.constant 0 : index
    %394 = vector.load %arg11[%c0_177, %c0_178] : memref<2x80xf32, #tpu.memory_space<vmem>>, vector<2x80xf32>
    tpu.vector_store %arg11[%c0_177, %c0_178], %393 {strides = array<i32>} : memref<2x80xf32, #tpu.memory_space<vmem>>, vector<2x80xf32>,
    %c2_i32 = arith.constant 2 : i32
    %395 = arith.cmpi eq, %arg0, %c2_i32 : i32
    %396 = arith.extui %395 : i1 to i32
    %c0_i32_179 = arith.constant 0 : i32
    %397 = arith.cmpi ne, %396, %c0_i32_179 : i32
    scf.if %397 {
      %c0_180 = arith.constant 0 : index
      %c0_181 = arith.constant 0 : index
      %398 = vector.load %arg11[%c0_180, %c0_181] : memref<2x80xf32, #tpu.memory_space<vmem>>, vector<2x80xf32>
      %cst_182 = arith.constant 0.0714285746 : f32
      %399 = vector.broadcast %cst_182 : f32 to vector<2x80xf32>
      %400 = arith.mulf %398, %399 : vector<2x80xf32>
      %c0_183 = arith.constant 0 : index
      %c0_184 = arith.constant 0 : index
      %401 = vector.load %arg11[%c0_183, %c0_184] : memref<2x80xf32, #tpu.memory_space<vmem>>, vector<2x80xf32>
      tpu.vector_store %arg11[%c0_183, %c0_184], %400 {strides = array<i32>} : memref<2x80xf32, #tpu.memory_space<vmem>>, vector<2x80xf32>,
    } else {
    }
    return
  }
  func.func @transform_0(%arg0: i32, %arg1: memref<3xi32, #tpu.memory_space<smem>>) -> (i32, i32, i32, i32) {
    %c0_i32 = arith.constant 0 : i32
    %c0_i32_0 = arith.constant 0 : i32
    %c0_i32_1 = arith.constant 0 : i32
    %c0_i32_2 = arith.constant 0 : i32
    return %arg0, %c0_i32, %c0_i32_0, %c0_i32_1 : i32, i32, i32, i32
  }
  func.func @transform_1(%arg0: i32, %arg1: memref<3xi32, #tpu.memory_space<smem>>) -> (i32, i32, i32, i32) {
    %c0_i32 = arith.constant 0 : i32
    %c0_i32_0 = arith.constant 0 : i32
    %c0_i32_1 = arith.constant 0 : i32
    %c0_i32_2 = arith.constant 0 : i32
    return %arg0, %c0_i32, %c0_i32_0, %c0_i32_1 : i32, i32, i32, i32
  }
  func.func @transform_2(%arg0: i32, %arg1: memref<3xi32, #tpu.memory_space<smem>>) -> (i32, i32, i32, i32) {
    %c0_i32 = arith.constant 0 : i32
    %c0_i32_0 = arith.constant 0 : i32
    %c0_i32_1 = arith.constant 0 : i32
    %c0_i32_2 = arith.constant 0 : i32
    return %arg0, %c0_i32, %c0_i32_0, %c0_i32_1 : i32, i32, i32, i32
  }
  func.func @transform_3(%arg0: i32, %arg1: memref<3xi32, #tpu.memory_space<smem>>) -> (i32, i32, i32, i32) {
    %c0_i32 = arith.constant 0 : i32
    %c0_i32_0 = arith.constant 0 : i32
    %c0_i32_1 = arith.constant 0 : i32
    %c0_i32_2 = arith.constant 0 : i32
    return %arg0, %c0_i32, %c0_i32_0, %c0_i32_1 : i32, i32, i32, i32
  }
  func.func @transform_4(%arg0: i32, %arg1: memref<3xi32, #tpu.memory_space<smem>>) -> (i32, i32, i32, i32) {
    %c0_i32 = arith.constant 0 : i32
    %c0_i32_0 = arith.constant 0 : i32
    %c0_i32_1 = arith.constant 0 : i32
    %c0_i32_2 = arith.constant 0 : i32
    return %arg0, %c0_i32, %c0_i32_0, %c0_i32_1 : i32, i32, i32, i32
  }
  func.func @transform_5(%arg0: i32, %arg1: memref<3xi32, #tpu.memory_space<smem>>) -> (i32, i32, i32, i32) {
    %c0_i32 = arith.constant 0 : i32
    %c0_i32_0 = arith.constant 0 : i32
    %c0_i32_1 = arith.constant 0 : i32
    %c0_i32_2 = arith.constant 0 : i32
    return %arg0, %c0_i32, %c0_i32_0, %c0_i32_1 : i32, i32, i32, i32
  }
  func.func @transform_6(%arg0: i32, %arg1: memref<3xi32, #tpu.memory_space<smem>>) -> (i32, i32, i32) {
    %c0_i32 = arith.constant 0 : i32
    %c0_i32_0 = arith.constant 0 : i32
    %c0_i32_1 = arith.constant 0 : i32
    return %arg0, %c0_i32, %c0_i32_0 : i32, i32, i32
  }
  func.func @transform_7(%arg0: i32, %arg1: memref<3xi32, #tpu.memory_space<smem>>) -> (i32, i32, i32) {
    %c0_i32 = arith.constant 0 : i32
    %c0_i32_0 = arith.constant 0 : i32
    %c0_i32_1 = arith.constant 0 : i32
    return %arg0, %c0_i32, %c0_i32_0 : i32, i32, i32
  }
  func.func @transform_8(%arg0: i32, %arg1: memref<3xi32, #tpu.memory_space<smem>>) -> (i32, i32, i32) {
    %c0_i32 = arith.constant 0 : i32
    %c0_i32_0 = arith.constant 0 : i32
    %c0_i32_1 = arith.constant 0 : i32
    return %arg0, %c0_i32, %c0_i32_0 : i32, i32, i32
  }
  func.func @transform_9(%arg0: i32, %arg1: memref<3xi32, #tpu.memory_space<smem>>) -> (i32, i32) {
    %c0_i32 = arith.constant 0 : i32
    %c0_i32_0 = arith.constant 0 : i32
    %c0_i32_1 = arith.constant 0 : i32
    return %c0_i32, %c0_i32_0 : i32, i32
  }
}

</mosaic_0001>

<bundles_post_ra>
// kernel: transformer_mapper_split.1
= control target key start
LH: loop header
LB: loop body
LE: loop exit
PB: predicated region body
PF: predicated region fallthrough
CT: control target
= control target key end

     0   :  { %s4660_s16 = smov [#allocation3]   ;;  %s5381_s0 = inlined_call_operand.vmem [shape: s32[3], index: 0, kind: input, shape index: {}]   ;;  %s5382_s1 = inlined_call_operand.vmem [shape: f32[3,2,8,80], index: 1, kind: input, shape index: {}]   ;;  %s5383_s2 = inlined_call_operand.vmem [shape: f32[3,2,8,80], index: 2, kind: input, shape index: {}]   ;;  %s5384_s3 = inlined_call_operand.vmem [shape: bf16[3,6,80,80], index: 3, kind: input, shape index: {}]   ;;  %s5385_s4 = inlined_call_operand.vmem [shape: f32[3,6,1,80], index: 4, kind: input, shape index: {}]   ;;  %s5386_s5 = inlined_call_operand.vmem [shape: bf16[3,2,80,80], index: 5, kind: input, shape index: {}]   ;;  %s5387_s6 = inlined_call_operand.vmem [shape: f32[3,9,1,80], index: 6, kind: input, shape index: {}]   ;;  %s5388_s7 = inlined_call_operand.vmem [shape: bf16[3,80,1024], index: 7, kind: input, shape index: {}]   ;;  %s5389_s8 = inlined_call_operand.vmem [shape: f32[3,1,1024], index: 8, kind: input, shape index: {}]   ;;  %s5390_s9 = inlined_call_operand.vmem [shape: bf16[3,1024,80], index: 9, kind: input, shape index: {}]   ;;  %s5391_s10 = inlined_call_operand.hbm [shape: f32[2,80], index: 10, kind: output, shape index: {}]  }
   0x1   :  { %s16_s15 = sshll.u32 %s5381_s0, 4  ;;  %s17_s15 = int_to_ptr.vmem [resolvable:$true] %s16_s15 }
   0x2   :  { %19 = dma.vmem_to_smem %s17_s15, 16, %s4660_s16, [#allocation2] }
   0x3   :  { %4650 = dma.done.wait [#allocation2], 16 }
   0x4   :  { %4651 = vsyncadd [#allocation2], 4294967280 }
   0x5   :  { %22 = sfence }
   0x6   :  { %23 = vsyncpa [#allocation5], 0  ;;  %s4727_s17 = smov 0  }
   0x7 LB: > { %s4733_s18 = sadd.s32 4294967295, %s4658_s17   ;;  %p3611_p0 = scmp.ge.s32.totalorder %s4658_s17, 1  ;;  %s4658_s17 = sphi %s4727_s17, %s29_s17  }
   0x8   : > { %p369_p1 = scmp.lt.s32.totalorder %s4658_s17, 4 }
   0xa   : > { %p370_p2 = pnand %p3611_p0, %p369_p1 }
   0xb   : > { %p437_p3 = scmp.lt.s32.totalorder (!%p370_p2), %s4733_s18, 2  ;;  %s4661_s11 = smov (!%p370_p2), 108  }
   0xc   : > { %373 = sbr.rel (%p370_p2) target bundleno = 4670 (0x123e), region = 56  ;;  %s4662_s12 = smov (!%p370_p2), 88  }
   0xd   : > { %s4823_s13 = sld [smem:[#allocation3 + %s4733_s18]] (!%p370_p2)  ;;  %s4664_s14 = smov (!%p370_p2), 68  }
   0xe   : > { %p4318_p4 = scmp.ne.s32.totalorder (!%p370_p2), %s4733_s18, 0 }
  0x11   : > { %s4739_s0 = scalar_select %p437_p3, %s4733_s18, 2  ;;  %vm540_vm0 = vcmask 654336   ;;  %vm688_vm1 = vcmask 162816   ;;  %v485_v37 = vlaneseq  ;;  %v4663_v42 = vmov -1e+30  }
  0x12   : > { %vm745_vm3 = vcmask 64512   ;;  %vm968_vm4 = vcmask 1041408   ;;  %vm960_vm5 = vcmask 1045504  }
  0x13   : > { %s4485_s19 = smul.u32 240, %s4739_s0  ;;  %s4324_s27 = sshll.u32 %s4739_s0, 4  ;;  %v486_v38 = vand.u32 127, %v485_v37  ;;  %v487_v39 = vstv %s4823_s13 }
  0x14   : > { %s4486_s23 = smul.u32 6, %s4739_s0  ;;  %s441_s30 = scalar_lea.vmem %s5382_s1, %s4324_s27 }
  0x15   : > { %s4745_s22 = scalar_lea.vmem %s5384_s3, %s4485_s19  ;;  %v4773_v14 = vld [vmem:[%s441_s30] sm:$0xff]  ;;  %v4775_v15 = vld [vmem:[%s441_s30 + $0x8] sm:$0xff]  ;;  %vm488_vm2 = vcmp.lt.s32.totalorder %v486_v38, %v487_v39  ;;  %s4487_s15 = smul.u32 80, %s4739_s0 }
  0x16   : > { %v4331_v0 = vld [vmem:[%s4745_s22 + $0x20] sm:$0xff]  ;;  %v4336_v1 = vld [vmem:[%s4745_s22 + $0x48] sm:$0xff]  ;;  %v4330_v2 = vld [vmem:[%s4745_s22 + $0x18] sm:$0xff]  ;;  %s4757_s26 = scalar_lea.vmem %s5385_s4, %s4486_s23  ;;  %v506_v17 = vpack.c.bf16 %v4775_v15, %v4773_v14  ;;  %v4831_v43 = vsel %vm488_vm2, 0.0, %v4663_v42  ;;  %s4488_s21 = smul.u32 9, %s4739_s0 }
  0x17   : > { %547 = vmatpush.bf16.msra.mxu0 %v4331_v0  ;;  %607 = vmatpush.bf16.msra.mxu1 %v4336_v1  ;;  %v4335_v3 = vld [vmem:[%s4745_s22 + $0x40] sm:$0xff]  ;;  %v4341_v4 = vld [vmem:[%s4745_s22 + $0x70] sm:$0xff]  ;;  %v4340_v5 = vld [vmem:[%s4745_s22 + $0x68] sm:$0xff]  ;;  %s4865_s20 = scalar_lea.vmem %s5386_s5, %s4487_s15  ;;  %s446_s30 = scalar_lea.vmem %s5383_s2, %s4324_s27 }
  0x18   : > { %667 = vmatpush.bf16.msra.mxu2 %v4341_v4  ;;  %v4329_v6 = vld [vmem:[%s4745_s22 + $0x10] sm:$0xff]  ;;  %v4334_v7 = vld [vmem:[%s4745_s22 + $0x38] sm:$0xff]  ;;  %v4339_v8 = vld [vmem:[%s4745_s22 + $0x60] sm:$0xff]  ;;  %s4933_s25 = scalar_lea.vmem %s5387_s6, %s4488_s21  ;;  %s3619_s19 = sshll.u32 %s4739_s0, 3 }
  0x19   : > { %v4328_v9 = vld [vmem:[%s4745_s22 + $0x8] sm:$0xff]  ;;  %v4333_v10 = vld [vmem:[%s4745_s22 + $0x30] sm:$0xff]  ;;  %v4338_v11 = vld [vmem:[%s4745_s22 + $0x58] sm:$0xff]  ;;  %s473_s23 = scalar_lea.vmem %s5389_s8, %s3619_s19 }
  0x1a   : > { %v4327_v12 = vld [vmem:[%s4745_s22] sm:$0xff]  ;;  %v4332_v13 = vld [vmem:[%s4745_s22 + $0x28] sm:$0xff]  ;;  %v4337_v16 = vld [vmem:[%s4745_s22 + $0x50] sm:$0xff] }
  0x1b   : > { %548 = vmatpush.bf16.msra.mxu0 %v4330_v2  ;;  %608 = vmatpush.bf16.msra.mxu1 %v4335_v3  ;;  %v4514_v18 = vld [vmem:[%s4757_s26 + $0x1] ss:$0 sm:$0xff]  ;;  %v4513_v19 = vld [vmem:[%s4757_s26] ss:$0 sm:$0xff]  ;;  %v4515_v24 = vld [vmem:[%s4757_s26 + $0x2] ss:$0 sm:$0xff] }
  0x1c   : > { %668 = vmatpush.bf16.msra.mxu2 %v4340_v5 }
  0x1f   : > { %549 = vmatpush.bf16.msra.mxu0 %v4329_v6  ;;  %609 = vmatpush.bf16.msra.mxu1 %v4334_v7 }
  0x20   : > { %669 = vmatpush.bf16.msra.mxu2 %v4339_v8 }
  0x23   : > { %550 = vmatpush.bf16.msra.mxu0 %v4328_v9  ;;  %610 = vmatpush.bf16.msra.mxu1 %v4333_v10 }
  0x24   : > { %670 = vmatpush.bf16.msra.mxu2 %v4338_v11 }
  0x27   : > { %551 = vmatpush.bf16.msra.mxu0 %v4327_v12  ;;  %611 = vmatpush.bf16.msra.mxu1 %v4332_v13 }
  0x28   : > { %671 = vmatpush.bf16.msra.mxu2 %v4337_v16 }
  0x2a   : > { %3643 = vmatmul.msk.bf16.vlgmr.msra.gmra.mxu0 %vm540_vm0, %v506_v17  ;;  %3675 = vmatmul.msk.bf16.vlgmr.msra.gmra.mxu1 %vm540_vm0, %v506_v17 }
  0x2b   : > { %3707 = vmatmul.msk.bf16.vlgmr.msra.gmra.mxu2 %vm540_vm0, %v506_v17 }
  0xa7   : > { %v553_v20 = vpop.f32.mrf.mxu0  ;;  %v613_v21 = vpop.f32.mrf.mxu1 }
  0xa8   : > { %v4785_v22 = vadd.f32 %v4514_v18, %v613_v21  ;;  %v4787_v23 = vadd.f32 %v4513_v19, %v553_v20 }
  0xaa   : > { %817 = vrot.lane.b32.xlu0 %v4785_v22, %s4661_s11  ;;  %3708 = vmatpush.xpose.msk.msra.mxu3 %vm688_vm1, %v4785_v22 }
  0xad   : > { %3709 = vmatmul.msk.f32.vlgmr.msra.gmra.mxu3 %vm688_vm1, %v4787_v23 }
  0xae   : > { %v673_v28 = vpop.f32.mrf.mxu2 }
  0xaf   : > { %v615_v25 = vpop.f32.mrf.mxu1  ;;  %v555_v26 = vpop.f32.mrf.mxu0  ;;  %v4798_v29 = vadd.f32 %v4515_v24, %v673_v28  ;;  %v4342_v28 = vld [vmem:[%s4865_s20] sm:$0xff] }
  0xb0   : > { %v4796_v27 = vadd.f32 %v4514_v18, %v615_v25  ;;  %v4804_v30 = vadd.f32 %v4513_v19, %v555_v26 }
  0xb2   : > { %845 = vrot.lane.b32.xlu2 %v4796_v27, %s4661_s11  ;;  %3710 = vmatpush.xpose.msk.msrb.mxu3 %vm688_vm1, %v4796_v27 }
  0xb3   : > { %815 = vrot.lane.b32.xlu0 %v4787_v23, %s4661_s11 }
  0xb5   : > { %3711 = vmatmul.msk.f32.vlgmr.msrb.gmra.mxu3 %vm688_vm1, %v4804_v30 }
  0xb6   : > { %786 = vmatpush.msra.mxu3 %v4798_v29  ;;  %v675_v34 = vpop.f32.mrf.mxu2 }
  0xb7   : > { %v4819_v35 = vadd.f32 %v4515_v24, %v675_v34 }
  0xb9   : > { %809 = vmatpush.msrb.mxu3 %v4819_v35 }
  0xba   : > { %898 = vrot.lane.b32.xlu2 %v4798_v29, %s4661_s11 }
  0xbb   : > { %843 = vrot.lane.b32.xlu0 %v4804_v30, %s4661_s11 }
  0xc2   : > { %1013 = vrot.lane.b32.xlu2 %v4787_v23, %s4662_s12 }
 0x10c   : > { %v846_v31 = vpop.permute.xlu2 %845 }
 0x10d   : > { %3716 = vmatpush.xpose.msk.msrb.mxu1 %vm688_vm1, %v846_v31 }
 0x114   : > { %v899_v33 = vpop.permute.xlu2 %898 }
 0x11c   : > { %v818_v32 = vpop.permute.xlu0 %817  ;;  %v1014_v51 = vpop.permute.xlu2 %1013 }
 0x11d   : > { %3714 = vmatpush.xpose.msk.msrb.mxu2 %vm688_vm1, %v818_v32 }
 0x121   : > { %919 = vmatpush.msra.mxu2 %v899_v33 }
 0x125   : > { %v816_v36 = vpop.permute.xlu0 %815 }
 0x126   : > { %3715 = vmatmul.msk.f32.vlgmr.msrb.gmra.mxu2 %vm688_vm1, %v816_v36 }
 0x12d   : > { %v844_v40 = vpop.permute.xlu0 %843 }
 0x12e   : > { %3717 = vmatmul.msk.f32.vlgmr.msrb.gmra.mxu1 %vm688_vm1, %v844_v40 }
 0x130   : > { %v712_v41 = vpop.f32.mrf.mxu3 }
 0x131   : > { %v741_v44 = vmul.f32 0.2236068, %v712_v41 }
 0x133   : > { %v743_v45 = vadd.f32 %v741_v44, %v4831_v43 }
 0x135   : > { %v746_v46 = vsel %vm745_vm3, %v743_v45, -inf }
 0x136   : > { %747 = vmax.xlane.f32.xlu0 %v746_v46 }
 0x138   : > { %v738_v47 = vpop.f32.mrf.mxu3 }
 0x139   : > { %v742_v48 = vmul.f32 0.2236068, %v738_v47 }
 0x13b   : > { %v744_v49 = vadd.f32 %v742_v48, %v4831_v43 }
 0x13d   : > { %v749_v50 = vsel %vm745_vm3, %v744_v49, -inf }
 0x13e   : > { %750 = vmax.xlane.f32.xlu2 %v749_v50 }
 0x1a9   : > { %v840_v52 = vpop.f32.mrf.mxu2  ;;  %v748_v1 = vpop.xlane.xlu0 %747 }
 0x1aa   : > { %v871_v53 = vmul.f32 0.2236068, %v840_v52  ;;  %v752_v12 = vsub.f32 %v743_v45, %v748_v1 }
 0x1ab   : > { %v868_v54 = vpop.f32.mrf.mxu1 }
 0x1ac   : > { %v872_v55 = vmul.f32 0.2236068, %v868_v54  ;;  %v873_v56 = vadd.f32 %v871_v53, %v4831_v43  ;;  %v754_v13 = vmul.f32 1.442695, %v752_v12 }
 0x1ae   : > { %v875_v57 = vsel %vm745_vm3, %v873_v56, -inf  ;;  %v874_v58 = vadd.f32 %v872_v55, %v4831_v43 }
 0x1af   : > { %876 = vmax.xlane.f32.xlu1 %v875_v57 }
 0x1b0   : > { %v878_v59 = vsel %vm745_vm3, %v874_v58, -inf }
 0x1b1   : > { %879 = vmax.xlane.f32.xlu0 %v878_v59  ;;  %v751_v60 = vpop.xlane.xlu2 %750 }
 0x1b2   : > { %v753_v61 = vsub.f32 %v744_v49, %v751_v60 }
 0x1b4   : > { %v756_v62 = vmul.f32 1.442695, %v753_v61  ;;  %v682_v61 = vld [vmem:[%s4865_s20 + $0x10] sm:$0xf] }
 0x1b6   : > { %4528 = vpow2.f32 %v756_v62  ;;  %v957_v62 = vunpack.c.l.b16 %v682_v61 }
 0x1bc   : > { %v4529_v63 = vpop.eup %4528 }
 0x1bd   : > { %v761_v0 = vsel %vm745_vm3, %v4529_v63, 0.0 }
 0x1be   : > { %762 = vadd.xlane.f32.xlu2 %v761_v0 }
 0x222   : > { %v877_v2 = vpop.xlane.xlu1 %876 }
 0x223   : > { %v881_v3 = vsub.f32 %v873_v56, %v877_v2 }
 0x224   : > { %v880_v4 = vpop.xlane.xlu0 %879 }
 0x225   : > { %v883_v5 = vmul.f32 1.442695, %v881_v3  ;;  %v882_v6 = vsub.f32 %v874_v58, %v880_v4 }
 0x227   : > { %4530 = vpow2.f32 %v883_v5  ;;  %v885_v7 = vmul.f32 1.442695, %v882_v6 }
 0x229   : > { %4532 = vpow2.f32 %v885_v7 }
 0x22a   : > { %4534 = vpow2.f32 %v754_v13 }
 0x22d   : > { %v4531_v8 = vpop.eup %4530 }
 0x22e   : > { %v887_v9 = vsel %vm745_vm3, %v4531_v8, 0.0 }
 0x22f   : > { %v4843_v10 = vpop.eup %4532  ;;  %888 = vadd.xlane.f32.xlu1 %v887_v9 }
 0x230   : > { %v890_v11 = vsel %vm745_vm3, %v4843_v10, 0.0  ;;  %v4535_v16 = vpop.eup %4534 }
 0x231   : > { %891 = vadd.xlane.f32.xlu0 %v890_v11  ;;  %v758_v17 = vsel %vm745_vm3, %v4535_v16, 0.0  ;;  %v763_v31 = vpop.xlane.xlu2 %762 }
 0x245   : > { %1041 = vrot.lane.b32.xlu0 %v4804_v30, %s4662_s12 }
 0x248   : > { %1015 = vrot.lane.b32.xlu1 %v4785_v22, %s4662_s12 }
 0x272   : > { %759 = vadd.xlane.f32.xlu1 %v758_v17 }
 0x28b   : > { %1043 = vrot.lane.b32.xlu1 %v4796_v27, %s4662_s12 }
 0x293   : > { %1181 = vrot.lane.b32.xlu1 %v4785_v22, %s4664_s14  ;;  %v4868_v22 = vld [vmem:[%s4865_s20 + $0x8] sm:$0xff]  }
 0x294   : > { %v4467_v24 = vunpack.c.l.b16 %v4868_v22  ;;  %v961_v2 = vrot.slane %v4868_v22, 2 }
 0x296   : > { %v991_v25 = vpack.c.b16 %v4467_v24, %v4467_v24 }
 0x298   : > { %v997_v26 = vsel %vm968_vm4, %v991_v25, 0 }
 0x299   : > { %1005 = vmatpush.bf16.msra.mxu1 %v997_v26 }
 0x29b   : > { %1207 = vrot.lane.b32.xlu1 %v4804_v30, %s4664_s14 }
 0x29d   : > { %1006 = vmatpush.bf16.msra.mxu1 %v4342_v28 }
 0x2a2   : > { %v889_v18 = vpop.xlane.xlu1 %888 }
 0x2a3   : > { %4536 = vrcp.f32 %v889_v18 }
 0x2a4   : > { %v892_v50 = vpop.xlane.xlu0 %891 }
 0x2a9   : > { %v4537_v19 = vpop.eup %4536 }
 0x2aa   : > { %v895_v20 = vmul.f32 %v4537_v19, %v4531_v8 }
 0x2ac   : > { %3718 = vmatmul.msk.f32.vlgmr.msra.gmra.mxu2 %vm745_vm3, %v895_v20 }
 0x2b7   : > { %v1042_v59 = vpop.permute.xlu0 %1041 }
 0x2ba   : > { %v1016_v21 = vpop.permute.xlu1 %1015 }
 0x2bb   : > { %3726 = vmatpush.xpose.msk.msrb.mxu2 %vm688_vm1, %v1016_v21 }
 0x2be   : > { %3727 = vmatmul.msk.f32.vlgmr.msrb.gmra.mxu2 %vm688_vm1, %v1014_v51 }
 0x2e5   : > { %v760_v30 = vpop.xlane.xlu1 %759 }
 0x2e6   : > { %4538 = vrcp.f32 %v760_v30 }
 0x2e7   : > { %4540 = vrcp.f32 %v763_v31 }
 0x2e8   : > { %4542 = vrcp.f32 %v892_v50 }
 0x2ec   : > { %v4539_v32 = vpop.eup %4538 }
 0x2ed   : > { %v766_v33 = vmul.f32 %v4539_v32, %v4535_v16  ;;  %v4541_v34 = vpop.eup %4540 }
 0x2ee   : > { %v767_v36 = vmul.f32 %v4541_v34, %v4529_v63  ;;  %v4543_v54 = vpop.eup %4542  ;;  %v959_v63 = vpack.c.b16 %v957_v62, %v957_v62 }
 0x2ef   : > { %3712 = vmatmul.msk.f32.vlgmr.msra.gmra.mxu3 %vm745_vm3, %v766_v33  ;;  %v896_v55 = vmul.f32 %v4543_v54, %v4843_v10 }
 0x2f0   : > { %v962_v0 = vrot.slane %v959_v63, 2 }
 0x2f2   : > { %v970_v1 = vsel %vm968_vm4, %v962_v0, 0  ;;  %v963_v3 = vsel %vm960_vm5, %v961_v2, %v962_v0 }
 0x2f3   : > { %978 = vmatpush.bf16.msrb.mxu0 %v970_v1 }
 0x2f7   : > { %3713 = vmatmul.msk.f32.vlgmr.msrb.gmra.mxu3 %vm745_vm3, %v767_v36  ;;  %979 = vmatpush.bf16.msrb.mxu0 %v963_v3 }
 0x2fd   : > { %v1044_v38 = vpop.permute.xlu1 %1043 }
 0x305   : > { %v1182_v40 = vpop.permute.xlu1 %1181 }
 0x306   : > { %3737 = vmatpush.xpose.msk.msrb.mxu1 %vm688_vm1, %v1182_v40 }
 0x30d   : > { %v1208_v12 = vpop.permute.xlu1 %1207 }
 0x32f   : > { %v921_v41 = vpop.f32.mrf.mxu2 }
 0x341   : > { %v1038_v42 = vpop.f32.mrf.mxu2 }
 0x342   : > { %v1069_v44 = vmul.f32 0.2236068, %v1038_v42 }
 0x344   : > { %v1071_v45 = vadd.f32 %v1069_v44, %v4831_v43 }
 0x346   : > { %v1073_v46 = vsel %vm745_vm3, %v1071_v45, -inf }
 0x347   : > { %1074 = vmax.xlane.f32.xlu2 %v1073_v46 }
 0x35f   : > { %925 = vrot.lane.b32.xlu2 %v4819_v35, %s4661_s11 }
 0x367   : > { %1095 = vrot.lane.b32.xlu2 %v4798_v29, %s4662_s12 }
 0x36f   : > { %1179 = vrot.lane.b32.xlu2 %v4787_v23, %s4664_s14 }
 0x372   : > { %v788_v47 = vpop.f32.mrf.mxu3 }
 0x37a   : > { %v811_v48 = vpop.f32.mrf.mxu3 }
 0x37b   : > { %v814_v49 = vpack.c.bf16 %v811_v48, %v788_v47 }
 0x37d   : > { %3725 = vmatmul.msk.bf16.vlgmr.msra.gmra.mxu1 %vm688_vm1, %v814_v49 }
 0x3ba   : > { %v1075_v51 = vpop.xlane.xlu2 %1074 }
 0x3bb   : > { %v1079_v52 = vsub.f32 %v1071_v45, %v1075_v51 }
 0x3bd   : > { %v1081_v53 = vmul.f32 1.442695, %v1079_v52 }
 0x3bf   : > { %4544 = vpow2.f32 %v1081_v53 }
 0x3c2   : > { %v926_v56 = vpop.permute.xlu2 %925 }
 0x3c3   : > { %946 = vmatpush.msra.mxu3 %v926_v56  ;;  %v685_v56 = vld [vmem:[%s4865_s20 + $0x1c] sm:$0xf] }
 0x3c4   : > { %3719 = vmatmul.msk.f32.vlgmr.msra.gmra.mxu3 %vm745_vm3, %v896_v55 }
 0x3c5   : > { %v4545_v23 = vpop.eup %4544  ;;  %3728 = vmatpush.xpose.msk.msrb.mxu3 %vm688_vm1, %v1044_v38 }
 0x3c6   : > { %v1085_v57 = vsel %vm745_vm3, %v4545_v23, 0.0 }
 0x3c7   : > { %1086 = vadd.xlane.f32.xlu0 %v1085_v57 }
 0x3ca   : > { %v1096_v58 = vpop.permute.xlu2 %1095 }
 0x3cb   : > { %1116 = vmatpush.msra.mxu2 %v1096_v58 }
 0x3cc   : > { %3729 = vmatmul.msk.f32.vlgmr.msrb.gmra.mxu3 %vm688_vm1, %v1042_v59  ;;  %v4343_v59 = vld [vmem:[%s4865_s20 + $0x14] sm:$0xff] }
 0x3d2   : > { %v1180_v60 = vpop.permute.xlu2 %1179 }
 0x3d3   : > { %3738 = vmatmul.msk.f32.vlgmr.msrb.gmra.mxu1 %vm688_vm1, %v1180_v60  ;;  %v4482_v60 = vld [vmem:[%s4865_s20 + $0x20] sm:$0xff]  }
 0x3d4   : > { %v4472_v61 = vunpack.c.h.b16 %v4482_v60 }
 0x3d6   : > { %v1319_v63 = vpack.c.b16 %v4472_v61, %v4472_v61  ;;  %v4348_v61 = vld [vmem:[%s4745_s22 + $0x98] sm:$0xff] }
 0x3d8   : > { %v1321_v0 = vrot.slane %v1319_v63, 2  ;;  %v4346_v63 = vld [vmem:[%s4745_s22 + $0x88] sm:$0xff] }
 0x3da   : > { %v1328_v1 = vsel %vm968_vm4, %v1321_v0, 0 }
 0x3db   : > { %1209 = vrot.lane.b32.xlu0 %v4796_v27, %s4664_s14 }
 0x3fa   : > { %v4897_v5 = vpop.f32.mrf.mxu1 }
 0x402   : > { %v4900_v8 = vpop.f32.mrf.mxu1 }
 0x43a   : > { %v1087_v4 = vpop.xlane.xlu0 %1086 }
 0x43b   : > { %4546 = vrcp.f32 %v1087_v4 }
 0x441   : > { %v4547_v6 = vpop.eup %4546 }
 0x442   : > { %v1093_v7 = vmul.f32 %v4547_v6, %v4545_v23  ;;  %v1153_v23 = vunpack.c.l.b16 %v685_v56  ;;  %v4351_v56 = vld [vmem:[%s4745_s22 + $0xb0] sm:$0xff] }
 0x444   : > { %3730 = vmatmul.msk.f32.vlgmr.msra.gmra.mxu2 %vm745_vm3, %v1093_v7  ;;  %v1155_v57 = vpack.c.b16 %v1153_v23, %v1153_v23  ;;  %v4471_v7 = vunpack.c.l.b16 %v4482_v60 }
 0x446   : > { %v1161_v58 = vsel %vm968_vm4, %v1155_v57, 0  ;;  %v483_v57 = vld [vmem:[%s446_s30] sm:$0xff] }
 0x447   : > { %v948_v27 = vpop.f32.mrf.mxu3  ;;  %1169 = vmatpush.bf16.msra.mxu0 %v1161_v58  ;;  %v484_v58 = vld [vmem:[%s446_s30 + $0x8] sm:$0xff] }
 0x448   : > { %v951_v9 = vpack.c.bf16 %v948_v27, %v921_v41  ;;  %v1318_v27 = vpack.c.b16 %v4471_v7, %v1153_v23  ;;  %v4350_v23 = vld [vmem:[%s4745_s22 + $0xa8] sm:$0xff]  ;;  %v1496_v60 = vpack.c.bf16 %v484_v58, %v483_v57 }
 0x44a   : > { %3720 = vmatmul.msk.bf16.vlgmr.msrb.gmra.mxu0 %vm688_vm1, %v951_v9  ;;  %v1320_v9 = vrot.slane %v1318_v27, 2 }
 0x44b   : > { %1170 = vmatpush.bf16.msra.mxu0 %v4343_v59  ;;  %v4349_v59 = vld [vmem:[%s4745_s22 + $0xa0] sm:$0xff] }
 0x44d   : > { %v1210_v10 = vpop.permute.xlu0 %1209 }
 0x44e   : > { %3739 = vmatpush.xpose.msk.msrb.mxu2 %vm688_vm1, %v1210_v10  ;;  %v1322_v10 = vsel %vm960_vm5, %v1320_v9, %v1321_v0  ;;  %v4345_v0 = vld [vmem:[%s4745_s22 + $0x80] sm:$0xff]  ;;  %v4356_v9 = vld [vmem:[%s4745_s22 + $0xd8] sm:$0xff] }
 0x44f   : > { %v1066_v11 = vpop.f32.mrf.mxu3  ;;  %1472 = vmatpush.bf16.msrb.mxu0 %v4348_v61 }
 0x450   : > { %v1070_v13 = vmul.f32 0.2236068, %v1066_v11  ;;  %v1204_v16 = vpop.f32.mrf.mxu1 }
 0x451   : > { %v1235_v17 = vmul.f32 0.2236068, %v1204_v16  ;;  %3740 = vmatmul.msk.f32.vlgmr.msrb.gmra.mxu2 %vm688_vm1, %v1208_v12 }
 0x452   : > { %v1072_v18 = vadd.f32 %v1070_v13, %v4831_v43  ;;  %1336 = vmatpush.bf16.msra.mxu2 %v1328_v1 }
 0x453   : > { %v1237_v19 = vadd.f32 %v1235_v17, %v4831_v43 }
 0x454   : > { %v1076_v20 = vsel %vm745_vm3, %v1072_v18, -inf }
 0x455   : > { %1077 = vmax.xlane.f32.xlu0 %v1076_v20  ;;  %v1239_v21 = vsel %vm745_vm3, %v1237_v19, -inf }
 0x456   : > { %1240 = vmax.xlane.f32.xlu2 %v1239_v21  ;;  %1337 = vmatpush.bf16.msra.mxu2 %v1322_v10  ;;  %v4516_v21 = vld [vmem:[%s4933_s25] ss:$0 sm:$0xff] }
 0x4c7   : > { %v1118_v30 = vpop.f32.mrf.mxu2  ;;  %v981_v16 = vpop.f32.mrf.mxu0 }
 0x4c8   : > { %v1078_v22 = vpop.xlane.xlu0 %1077 }
 0x4c9   : > { %v1080_v24 = vsub.f32 %v1072_v18, %v1078_v22  ;;  %v1241_v25 = vpop.xlane.xlu2 %1240 }
 0x4ca   : > { %v1245_v26 = vsub.f32 %v1237_v19, %v1241_v25  ;;  %v1009_v19 = vadd.f32 %v4897_v5, %v981_v16 }
 0x4cb   : > { %v1083_v28 = vmul.f32 1.442695, %v1080_v24 }
 0x4cc   : > { %v1247_v31 = vmul.f32 1.442695, %v1245_v26 }
 0x4cd   : > { %4548 = vpow2.f32 %v1083_v28 }
 0x4ce   : > { %4550 = vpow2.f32 %v1247_v31 }
 0x4cf   : > { %v983_v17 = vpop.f32.mrf.mxu0 }
 0x4d0   : > { %v1011_v28 = vadd.f32 %v4900_v8, %v983_v17 }
 0x4d3   : > { %v4549_v32 = vpop.eup %4548 }
 0x4d4   : > { %v4551_v33 = vpop.eup %4550  ;;  %v1232_v34 = vpop.f32.mrf.mxu2  ;;  %v1088_v36 = vsel %vm745_vm3, %v4549_v32, 0.0 }
 0x4d5   : > { %v1236_v38 = vmul.f32 0.2236068, %v1232_v34  ;;  %1089 = vadd.xlane.f32.xlu0 %v1088_v36  ;;  %v1251_v40 = vsel %vm745_vm3, %v4551_v33, 0.0 }
 0x4d6   : > { %1252 = vadd.xlane.f32.xlu2 %v1251_v40  ;;  %v4665_v40 = vmov 80.0  }
 0x4d7   : > { %v1238_v41 = vadd.f32 %v1236_v38, %v4831_v43 }
 0x4d9   : > { %v1242_v42 = vsel %vm745_vm3, %v1238_v41, -inf }
 0x4da   : > { %1243 = vmax.xlane.f32.xlu1 %v1242_v42 }
 0x4ee   : > { %1261 = vrot.lane.b32.xlu2 %v4798_v29, %s4664_s14 }
 0x4f3   : > { %1121 = vrot.lane.b32.xlu1 %v4819_v35, %s4662_s12 }
 0x548   : > { %v1090_v48 = vpop.xlane.xlu0 %1089 }
 0x549   : > { %v1253_v50 = vpop.xlane.xlu2 %1252 }
 0x54d   : > { %v1244_v44 = vpop.xlane.xlu1 %1243 }
 0x54e   : > { %v1246_v45 = vsub.f32 %v1238_v41, %v1244_v44  ;;  %v4353_v44 = vld [vmem:[%s4745_s22 + $0xc0] sm:$0xff] }
 0x550   : > { %v1249_v46 = vmul.f32 1.442695, %v1246_v45 }
 0x551   : > { %v1262_v53 = vpop.permute.xlu2 %1261 }
 0x552   : > { %4552 = vpow2.f32 %v1249_v46 }
 0x553   : > { %4554 = vrcp.f32 %v1090_v48 }
 0x554   : > { %4556 = vrcp.f32 %v1253_v50 }
 0x558   : > { %v4553_v47 = vpop.eup %4552 }
 0x559   : > { %v1254_v49 = vsel %vm745_vm3, %v4553_v47, 0.0  ;;  %v4555_v51 = vpop.eup %4554 }
 0x55a   : > { %1255 = vadd.xlane.f32.xlu0 %v1254_v49  ;;  %v1094_v52 = vmul.f32 %v4555_v51, %v4549_v32  ;;  %v4557_v54 = vpop.eup %4556 }
 0x55b   : > { %v1259_v55 = vmul.f32 %v4557_v54, %v4551_v33 }
 0x565   : > { %v1122_v29 = vpop.permute.xlu1 %1121 }
 0x566   : > { %1142 = vmatpush.msra.mxu3 %v1122_v29 }
 0x567   : > { %3731 = vmatmul.msk.f32.vlgmr.msra.gmra.mxu3 %vm745_vm3, %v1094_v52 }
 0x568   : > { %1282 = vmatpush.msrb.mxu3 %v1262_v53 }
 0x56a   : > { %1536 = vmatpush.bf16.msra.mxu3 %v4353_v44  ;;  %v4519_v44 = vld [vmem:[%s4757_s26 + $0x4] ss:$0 sm:$0xff] }
 0x56e   : > { %1287 = vrot.lane.b32.xlu0 %v4819_v35, %s4664_s14 }
 0x56f   : > { %3741 = vmatmul.msk.f32.vlgmr.msrb.gmra.mxu3 %vm745_vm3, %v1259_v55  ;;  %v4352_v55 = vld [vmem:[%s4745_s22 + $0xb8] sm:$0xff] }
 0x570   : > { %1537 = vmatpush.bf16.msra.mxu3 %v4352_v55 }
 0x574   : > { %1538 = vmatpush.bf16.msra.mxu3 %v4351_v56 }
 0x578   : > { %1539 = vmatpush.bf16.msra.mxu3 %v4350_v23 }
 0x57c   : > { %1540 = vmatpush.bf16.msra.mxu3 %v4349_v59 }
 0x57f   : > { %3809 = vmatmul.msk.bf16.vlgmr.msra.gmra.mxu3 %vm540_vm0, %v1496_v60 }
 0x5cd   : > { %v1256_v62 = vpop.xlane.xlu0 %1255 }
 0x5ce   : > { %4558 = vrcp.f32 %v1256_v62  ;;  %v4347_v62 = vld [vmem:[%s4745_s22 + $0x90] sm:$0xff] }
 0x5cf   : > { %4560 = vrcp.f32 %v4665_v40  ;;  %1473 = vmatpush.bf16.msrb.mxu0 %v4347_v62 }
 0x5d3   : > { %1474 = vmatpush.bf16.msrb.mxu0 %v4346_v63 }
 0x5d4   : > { %v4559_v35 = vpop.eup %4558 }
 0x5d5   : > { %v1260_v2 = vmul.f32 %v4559_v35, %v4553_v47  ;;  %v4561_v41 = vpop.eup %4560 }
 0x5d6   : > { %v1365_v42 = vmul.f32 80.0, %v4561_v41  ;;  %vm1369_vm6 = vweird.f32 %v4561_v41 }
 0x5d7   : > { %1475 = vmatpush.bf16.msrb.mxu0 %v4345_v0 }
 0x5d8   : > { %v1366_v8 = vsub.f32 1.0, %v1365_v42 }
 0x5e0   : > { %v1288_v3 = vpop.permute.xlu0 %1287 }
 0x5e1   : > { %1308 = vmatpush.msra.mxu1 %v1288_v3  ;;  %v4344_v3 = vld [vmem:[%s4745_s22 + $0x78] sm:$0xff] }
 0x5e2   : > { %3742 = vmatmul.msk.f32.vlgmr.msra.gmra.mxu1 %vm745_vm3, %v1260_v2  ;;  %1476 = vmatpush.bf16.msrb.mxu0 %v4344_v3 }
 0x5ea   : > { %v1144_v4 = vpop.f32.mrf.mxu3 }
 0x5eb   : > { %v1147_v6 = vpack.c.bf16 %v1144_v4, %v1118_v30  ;;  %v4358_v4 = vld [vmem:[%s4745_s22 + $0xe8] sm:$0xff] }
 0x5ec   : > { %1596 = vmatpush.bf16.msrb.mxu1 %v4358_v4 }
 0x5ed   : > { %3736 = vmatmul.msk.bf16.vlgmr.msra.gmra.mxu0 %vm688_vm1, %v1147_v6  ;;  %v4357_v6 = vld [vmem:[%s4745_s22 + $0xe0] sm:$0xff] }
 0x5f0   : > { %1597 = vmatpush.bf16.msrb.mxu1 %v4357_v6 }
 0x5f2   : > { %v1284_v11 = vpop.f32.mrf.mxu3 }
 0x5f4   : > { %1598 = vmatpush.bf16.msrb.mxu1 %v4356_v9 }
 0x65f   : > { %v1310_v12 = vpop.f32.mrf.mxu1 }
 0x660   : > { %v1313_v13 = vpack.c.bf16 %v1310_v12, %v1284_v11 }
 0x662   : > { %3743 = vmatmul.msk.bf16.vlgmr.msra.gmra.mxu2 %vm688_vm1, %v1313_v13  ;;  %v4355_v13 = vld [vmem:[%s4745_s22 + $0xd0] sm:$0xff] }
 0x663   : > { %1599 = vmatpush.bf16.msrb.mxu1 %v4355_v13 }
 0x66a   : > { %v1172_v18 = vpop.f32.mrf.mxu0 }
 0x66b   : > { %v1177_v20 = vadd.f32 %v1172_v18, %v1009_v19  ;;  %v4354_v18 = vld [vmem:[%s4745_s22 + $0xc8] sm:$0xff]  ;;  %s4489_s22 = smul.u32 320, %s4739_s0 }
 0x66c   : > { %1600 = vmatpush.bf16.msrb.mxu1 %v4354_v18 }
 0x66f   : > { %3841 = vmatmul.msk.bf16.vlgmr.msrb.gmra.mxu1 %vm540_vm0, %v1496_v60 }
 0x672   : > { %v1174_v26 = vpop.f32.mrf.mxu0 }
 0x673   : > { %v1178_v31 = vadd.f32 %v1174_v26, %v1011_v28 }
 0x6e5   : > { %v1339_v22 = vpop.f32.mrf.mxu2 }
 0x6e6   : > { %v1344_v24 = vadd.f32 %v1339_v22, %v1177_v20 }
 0x6e8   : > { %v1350_v25 = vadd.f32 %v4516_v21, %v1344_v24 }
 0x6ea   : > { %v1352_v30 = vadd.f32 %v1350_v25, %v4773_v14  ;;  %v1367_v14 = vmul.f32 %v4561_v41, %v1366_v8  ;;  %v1542_v8 = vpop.f32.mrf.mxu3 }
 0x6ec   : > { %v1358_v32 = vsel %vm540_vm0, %v1352_v30, 0.0  ;;  %v1368_v45 = vadd.f32 %v4561_v41, %v1367_v14  ;;  %v4994_v14 = vadd.f32 %v4519_v44, %v1542_v8 }
 0x6ed   : > { %1359 = vadd.xlane.f32.xlu1 %v1358_v32  ;;  %v1341_v33 = vpop.f32.mrf.mxu2 }
 0x6ee   : > { %v1345_v34 = vadd.f32 %v1341_v33, %v1178_v31  ;;  %v4945_v46 = vsel %vm1369_vm6, %v4561_v41, %v1368_v45  ;;  %3852 = vmatpush.xpose.msk.msrb.mxu2 %vm688_vm1, %v4994_v14 }
 0x6f0   : > { %v1351_v36 = vadd.f32 %v4516_v21, %v1345_v34  ;;  %v4518_v34 = vld [vmem:[%s4933_s25 + $0x4] ss:$0 sm:$0xff] }
 0x6f2   : > { %v1353_v5 = vadd.f32 %v1351_v36, %v4775_v15  ;;  %v1544_v45 = vpop.f32.mrf.mxu3 }
 0x6f4   : > { %v1361_v38 = vsel %vm540_vm0, %v1353_v5, 0.0 }
 0x6f5   : > { %1362 = vadd.xlane.f32.xlu2 %v1361_v38 }
 0x70d   : > { %1745 = vrot.lane.b32.xlu2 %v4994_v14, %s4661_s11 }
 0x760   : > { %v1360_v47 = vpop.xlane.xlu1 %1359 }
 0x761   : > { %v1371_v15 = vmul.f32 %v4945_v46, %v1360_v47  ;;  %v5000_v47 = vadd.f32 %v4519_v44, %v1544_v45  ;;  %v4359_v44 = vld [vmem:[%s4865_s20 + $0x28] sm:$0xff] }
 0x763   : > { %v4948_v48 = vsub.f32 %v1352_v30, %v1371_v15  ;;  %v4517_v30 = vld [vmem:[%s4933_s25 + $0x3] ss:$0 sm:$0xff]  ;;  %3854 = vmatpush.xpose.msk.msra.mxu2 %vm688_vm1, %v5000_v47  ;;  %v4521_v15 = vld [vmem:[%s4757_s26 + $0x5] ss:$0 sm:$0xff] }
 0x765   : > { %v1375_v49 = vmul.f32 %v4948_v48, %v4948_v48 }
 0x767   : > { %v1377_v50 = vsel %vm540_vm0, %v1375_v49, 0.0 }
 0x768   : > { %1378 = vadd.xlane.f32.xlu0 %v1377_v50  ;;  %v1363_v51 = vpop.xlane.xlu2 %1362  ;;  %v4520_v50 = vld [vmem:[%s4757_s26 + $0x3] ss:$0 sm:$0xff] }
 0x769   : > { %v1372_v52 = vmul.f32 %v4945_v46, %v1363_v51 }
 0x76b   : > { %v4954_v29 = vsub.f32 %v1353_v5, %v1372_v52 }
 0x76d   : > { %v1376_v53 = vmul.f32 %v4954_v29, %v4954_v29 }
 0x76f   : > { %v1380_v54 = vsel %vm540_vm0, %v1376_v53, 0.0 }
 0x770   : > { %1381 = vadd.xlane.f32.xlu1 %v1380_v54  ;;  %v1746_v54 = vpop.permute.xlu2 %1745 }
 0x7db   : > { %v1379_v1 = vpop.xlane.xlu0 %1378 }
 0x7dc   : > { %v1383_v35 = vmul.f32 %v1379_v1, %v4945_v46 }
 0x7de   : > { %v1385_v2 = vadd.f32 1e-05, %v1383_v35 }
 0x7e0   : > { %4562 = vrsqrt.f32 %v1385_v2  ;;  %vm1393_vm8 = vweird.f32 %v1385_v2 }
 0x7e3   : > { %v1382_v7 = vpop.xlane.xlu1 %1381 }
 0x7e4   : > { %v1384_v27 = vmul.f32 %v1382_v7, %v4945_v46 }
 0x7e6   : > { %v4563_v10 = vpop.eup %4562  ;;  %v1386_v11 = vadd.f32 1e-05, %v1384_v27 }
 0x7e7   : > { %v1388_v12 = vmul.f32 %v4563_v10, %v1385_v2  ;;  %vm1394_vm7 = vweird.f32 %v4563_v10 }
 0x7e8   : > { %4564 = vrsqrt.f32 %v1386_v11  ;;  %vm1395_vm9 = vmor %vm1393_vm8, %vm1394_vm7  ;;  %vm1403_vm11 = vweird.f32 %v1386_v11 }
 0x7e9   : > { %v1389_v16 = vmul.f32 %v4563_v10, %v1388_v12 }
 0x7eb   : > { %v1390_v17 = vmul.f32 0.5, %v1389_v16 }
 0x7ed   : > { %v1391_v19 = vsub.f32 1.5, %v1390_v17 }
 0x7ee   : > { %v4565_v20 = vpop.eup %4564 }
 0x7ef   : > { %v1392_v21 = vmul.f32 %v4563_v10, %v1391_v19  ;;  %v1398_v22 = vmul.f32 %v4565_v20, %v1386_v11  ;;  %vm1404_vm10 = vweird.f32 %v4565_v20 }
 0x7f0   : > { %vm1405_vm12 = vmor %vm1403_vm11, %vm1404_vm10 }
 0x7f1   : > { %v1399_v24 = vmul.f32 %v4565_v20, %v1398_v22  ;;  %v1396_v25 = vsel %vm1395_vm9, %v4563_v10, %v1392_v21 }
 0x7f2   : > { %v1407_v31 = vmul.f32 %v1396_v25, %v4948_v48  ;;  %v1602_v48 = vpop.f32.mrf.mxu1 }
 0x7f3   : > { %v1400_v26 = vmul.f32 0.5, %v1399_v24  ;;  %v5005_v49 = vadd.f32 %v4521_v15, %v1602_v48 }
 0x7f4   : > { %v1412_v36 = vmul.f32 %v4517_v30, %v1407_v31 }
 0x7f5   : > { %v1401_v28 = vsub.f32 1.5, %v1400_v26  ;;  %1714 = vmatpush.msra.mxu0 %v5005_v49 }
 0x7f6   : > { %v4986_v40 = vadd.f32 %v4518_v34, %v1412_v36  ;;  %v5051_v36 = vld [vmem:[%s4865_s20 + $0x30] sm:$0xff]  }
 0x7f7   : > { %v1402_v32 = vmul.f32 %v4565_v20, %v1401_v28 }
 0x7f9   : > { %v1406_v33 = vsel %vm1405_vm12, %v4565_v20, %v1402_v32 }
 0x7fa   : > { %v1408_v5 = vmul.f32 %v1406_v33, %v4954_v29  ;;  %v1604_v17 = vpop.f32.mrf.mxu1 }
 0x7fb   : > { %v5038_v18 = vadd.f32 %v4521_v15, %v1604_v17 }
 0x7fc   : > { %v1413_v38 = vmul.f32 %v4517_v30, %v1408_v5  ;;  %v4475_v5 = vunpack.c.l.b16 %v5051_v36 }
 0x7fd   : > { %1737 = vmatpush.msrb.mxu3 %v5038_v18 }
 0x7fe   : > { %v4988_v41 = vadd.f32 %v4518_v34, %v1413_v38  ;;  %v1917_v38 = vpack.c.b16 %v4475_v5, %v4475_v5 }
 0x800   : > { %v1432_v42 = vpack.c.bf16 %v4988_v41, %v4986_v40 }
 0x802   : > { %3777 = vmatmul.msk.bf16.vlgmr.msrb.gmra.mxu0 %vm540_vm0, %v1432_v42  ;;  %v1923_v42 = vsel %vm968_vm4, %v1917_v38, 0 }
 0x87f   : > { %v1478_v51 = vpop.f32.mrf.mxu0 }
 0x880   : > { %v5009_v52 = vadd.f32 %v4520_v50, %v1478_v51 }
 0x882   : > { %1743 = vrot.lane.b32.xlu0 %v5009_v52, %s4661_s11  ;;  %3853 = vmatmul.msk.f32.vlgmr.msrb.gmra.mxu2 %vm688_vm1, %v5009_v52 }
 0x883   : > { %3858 = vmatpush.xpose.msk.msrb.mxu2 %vm688_vm1, %v1746_v54 }
 0x887   : > { %v1480_v29 = vpop.f32.mrf.mxu0 }
 0x888   : > { %v5015_v53 = vadd.f32 %v4520_v50, %v1480_v29 }
 0x88a   : > { %1771 = vrot.lane.b32.xlu2 %v5015_v53, %s4661_s11  ;;  %1773 = vrot.lane.b32.xlu0 %v5000_v47, %s4661_s11 }
 0x88b   : > { %3855 = vmatmul.msk.f32.vlgmr.msra.gmra.mxu2 %vm688_vm1, %v5015_v53 }
 0x892   : > { %1941 = vrot.lane.b32.xlu2 %v4994_v14, %s4662_s12  ;;  %1826 = vrot.lane.b32.xlu0 %v5005_v49, %s4661_s11 }
 0x8e4   : > { %v1772_v56 = vpop.permute.xlu2 %1771 }
 0x8ec   : > { %v1942_v58 = vpop.permute.xlu2 %1941 }
 0x8f4   : > { %v1744_v55 = vpop.permute.xlu0 %1743 }
 0x8f5   : > { %3859 = vmatmul.msk.f32.vlgmr.msrb.gmra.mxu2 %vm688_vm1, %v1744_v55 }
 0x8fc   : > { %v1774_v23 = vpop.permute.xlu0 %1773 }
 0x8fd   : > { %3860 = vmatpush.xpose.msk.msrb.mxu0 %vm688_vm1, %v1774_v23 }
 0x904   : > { %v1827_v57 = vpop.permute.xlu0 %1826 }
 0x905   : > { %v1641_v59 = vpop.f32.mrf.mxu2  ;;  %1847 = vmatpush.msra.mxu1 %v1827_v57 }
 0x906   : > { %v1670_v60 = vmul.f32 0.2236068, %v1641_v59 }
 0x907   : > { %3870 = vmatpush.xpose.msk.msrb.mxu1 %vm688_vm1, %v1942_v58 }
 0x908   : > { %v1672_v61 = vadd.f32 %v1670_v60, %v4831_v43 }
 0x90a   : > { %v1674_v62 = vsel %vm745_vm3, %v1672_v61, -inf }
 0x90b   : > { %1675 = vmax.xlane.f32.xlu1 %v1674_v62 }
 0x90e   : > { %v1667_v63 = vpop.f32.mrf.mxu2 }
 0x90f   : > { %v1671_v0 = vmul.f32 0.2236068, %v1667_v63 }
 0x911   : > { %v1673_v1 = vadd.f32 %v1671_v0, %v4831_v43 }
 0x913   : > { %v1677_v35 = vsel %vm745_vm3, %v1673_v1, -inf }
 0x914   : > { %1678 = vmax.xlane.f32.xlu0 %v1677_v35 }
 0x978   : > { %v1768_v2 = vpop.f32.mrf.mxu2 }
 0x979   : > { %v1799_v3 = vmul.f32 0.2236068, %v1768_v2 }
 0x97b   : > { %v1801_v4 = vadd.f32 %v1799_v3, %v4831_v43 }
 0x97d   : > { %v1803_v6 = vsel %vm745_vm3, %v1801_v4, -inf }
 0x97e   : > { %v1676_v7 = vpop.xlane.xlu1 %1675  ;;  %1804 = vmax.xlane.f32.xlu1 %v1803_v6 }
 0x97f   : > { %v1680_v27 = vsub.f32 %v1672_v61, %v1676_v7 }
 0x981   : > { %v1682_v9 = vmul.f32 1.442695, %v1680_v27 }
 0x983   : > { %4566 = vpow2.f32 %v1682_v9 }
 0x987   : > { %v1679_v10 = vpop.xlane.xlu0 %1678 }
 0x988   : > { %v1681_v11 = vsub.f32 %v1673_v1, %v1679_v10 }
 0x989   : > { %v4567_v12 = vpop.eup %4566 }
 0x98a   : > { %v1684_v13 = vmul.f32 1.442695, %v1681_v11  ;;  %v1686_v16 = vsel %vm745_vm3, %v4567_v12, 0.0 }
 0x98b   : > { %1687 = vadd.xlane.f32.xlu1 %v1686_v16  ;;  %v3846_v16 = vld [vmem:[%s4865_s20 + $0x38] sm:$0xf] }
 0x98c   : > { %4568 = vpow2.f32 %v1684_v13  ;;  %v1885_v17 = vunpack.c.l.b16 %v3846_v16 }
 0x992   : > { %v4569_v19 = vpop.eup %4568 }
 0x993   : > { %v1689_v20 = vsel %vm745_vm3, %v4569_v19, 0.0 }
 0x994   : > { %1690 = vadd.xlane.f32.xlu2 %v1689_v20 }
 0x9ac   : > { %1969 = vrot.lane.b32.xlu2 %v5000_v47, %s4662_s12 }
 0x9f1   : > { %v1805_v21 = vpop.xlane.xlu1 %1804 }
 0x9f2   : > { %v1809_v22 = vsub.f32 %v1801_v4, %v1805_v21 }
 0x9f4   : > { %v1811_v24 = vmul.f32 1.442695, %v1809_v22  ;;  %v1888_v22 = vrot.slane %v5051_v36, 2 }
 0x9f6   : > { %4570 = vpow2.f32 %v1811_v24 }
 0x9fc   : > { %v4571_v25 = vpop.eup %4570 }
 0x9fd   : > { %v1815_v26 = vsel %vm745_vm3, %v4571_v25, 0.0 }
 0x9fe   : > { %1816 = vadd.xlane.f32.xlu1 %v1815_v26  ;;  %v1688_v28 = vpop.xlane.xlu1 %1687 }
 0x9ff   : > { %4572 = vrcp.f32 %v1688_v28 }
 0xa05   : > { %v4573_v30 = vpop.eup %4572 }
 0xa06   : > { %v1694_v31 = vmul.f32 %v4573_v30, %v4567_v12 }
 0xa07   : > { %v1691_v32 = vpop.xlane.xlu2 %1690 }
 0xa08   : > { %4574 = vrcp.f32 %v1691_v32  ;;  %3856 = vmatmul.msk.f32.vlgmr.msra.gmra.mxu0 %vm745_vm3, %v1694_v31 }
 0xa09   : > { %1931 = vmatpush.bf16.msra.mxu0 %v1923_v42 }
 0xa0d   : > { %1932 = vmatpush.bf16.msra.mxu0 %v4359_v44 }
 0xa0e   : > { %v4575_v33 = vpop.eup %4574 }
 0xa0f   : > { %v1695_v34 = vmul.f32 %v4575_v33, %v4569_v19  ;;  %v1887_v19 = vpack.c.b16 %v1885_v17, %v1885_v17 }
 0xa10   : > { %3861 = vmatmul.msk.f32.vlgmr.msrb.gmra.mxu0 %vm688_vm1, %v1772_v56 }
 0xa11   : > { %3857 = vmatmul.msk.f32.vlgmr.msrb.gmra.mxu3 %vm745_vm3, %v1695_v34  ;;  %v1889_v20 = vrot.slane %v1887_v19, 2 }
 0xa13   : > { %v1896_v21 = vsel %vm968_vm4, %v1889_v20, 0  ;;  %v1890_v24 = vsel %vm960_vm5, %v1888_v22, %v1889_v20 }
 0xa14   : > { %1904 = vmatpush.bf16.msra.mxu2 %v1896_v21 }
 0xa17   : > { %1939 = vrot.lane.b32.xlu1 %v5009_v52, %s4662_s12 }
 0xa18   : > { %1905 = vmatpush.bf16.msra.mxu2 %v1890_v24 }
 0xa71   : > { %v1817_v8 = vpop.xlane.xlu1 %1816 }
 0xa72   : > { %4576 = vrcp.f32 %v1817_v8 }
 0xa78   : > { %v4577_v45 = vpop.eup %4576 }
 0xa79   : > { %v1823_v15 = vmul.f32 %v4577_v45, %v4571_v25 }
 0xa7b   : > { %3862 = vmatmul.msk.f32.vlgmr.msra.gmra.mxu1 %vm745_vm3, %v1823_v15 }
 0xa85   : > { %v1716_v48 = vpop.f32.mrf.mxu0 }
 0xa89   : > { %v1940_v50 = vpop.permute.xlu1 %1939 }
 0xa8a   : > { %3871 = vmatmul.msk.f32.vlgmr.msrb.gmra.mxu1 %vm688_vm1, %v1940_v50 }
 0xa8d   : > { %v1796_v51 = vpop.f32.mrf.mxu0 }
 0xa8e   : > { %v1800_v29 = vmul.f32 0.2236068, %v1796_v51 }
 0xa90   : > { %v1802_v54 = vadd.f32 %v1800_v29, %v4831_v43 }
 0xa92   : > { %v1806_v55 = vsel %vm745_vm3, %v1802_v54, -inf }
 0xa93   : > { %1807 = vmax.xlane.f32.xlu1 %v1806_v55 }
 0xa94   : > { %v1739_v56 = vpop.f32.mrf.mxu3 }
 0xa95   : > { %v1742_v23 = vpack.c.bf16 %v1739_v56, %v1716_v48 }
 0xa97   : > { %3869 = vmatmul.msk.bf16.vlgmr.msra.gmra.mxu0 %vm688_vm1, %v1742_v23 }
 0xaac   : > { %1967 = vrot.lane.b32.xlu1 %v5015_v53, %s4662_s12 }
 0xab4   : > { %2135 = vrot.lane.b32.xlu1 %v5000_v47, %s4664_s14  ;;  %v1970_v47 = vpop.permute.xlu2 %1969 }
 0xaf8   : > { %v5065_v57 = vpop.f32.mrf.mxu1 }
 0xb06   : > { %v1808_v58 = vpop.xlane.xlu1 %1807 }
 0xb07   : > { %v1810_v59 = vsub.f32 %v1802_v54, %v1808_v58  ;;  %v1964_v60 = vpop.f32.mrf.mxu1 }
 0xb08   : > { %v1995_v61 = vmul.f32 0.2236068, %v1964_v60 }
 0xb09   : > { %v1813_v62 = vmul.f32 1.442695, %v1810_v59 }
 0xb0a   : > { %v1997_v63 = vadd.f32 %v1995_v61, %v4831_v43 }
 0xb0b   : > { %4578 = vpow2.f32 %v1813_v62 }
 0xb0c   : > { %v1999_v0 = vsel %vm745_vm3, %v1997_v63, -inf }
 0xb0d   : > { %2000 = vmax.xlane.f32.xlu0 %v1999_v0 }
 0xb11   : > { %v4579_v1 = vpop.eup %4578 }
 0xb12   : > { %v1818_v35 = vsel %vm745_vm3, %v4579_v1, 0.0 }
 0xb13   : > { %1819 = vadd.xlane.f32.xlu2 %v1818_v35 }
 0xb14   : > { %v5091_v30 = vpop.f32.mrf.mxu0 }
 0xb1c   : > { %v5095_v32 = vpop.f32.mrf.mxu0 }
 0xb1e   : > { %v1968_v6 = vpop.permute.xlu1 %1967 }
 0xb21   : > { %1853 = vrot.lane.b32.xlu0 %v5038_v18, %s4661_s11  ;;  %s5151_s11 = scalar_lea.vmem %s5388_s7, %s4489_s22 }
 0xb26   : > { %v2136_v10 = vpop.permute.xlu1 %2135 }
 0xb2b   : > { %2021 = vrot.lane.b32.xlu2 %v5005_v49, %s4662_s12 }
 0xb33   : > { %2107 = vrot.lane.b32.xlu2 %v4994_v14, %s4664_s14 }
 0xb3b   : > { %2105 = vrot.lane.b32.xlu2 %v5009_v52, %s4664_s14 }
 0xb43   : > { %2133 = vrot.lane.b32.xlu2 %v5015_v53, %s4664_s14 }
 0xb80   : > { %v2001_v2 = vpop.xlane.xlu0 %2000 }
 0xb81   : > { %v2005_v3 = vsub.f32 %v1997_v63, %v2001_v2 }
 0xb83   : > { %v2007_v4 = vmul.f32 1.442695, %v2005_v3 }
 0xb85   : > { %4580 = vpow2.f32 %v2007_v4 }
 0xb86   : > { %v1820_v7 = vpop.xlane.xlu2 %1819 }
 0xb87   : > { %4582 = vrcp.f32 %v1820_v7 }
 0xb8b   : > { %v4581_v27 = vpop.eup %4580 }
 0xb8c   : > { %v2011_v9 = vsel %vm745_vm3, %v4581_v27, 0.0 }
 0xb8d   : > { %2012 = vadd.xlane.f32.xlu0 %v2011_v9  ;;  %v4583_v52 = vpop.eup %4582 }
 0xb8e   : > { %v2022_v14 = vpop.permute.xlu2 %2021  ;;  %v1824_v53 = vmul.f32 %v4583_v52, %v4579_v1 }
 0xb8f   : > { %2042 = vmatpush.msra.mxu1 %v2022_v14  ;;  %v3849_v14 = vld [vmem:[%s4865_s20 + $0x44] sm:$0xf] }
 0xb91   : > { %3883 = vmatpush.xpose.msk.msrb.mxu1 %vm688_vm1, %v2136_v10  ;;  %v2079_v10 = vunpack.c.l.b16 %v3849_v14  ;;  %v4394_v14 = vld [vmem:[%s5151_s11 + $0x10c] sm:$0xf] }
 0xb93   : > { %v1854_v11 = vpop.permute.xlu0 %1853  ;;  %v2081_v52 = vpack.c.b16 %v2079_v10, %v2079_v10 }
 0xb94   : > { %1874 = vmatpush.msra.mxu3 %v1854_v11  ;;  %v4360_v11 = vld [vmem:[%s4865_s20 + $0x3c] sm:$0xff] }
 0xb95   : > { %3863 = vmatmul.msk.f32.vlgmr.msra.gmra.mxu3 %vm745_vm3, %v1824_v53  ;;  %v2087_v53 = vsel %vm968_vm4, %v2081_v52, 0 }
 0xb96   : > { %3872 = vmatpush.xpose.msk.msrb.mxu3 %vm688_vm1, %v1970_v47  ;;  %v2108_v12 = vpop.permute.xlu2 %2107  ;;  %2095 = vmatpush.bf16.msrb.mxu2 %v2087_v53  ;;  %v3989_v53 = vld [vmem:[%s5151_s11 + $0xc0] sm:$0xf] }
 0xb97   : > { %3881 = vmatpush.xpose.msk.msrb.mxu0 %vm688_vm1, %v2108_v12  ;;  %v4484_v12 = vld [vmem:[%s4865_s20 + $0x48] sm:$0xff]  }
 0xb9a   : > { %2096 = vmatpush.bf16.msrb.mxu2 %v4360_v11  ;;  %v4389_v11 = vld [vmem:[%s5151_s11 + $0xdc] sm:$0xf0] }
 0xb9d   : > { %3873 = vmatmul.msk.f32.vlgmr.msrb.gmra.mxu3 %vm688_vm1, %v1968_v6 }
 0xb9e   : > { %v2106_v13 = vpop.permute.xlu2 %2105 }
 0xb9f   : > { %3882 = vmatmul.msk.f32.vlgmr.msrb.gmra.mxu0 %vm688_vm1, %v2106_v13  ;;  %v4480_v13 = vunpack.c.h.b16 %v4484_v12 }
 0xba1   : > { %v2245_v16 = vpack.c.b16 %v4480_v13, %v4480_v13  ;;  %v3990_v13 = vor.u32 %v4389_v11, %v3989_v53  ;;  %v4396_v11 = vld [vmem:[%s5151_s11 + $0x11c] sm:$0xf] }
 0xba3   : > { %v2247_v19 = vrot.slane %v2245_v16, 2  ;;  %v3991_v16 = vld [vmem:[%s5151_s11 + $0xe0] sm:$0xf0] }
 0xba5   : > { %v2254_v20 = vsel %vm968_vm4, %v2247_v19, 0 }
 0xba6   : > { %v2134_v31 = vpop.permute.xlu2 %2133 }
 0xc00   : > { %v2013_v25 = vpop.xlane.xlu0 %2012 }
 0xc01   : > { %4584 = vrcp.f32 %v2013_v25 }
 0xc07   : > { %v4585_v26 = vpop.eup %4584 }
 0xc08   : > { %v2019_v28 = vmul.f32 %v4585_v26, %v4581_v27  ;;  %v4479_v26 = vunpack.c.l.b16 %v4484_v12  ;;  %v4385_v12 = vld [vmem:[%s5151_s11 + $0xc4] sm:$0xf] }
 0xc0a   : > { %3874 = vmatmul.msk.f32.vlgmr.msra.gmra.mxu1 %vm745_vm3, %v2019_v28  ;;  %v2244_v28 = vpack.c.b16 %v4479_v26, %v2079_v10  ;;  %v4031_v10 = vld [vmem:[%s5151_s11 + $0x128] sm:$0xf0]  ;;  %v4381_v26 = vld [vmem:[%s5151_s11 + $0x9c] sm:$0xf0] }
 0xc0b   : > { %2262 = vmatpush.bf16.msra.mxu1 %v2254_v20  ;;  %v4034_v52 = vor.u32 %v4394_v14, %v4031_v10  ;;  %v3994_v20 = vor.u32 %v4385_v12, %v3991_v16  ;;  %v4045_v14 = vld [vmem:[%s5151_s11 + $0x118] sm:$0xf]  ;;  %v4047_v12 = vld [vmem:[%s5151_s11 + $0x138] sm:$0xf0] }
 0xc0c   : > { %v4400_v10 = vld [vmem:[%s5151_s11 + $0x134] sm:$0xf0]  ;;  %v4050_v16 = vor.u32 %v4396_v11, %v4047_v12 }
 0xc0d   : > { %v4046_v53 = vor.u32 %v4400_v10, %v4045_v14  ;;  %v3919_v14 = vld [vmem:[%s5151_s11 + $0x38] sm:$0xf0] }
 0xc12   : > { %3884 = vmatmul.msk.f32.vlgmr.msrb.gmra.mxu1 %vm688_vm1, %v2134_v31  ;;  %v2246_v31 = vrot.slane %v2244_v28, 2  ;;  %v4377_v28 = vld [vmem:[%s5151_s11 + $0x84] sm:$0xf] }
 0xc18   : > { %v1876_v33 = vpop.f32.mrf.mxu3 }
 0xc19   : > { %v1879_v34 = vpack.c.bf16 %v1876_v33, %v5065_v57  ;;  %v2248_v33 = vsel %vm960_vm5, %v2246_v31, %v2247_v19  ;;  %v4390_v19 = vld [vmem:[%s5151_s11 + $0xe4] sm:$0xf0] }
 0xc1a   : > { %2263 = vmatpush.bf16.msra.mxu1 %v2248_v33  ;;  %v3959_v33 = vld [vmem:[%s5151_s11 + $0xa0] sm:$0xf0] }
 0xc1b   : > { %3864 = vmatmul.msk.bf16.vlgmr.msra.gmra.mxu2 %vm688_vm1, %v1879_v34 }
 0xc1c   : > { %v2130_v36 = vpop.f32.mrf.mxu0 }
 0xc1d   : > { %v2161_v5 = vmul.f32 0.2236068, %v2130_v36 }
 0xc1e   : > { %2646 = vmatpush.bf16.msrb.mxu1 %v4034_v52 }
 0xc1f   : > { %v2163_v38 = vadd.f32 %v2161_v5, %v4831_v43 }
 0xc20   : > { %v1992_v42 = vpop.f32.mrf.mxu3 }
 0xc21   : > { %v1996_v44 = vmul.f32 0.2236068, %v1992_v42  ;;  %v2165_v8 = vsel %vm745_vm3, %v2163_v38, -inf }
 0xc22   : > { %2166 = vmax.xlane.f32.xlu2 %v2165_v8 }
 0xc23   : > { %v1998_v45 = vadd.f32 %v1996_v44, %v4831_v43 }
 0xc25   : > { %v2002_v15 = vsel %vm745_vm3, %v1998_v45, -inf }
 0xc26   : > { %2003 = vmax.xlane.f32.xlu1 %v2002_v15  ;;  %v4522_v15 = vld [vmem:[%s4933_s25 + $0x1] ss:$0 sm:$0xff] }
 0xc3a   : > { %2187 = vrot.lane.b32.xlu2 %v5005_v49, %s4664_s14 }
 0xc87   : > { %v5105_v48 = vpop.f32.mrf.mxu1 }
 0xc8f   : > { %v2158_v55 = vpop.f32.mrf.mxu1 }
 0xc90   : > { %v2162_v57 = vmul.f32 0.2236068, %v2158_v55 }
 0xc92   : > { %v2164_v60 = vadd.f32 %v2162_v57, %v4831_v43 }
 0xc94   : > { %v2168_v49 = vsel %vm745_vm3, %v2164_v60, -inf }
 0xc95   : > { %v2167_v50 = vpop.xlane.xlu2 %2166 }
 0xc96   : > { %v2171_v51 = vsub.f32 %v2163_v38, %v2167_v50 }
 0xc98   : > { %v2173_v29 = vmul.f32 1.442695, %v2171_v51 }
 0xc99   : > { %v2004_v54 = vpop.xlane.xlu1 %2003 }
 0xc9a   : > { %4586 = vpow2.f32 %v2173_v29  ;;  %v2006_v23 = vsub.f32 %v1998_v45, %v2004_v54 }
 0xc9c   : > { %v2009_v59 = vmul.f32 1.442695, %v2006_v23 }
 0xc9d   : > { %v2188_v7 = vpop.permute.xlu2 %2187 }
 0xc9e   : > { %4588 = vpow2.f32 %v2009_v59  ;;  %v1907_v38 = vpop.f32.mrf.mxu2 }
 0xc9f   : > { %v1935_v8 = vadd.f32 %v5091_v30, %v1907_v38 }
 0xca0   : > { %v4587_v56 = vpop.eup %4586 }
 0xca1   : > { %v2177_v58 = vsel %vm745_vm3, %v4587_v56, 0.0 }
 0xca2   : > { %2178 = vadd.xlane.f32.xlu0 %v2177_v58 }
 0xca4   : > { %v4589_v61 = vpop.eup %4588 }
 0xca5   : > { %v2014_v62 = vsel %vm745_vm3, %v4589_v61, 0.0 }
 0xca6   : > { %v1909_v42 = vpop.f32.mrf.mxu2 }
 0xca7   : > { %v1937_v54 = vadd.f32 %v5095_v32, %v1909_v42  ;;  %v4378_v42 = vld [vmem:[%s5151_s11 + $0x8c] sm:$0xf] }
 0xcaa   : > { %2169 = vmax.xlane.f32.xlu0 %v2168_v49 }
 0xcb2   : > { %2015 = vadd.xlane.f32.xlu0 %v2014_v62 }
 0xcc6   : > { %2047 = vrot.lane.b32.xlu0 %v5038_v18, %s4662_s12  ;;  %s4326_s12 = sshll.u32 %s4739_s0, 9 }
 0xcc7   : > { %s5260_s16 = scalar_lea.vmem %s5390_s9, %s4326_s12 }
 0xd15   : > { %v2179_v63 = vpop.xlane.xlu0 %2178 }
 0xd1d   : > { %v2170_v0 = vpop.xlane.xlu0 %2169 }
 0xd1e   : > { %v2172_v1 = vsub.f32 %v2164_v60, %v2170_v0 }
 0xd20   : > { %v2175_v35 = vmul.f32 1.442695, %v2172_v1 }
 0xd22   : > { %4590 = vpow2.f32 %v2175_v35 }
 0xd25   : > { %v2016_v43 = vpop.xlane.xlu0 %2015 }
 0xd26   : > { %4592 = vrcp.f32 %v2016_v43  ;;  %v4393_v43 = vld [vmem:[%s5151_s11 + $0x104] sm:$0xf] }
 0xd27   : > { %4594 = vrcp.f32 %v2179_v63 }
 0xd28   : > { %v4591_v47 = vpop.eup %4590 }
 0xd29   : > { %v2180_v2 = vsel %vm745_vm3, %v4591_v47, 0.0 }
 0xd2a   : > { %2181 = vadd.xlane.f32.xlu1 %v2180_v2  ;;  %v4397_v2 = vld [vmem:[%s5151_s11 + $0x11c] sm:$0xf0] }
 0xd2c   : > { %v4593_v3 = vpop.eup %4592 }
 0xd2d   : > { %v2020_v4 = vmul.f32 %v4593_v3, %v4589_v61  ;;  %v4595_v27 = vpop.eup %4594 }
 0xd2e   : > { %v2185_v9 = vmul.f32 %v4595_v27, %v4587_v56 }
 0xd38   : > { %v2048_v6 = vpop.permute.xlu0 %2047 }
 0xd39   : > { %2068 = vmatpush.msra.mxu3 %v2048_v6  ;;  %v4029_v6 = vld [vmem:[%s5151_s11 + $0x108] sm:$0xf] }
 0xd3a   : > { %3875 = vmatmul.msk.f32.vlgmr.msra.gmra.mxu3 %vm745_vm3, %v2020_v4  ;;  %v4023_v4 = vld [vmem:[%s5151_s11 + $0x120] sm:$0xf0] }
 0xd3b   : > { %2208 = vmatpush.msrb.mxu3 %v2188_v7  ;;  %v4398_v7 = vld [vmem:[%s5151_s11 + $0x124] sm:$0xf0]  ;;  %v4026_v27 = vor.u32 %v4393_v43, %v4023_v4  ;;  %v3903_v43 = vld [vmem:[%s5151_s11 + $0x28] sm:$0xf0]  ;;  %v4037_v4 = vld [vmem:[%s5151_s11 + $0x110] sm:$0xf] }
 0xd3d   : > { %2618 = vmatpush.bf16.msra.mxu3 %v4026_v27 }
 0xd41   : > { %2619 = vmatpush.bf16.msra.mxu3 %v3994_v20  ;;  %v4007_v20 = vld [vmem:[%s5151_s11 + $0xf0] sm:$0xf0] }
 0xd42   : > { %3885 = vmatmul.msk.f32.vlgmr.msrb.gmra.mxu3 %vm745_vm3, %v2185_v9  ;;  %v4030_v9 = vor.u32 %v4398_v7, %v4029_v6  ;;  %v4399_v6 = vld [vmem:[%s5151_s11 + $0x12c] sm:$0xf0]  ;;  %v4395_v7 = vld [vmem:[%s5151_s11 + $0x114] sm:$0xf] }
 0xd43   : > { %2213 = vrot.lane.b32.xlu1 %v5038_v18, %s4664_s14  ;;  %v4038_v27 = vor.u32 %v4399_v6, %v4037_v4  ;;  %v3917_v6 = vld [vmem:[%s5151_s11 + $0x18] sm:$0xf] }
 0xd9d   : > { %v2182_v17 = vpop.xlane.xlu1 %2181 }
 0xd9e   : > { %4596 = vrcp.f32 %v2182_v17  ;;  %v3997_v17 = vld [vmem:[%s5151_s11 + $0xc8] sm:$0xf] }
 0xda4   : > { %v4597_v21 = vpop.eup %4596 }
 0xda5   : > { %v2186_v22 = vmul.f32 %v4597_v21, %v4591_v47  ;;  %v4021_v47 = vld [vmem:[%s5151_s11 + $0x100] sm:$0xf]  ;;  %v3998_v21 = vor.u32 %v4390_v19, %v3997_v17  ;;  %v4391_v17 = vld [vmem:[%s5151_s11 + $0xec] sm:$0xf0]  ;;  %v4387_v19 = vld [vmem:[%s5151_s11 + $0xd4] sm:$0xf] }
 0xda6   : > { %v4022_v3 = vor.u32 %v4397_v2, %v4021_v47  ;;  %v4362_v2 = vld [vmem:[%s5151_s11 + $0xc] sm:$0xf] }
 0xda8   : > { %2604 = vmatpush.bf16.msra.mxu2 %v4022_v3  ;;  %v3906_v3 = vor.u32 %v4362_v2, %v3903_v43  ;;  %v4363_v43 = vld [vmem:[%s5151_s11 + $0x14] sm:$0xf] }
 0xdac   : > { %2605 = vmatpush.bf16.msra.mxu2 %v3990_v13  ;;  %v4005_v13 = vld [vmem:[%s5151_s11 + $0xd0] sm:$0xf] }
 0xdb5   : > { %v2214_v18 = vpop.permute.xlu1 %2213 }
 0xdb6   : > { %2234 = vmatpush.msra.mxu0 %v2214_v18  ;;  %v3999_v18 = vld [vmem:[%s5151_s11 + $0xe8] sm:$0xf0] }
 0xdb7   : > { %3886 = vmatmul.msk.f32.vlgmr.msra.gmra.mxu0 %vm745_vm3, %v2186_v22  ;;  %v4386_v22 = vld [vmem:[%s5151_s11 + $0xcc] sm:$0xf] }
 0xdb8   : > { %2632 = vmatpush.bf16.msrb.mxu0 %v4030_v9  ;;  %v4039_v9 = vld [vmem:[%s5151_s11 + $0x130] sm:$0xf0] }
 0xdb9   : > { %v4042_v52 = vor.u32 %v4395_v7, %v4039_v9  ;;  %v4368_v7 = vld [vmem:[%s5151_s11 + $0x34] sm:$0xf0]  ;;  %v4364_v9 = vld [vmem:[%s5151_s11 + $0x1c] sm:$0xf] }
 0xdbc   : > { %2633 = vmatpush.bf16.msrb.mxu0 %v3998_v21 }
 0xdbd   : > { %v2070_v24 = vpop.f32.mrf.mxu3 }
 0xdbe   : > { %v2073_v25 = vpack.c.bf16 %v2070_v24, %v5105_v48  ;;  %v4002_v24 = vor.u32 %v4386_v22, %v3999_v18  ;;  %v4006_v22 = vor.u32 %v4391_v17, %v4005_v13  ;;  %v4010_v18 = vor.u32 %v4387_v19, %v4007_v20 }
 0xdbf   : > { %v3918_v13 = vor.u32 %v4368_v7, %v3917_v6  ;;  %v4401_v6 = vld [vmem:[%s5260_s16] sm:$0xff] }
 0xdc0   : > { %3880 = vmatmul.msk.bf16.vlgmr.msrb.gmra.mxu2 %vm688_vm1, %v2073_v25  ;;  %v3957_v25 = vld [vmem:[%s5151_s11 + $0x80] sm:$0xf]  ;;  %2647 = vmatpush.bf16.msrb.mxu1 %v4002_v24  ;;  %v4013_v24 = vld [vmem:[%s5151_s11 + $0xd8] sm:$0xf] }
 0xdc1   : > { %v3958_v31 = vor.u32 %v4381_v26, %v3957_v25  ;;  %v4392_v25 = vld [vmem:[%s5151_s11 + $0xf4] sm:$0xf0]  ;;  %v4388_v26 = vld [vmem:[%s5151_s11 + $0xdc] sm:$0xf]  ;;  %v4409_v7 = vld [vmem:[%s5260_s16 + $0x40] sm:$0xff] }
 0xdc3   : > { %2606 = vmatpush.bf16.msra.mxu2 %v3958_v31  ;;  %v4014_v31 = vor.u32 %v4392_v25, %v4013_v24  ;;  %v4524_v25 = vld [vmem:[%s4933_s25 + $0x6] ss:$0 sm:$0xff] }
 0xdc5   : > { %v2210_v34 = vpop.f32.mrf.mxu3 }
 0xe34   : > { %v2236_v36 = vpop.f32.mrf.mxu0 }
 0xe35   : > { %v2239_v5 = vpack.c.bf16 %v2236_v36, %v2210_v34  ;;  %v3965_v34 = vld [vmem:[%s5151_s11 + $0x88] sm:$0xf] }
 0xe36   : > { %v4382_v36 = vld [vmem:[%s5151_s11 + $0xa4] sm:$0xf0] }
 0xe37   : > { %3887 = vmatmul.msk.bf16.vlgmr.msra.gmra.mxu1 %vm688_vm1, %v2239_v5  ;;  %v3962_v5 = vor.u32 %v4377_v28, %v3959_v33  ;;  %v3966_v38 = vor.u32 %v4382_v36, %v3965_v34  ;;  %v4015_v33 = vld [vmem:[%s5151_s11 + $0xf8] sm:$0xf0]  ;;  %v3973_v34 = vld [vmem:[%s5151_s11 + $0x90] sm:$0xf] }
 0xe38   : > { %v4383_v36 = vld [vmem:[%s5151_s11 + $0xac] sm:$0xf0] }
 0xe39   : > { %2620 = vmatpush.bf16.msra.mxu3 %v3962_v5  ;;  %2634 = vmatpush.bf16.msrb.mxu0 %v3966_v38  ;;  %v4018_v5 = vor.u32 %v4388_v26, %v4015_v33  ;;  %v4379_v38 = vld [vmem:[%s5151_s11 + $0x94] sm:$0xf] }
 0xe43   : > { %v2098_v44 = vpop.f32.mrf.mxu2 }
 0xe44   : > { %v2103_v45 = vadd.f32 %v2098_v44, %v1935_v8  ;;  %v3967_v44 = vld [vmem:[%s5151_s11 + $0xa8] sm:$0xf0] }
 0xe45   : > { %v3970_v8 = vor.u32 %v4378_v42, %v3967_v44  ;;  %v3975_v42 = vld [vmem:[%s5151_s11 + $0xb0] sm:$0xf0]  ;;  %v3981_v44 = vld [vmem:[%s5151_s11 + $0x98] sm:$0xf] }
 0xe47   : > { %2648 = vmatpush.bf16.msrb.mxu1 %v3970_v8 }
 0xe4b   : > { %v2100_v29 = vpop.f32.mrf.mxu2 }
 0xe4c   : > { %v2104_v56 = vadd.f32 %v2100_v29, %v1937_v54  ;;  %v3933_v29 = vld [vmem:[%s5151_s11 + $0x48] sm:$0xf] }
 0xe4d   : > { %v4374_v54 = vld [vmem:[%s5151_s11 + $0x64] sm:$0xf0] }
 0xeb4   : > { %v2265_v48 = vpop.f32.mrf.mxu1 }
 0xeb5   : > { %v2270_v50 = vadd.f32 %v2265_v48, %v2103_v45  ;;  %v3925_v45 = vld [vmem:[%s5151_s11 + $0x40] sm:$0xf]  ;;  %v4369_v48 = vld [vmem:[%s5151_s11 + $0x44] sm:$0xf] }
 0xeb7   : > { %v2277_v51 = vadd.f32 %v4522_v15, %v2270_v50 }
 0xeb9   : > { %v2279_v55 = vadd.f32 %v2277_v51, %v4986_v40  ;;  %v3927_v51 = vld [vmem:[%s5151_s11 + $0x60] sm:$0xf0] }
 0xebb   : > { %v2285_v23 = vsel %vm540_vm0, %v2279_v55, 0.0 }
 0xebc   : > { %2286 = vadd.xlane.f32.xlu0 %v2285_v23  ;;  %v2267_v57 = vpop.f32.mrf.mxu1  ;;  %v4370_v23 = vld [vmem:[%s5151_s11 + $0x4c] sm:$0xf] }
 0xebd   : > { %v2271_v58 = vadd.f32 %v2267_v57, %v2104_v56  ;;  %v3934_v56 = vor.u32 %v4374_v54, %v3933_v29  ;;  %v3935_v57 = vld [vmem:[%s5151_s11 + $0x68] sm:$0xf0]  ;;  %v3978_v29 = vor.u32 %v4379_v38, %v3975_v42  ;;  %v4416_v38 = vld [vmem:[%s5260_s16 + $0x78] sm:$0xff]  ;;  %v4423_v42 = vld [vmem:[%s5260_s16 + $0xb0] sm:$0xff] }
 0xebf   : > { %v2278_v59 = vadd.f32 %v4522_v15, %v2271_v58  ;;  %v4373_v15 = vld [vmem:[%s5151_s11 + $0x5c] sm:$0xf0]  ;;  %2635 = vmatpush.bf16.msrb.mxu0 %v3934_v56  ;;  %v3941_v56 = vld [vmem:[%s5151_s11 + $0x50] sm:$0xf] }
 0xec0   : > { %v3926_v50 = vor.u32 %v4373_v15, %v3925_v45  ;;  %v3974_v15 = vor.u32 %v4383_v36, %v3973_v34  ;;  %v4424_v34 = vld [vmem:[%s5260_s16 + $0xb8] sm:$0xff] }
 0xec1   : > { %v2280_v30 = vadd.f32 %v2278_v59, %v4988_v41  ;;  %v3938_v59 = vor.u32 %v4370_v23, %v3935_v57  ;;  %v4375_v23 = vld [vmem:[%s5151_s11 + $0x6c] sm:$0xf0]  ;;  %v4432_v36 = vld [vmem:[%s5260_s16 + $0xf8] sm:$0xff] }
 0xec2   : > { %2607 = vmatpush.bf16.msra.mxu2 %v3926_v50  ;;  %v4380_v50 = vld [vmem:[%s5151_s11 + $0x9c] sm:$0xf] }
 0xec3   : > { %v2288_v60 = vsel %vm540_vm0, %v2280_v30, 0.0  ;;  %2649 = vmatpush.bf16.msrb.mxu1 %v3938_v59  ;;  %v3943_v59 = vld [vmem:[%s5151_s11 + $0x70] sm:$0xf0] }
 0xec4   : > { %2289 = vadd.xlane.f32.xlu2 %v2288_v60  ;;  %v3893_v60 = vld [vmem:[%s5151_s11] sm:$0xf] }
 0xec7   : > { %2650 = vmatpush.bf16.msrb.mxu1 %v3906_v3  ;;  %v3911_v3 = vld [vmem:[%s5151_s11 + $0x30] sm:$0xf0] }
 0xecb   : > { %2702 = vmatpush.bf16.msra.mxu1 %v4050_v16  ;;  %v3922_v16 = vor.u32 %v4364_v9, %v3919_v14  ;;  %v4448_v9 = vld [vmem:[%s5260_s16 + $0x178] sm:$0xff]  ;;  %v4454_v14 = vld [vmem:[%s5260_s16 + $0x1a8] sm:$0xff] }
 0xecf   : > { %2703 = vmatpush.bf16.msra.mxu1 %v4018_v5  ;;  %v4408_v5 = vld [vmem:[%s5260_s16 + $0x38] sm:$0xff] }
 0xf2f   : > { %v2287_v49 = vpop.xlane.xlu0 %2286 }
 0xf30   : > { %v2291_v61 = vmul.f32 %v2287_v49, %v4945_v46  ;;  %v4365_v49 = vld [vmem:[%s5151_s11 + $0x1c] sm:$0xf0] }
 0xf32   : > { %v5136_v62 = vsub.f32 %v2279_v55, %v2291_v61  ;;  %v3930_v55 = vor.u32 %v4369_v48, %v3927_v51  ;;  %v4361_v61 = vld [vmem:[%s5151_s11 + $0x4] sm:$0xf]  ;;  %v4384_v48 = vld [vmem:[%s5151_s11 + $0xb4] sm:$0xf0] }
 0xf33   : > { %v3982_v54 = vor.u32 %v4384_v48, %v3981_v44  ;;  %v4431_v44 = vld [vmem:[%s5260_s16 + $0xf0] sm:$0xff]  ;;  %v4430_v48 = vld [vmem:[%s5260_s16 + $0xe8] sm:$0xff] }
 0xf34   : > { %v2295_v40 = vmul.f32 %v5136_v62, %v5136_v62  ;;  %2621 = vmatpush.bf16.msra.mxu3 %v3930_v55  ;;  %v3983_v55 = vld [vmem:[%s5151_s11 + $0xb8] sm:$0xf0] }
 0xf35   : > { %v3986_v57 = vor.u32 %v4380_v50, %v3983_v55  ;;  %v4406_v50 = vld [vmem:[%s5260_s16 + $0x28] sm:$0xff]  ;;  %v4405_v55 = vld [vmem:[%s5260_s16 + $0x20] sm:$0xff] }
 0xf36   : > { %v2297_v32 = vsel %vm540_vm0, %v2295_v40, 0.0  ;;  %v3894_v40 = vor.u32 %v4365_v49, %v3893_v60  ;;  %v3949_v60 = vld [vmem:[%s5151_s11 + $0x58] sm:$0xf] }
 0xf37   : > { %2298 = vadd.xlane.f32.xlu1 %v2297_v32  ;;  %v2290_v63 = vpop.xlane.xlu2 %2289  ;;  %v3895_v32 = vld [vmem:[%s5151_s11 + $0x20] sm:$0xf0]  ;;  %v4376_v49 = vld [vmem:[%s5151_s11 + $0x74] sm:$0xf0]  ;;  %2704 = vmatpush.bf16.msra.mxu1 %v3986_v57 }
 0xf38   : > { %v2292_v0 = vmul.f32 %v2290_v63, %v4945_v46  ;;  %v3901_v63 = vld [vmem:[%s5151_s11 + $0x8] sm:$0xf]  ;;  %2608 = vmatpush.bf16.msra.mxu2 %v3894_v40  ;;  %v3942_v40 = vor.u32 %v4375_v23, %v3941_v56  ;;  %v3950_v2 = vor.u32 %v4376_v49, %v3949_v60  ;;  %v4413_v56 = vld [vmem:[%s5260_s16 + $0x60] sm:$0xff]  ;;  %v4420_v23 = vld [vmem:[%s5260_s16 + $0x98] sm:$0xff] }
 0xf39   : > { %v4428_v57 = vld [vmem:[%s5260_s16 + $0xd8] sm:$0xff]  ;;  %v4427_v60 = vld [vmem:[%s5260_s16 + $0xd0] sm:$0xff] }
 0xf3a   : > { %v5142_v1 = vsub.f32 %v2280_v30, %v2292_v0  ;;  %v4366_v0 = vld [vmem:[%s5151_s11 + $0x24] sm:$0xf0]  ;;  %v4403_v49 = vld [vmem:[%s5260_s16 + $0x10] sm:$0xff] }
 0xf3b   : > { %v3902_v47 = vor.u32 %v4366_v0, %v3901_v63  ;;  %v3909_v63 = vld [vmem:[%s5151_s11 + $0x10] sm:$0xf] }
 0xf3c   : > { %v2296_v41 = vmul.f32 %v5142_v1, %v5142_v1  ;;  %2660 = vmatpush.bf16.msrb.mxu2 %v4038_v27  ;;  %v4367_v0 = vld [vmem:[%s5151_s11 + $0x2c] sm:$0xf0] }
 0xf3d   : > { %2636 = vmatpush.bf16.msrb.mxu0 %v3902_v47 }
 0xf3e   : > { %v2300_v35 = vsel %vm540_vm0, %v2296_v41, 0.0 }
 0xf3f   : > { %2301 = vadd.xlane.f32.xlu0 %v2300_v35  ;;  %v3898_v35 = vor.u32 %v4361_v61, %v3895_v32  ;;  %v4372_v61 = vld [vmem:[%s5151_s11 + $0x5c] sm:$0xf] }
 0xf40   : > { %2661 = vmatpush.bf16.msrb.mxu2 %v4006_v22  ;;  %v3951_v32 = vld [vmem:[%s5151_s11 + $0x78] sm:$0xf0]  ;;  %v4523_v22 = vld [vmem:[%s4933_s25 + $0x5] ss:$0 sm:$0xff] }
 0xf41   : > { %2622 = vmatpush.bf16.msra.mxu3 %v3898_v35  ;;  %2688 = vmatpush.bf16.msra.mxu0 %v4046_v53  ;;  %v3954_v4 = vor.u32 %v4372_v61, %v3951_v32  ;;  %v3914_v53 = vor.u32 %v4363_v43, %v3911_v3  ;;  %v4411_v61 = vld [vmem:[%s5260_s16 + $0x50] sm:$0xff]  ;;  %v4426_v32 = vld [vmem:[%s5260_s16 + $0xc8] sm:$0xff] }
 0xf42   : > { %v4410_v43 = vld [vmem:[%s5260_s16 + $0x48] sm:$0xff]  ;;  %v4455_v3 = vld [vmem:[%s5260_s16 + $0x1b0] sm:$0xff] }
 0xf43   : > { %2705 = vmatpush.bf16.msra.mxu1 %v3954_v4  ;;  %v4463_v4 = vld [vmem:[%s5260_s16 + $0x1f0] sm:$0xff] }
 0xf44   : > { %2662 = vmatpush.bf16.msrb.mxu2 %v3974_v15  ;;  %v4422_v15 = vld [vmem:[%s5260_s16 + $0xa8] sm:$0xff] }
 0xf45   : > { %2674 = vmatpush.bf16.msrb.mxu3 %v4042_v52  ;;  %2689 = vmatpush.bf16.msra.mxu0 %v4014_v31  ;;  %v3910_v52 = vor.u32 %v4367_v0, %v3909_v63  ;;  %v4417_v63 = vld [vmem:[%s5260_s16 + $0x80] sm:$0xff] }
 0xf46   : > { %v4425_v0 = vld [vmem:[%s5260_s16 + $0xc0] sm:$0xff] }
 0xf47   : > { %2706 = vmatpush.bf16.msra.mxu1 %v3922_v16  ;;  %v4446_v16 = vld [vmem:[%s5260_s16 + $0x168] sm:$0xff] }
 0xf48   : > { %2663 = vmatpush.bf16.msrb.mxu2 %v3942_v40  ;;  %v4418_v40 = vld [vmem:[%s5260_s16 + $0x88] sm:$0xff] }
 0xf49   : > { %2675 = vmatpush.bf16.msrb.mxu3 %v4010_v18  ;;  %2690 = vmatpush.bf16.msra.mxu0 %v3982_v54  ;;  %v4429_v54 = vld [vmem:[%s5260_s16 + $0xe0] sm:$0xff] }
 0xf4c   : > { %2664 = vmatpush.bf16.msrb.mxu2 %v3910_v52  ;;  %v4439_v52 = vld [vmem:[%s5260_s16 + $0x130] sm:$0xff] }
 0xf4d   : > { %2676 = vmatpush.bf16.msrb.mxu3 %v3978_v29  ;;  %2691 = vmatpush.bf16.msra.mxu0 %v3950_v2  ;;  %v4421_v29 = vld [vmem:[%s5260_s16 + $0xa0] sm:$0xff]  ;;  %v4402_v2 = vld [vmem:[%s5260_s16 + $0x8] sm:$0xff] }
 0xf51   : > { %2692 = vmatpush.bf16.msra.mxu0 %v3918_v13  ;;  %v4438_v13 = vld [vmem:[%s5260_s16 + $0x128] sm:$0xff] }
 0xfaa   : > { %v2299_v58 = vpop.xlane.xlu1 %2298 }
 0xfab   : > { %v2303_v30 = vmul.f32 %v2299_v58, %v4945_v46  ;;  %v4371_v58 = vld [vmem:[%s5151_s11 + $0x54] sm:$0xf] }
 0xfac   : > { %v3946_v47 = vor.u32 %v4371_v58, %v3943_v59  ;;  %v4404_v58 = vld [vmem:[%s5260_s16 + $0x18] sm:$0xff] }
 0xfad   : > { %v5192_v41 = vadd.f32 1e-05, %v2303_v30  ;;  %v4412_v59 = vld [vmem:[%s5260_s16 + $0x58] sm:$0xff] }
 0xfae   : > { %2677 = vmatpush.bf16.msrb.mxu3 %v3946_v47  ;;  %v4464_v47 = vld [vmem:[%s5260_s16 + $0x1f8] sm:$0xff] }
 0xfaf   : > { %4598 = vrsqrt.f32 %v5192_v41  ;;  %vm2313_vm14 = vweird.f32 %v5192_v41 }
 0xfb2   : > { %v2302_v21 = vpop.xlane.xlu0 %2301  ;;  %2678 = vmatpush.bf16.msrb.mxu3 %v3914_v53  ;;  %v4447_v53 = vld [vmem:[%s5260_s16 + $0x170] sm:$0xff] }
 0xfb3   : > { %v2304_v28 = vmul.f32 %v2302_v21, %v4945_v46 }
 0xfb5   : > { %v5219_v8 = vpop.eup %4598  ;;  %v5221_v45 = vadd.f32 1e-05, %v2304_v28 }
 0xfb6   : > { %v2308_v51 = vmul.f32 %v5219_v8, %v5192_v41  ;;  %vm2314_vm13 = vweird.f32 %v5219_v8 }
 0xfb7   : > { %4600 = vrsqrt.f32 %v5221_v45  ;;  %vm2315_vm15 = vmor %vm2313_vm14, %vm2314_vm13  ;;  %vm2323_vm2 = vweird.f32 %v5221_v45 }
 0xfb8   : > { %v2309_v30 = vmul.f32 %v5219_v8, %v2308_v51  ;;  %v4414_v51 = vld [vmem:[%s5260_s16 + $0x68] sm:$0xff] }
 0xfba   : > { %v2310_v35 = vmul.f32 0.5, %v2309_v30  ;;  %v4419_v30 = vld [vmem:[%s5260_s16 + $0x90] sm:$0xff] }
 0xfbc   : > { %v2311_v27 = vsub.f32 1.5, %v2310_v35  ;;  %v4456_v35 = vld [vmem:[%s5260_s16 + $0x1b8] sm:$0xff] }
 0xfbd   : > { %v4601_v10 = vpop.eup %4600 }
 0xfbe   : > { %v2312_v11 = vmul.f32 %v5219_v8, %v2311_v27  ;;  %v2318_v12 = vmul.f32 %v4601_v10, %v5221_v45  ;;  %vm2324_vm1 = vweird.f32 %v4601_v10  ;;  %v4415_v45 = vld [vmem:[%s5260_s16 + $0x70] sm:$0xff]  ;;  %v4440_v27 = vld [vmem:[%s5260_s16 + $0x138] sm:$0xff] }
 0xfbf   : > { %vm2325_vm3 = vmor %vm2323_vm2, %vm2324_vm1 }
 0xfc0   : > { %v2319_v17 = vmul.f32 %v4601_v10, %v2318_v12  ;;  %v2316_v19 = vsel %vm2315_vm15, %v5219_v8, %v2312_v11  ;;  %v4407_v8 = vld [vmem:[%s5260_s16 + $0x30] sm:$0xff]  ;;  %v4453_v11 = vld [vmem:[%s5260_s16 + $0x1a0] sm:$0xff] }
 0xfc1   : > { %v2327_v18 = vmul.f32 %v2316_v19, %v5136_v62  ;;  %v4461_v12 = vld [vmem:[%s5260_s16 + $0x1e0] sm:$0xff]  ;;  %v4460_v19 = vld [vmem:[%s5260_s16 + $0x1d8] sm:$0xff] }
 0xfc2   : > { %v2320_v20 = vmul.f32 0.5, %v2319_v17  ;;  %v4452_v17 = vld [vmem:[%s5260_s16 + $0x198] sm:$0xff] }
 0xfc3   : > { %v2332_v26 = vmul.f32 %v4523_v22, %v2327_v18  ;;  %v4459_v18 = vld [vmem:[%s5260_s16 + $0x1d0] sm:$0xff] }
 0xfc4   : > { %v2321_v21 = vsub.f32 1.5, %v2320_v20  ;;  %v4437_v20 = vld [vmem:[%s5260_s16 + $0x120] sm:$0xff] }
 0xfc5   : > { %v5262_v62 = vadd.f32 %v4524_v25, %v2332_v26  ;;  %v4458_v26 = vld [vmem:[%s5260_s16 + $0x1c8] sm:$0xff] }
 0xfc6   : > { %v2322_v24 = vmul.f32 %v4601_v10, %v2321_v21  ;;  %v4445_v21 = vld [vmem:[%s5260_s16 + $0x160] sm:$0xff] }
 0xfc8   : > { %v2326_v41 = vsel %vm2325_vm3, %v4601_v10, %v2322_v24  ;;  %v4462_v10 = vld [vmem:[%s5260_s16 + $0x1e8] sm:$0xff]  ;;  %v4436_v24 = vld [vmem:[%s5260_s16 + $0x118] sm:$0xff] }
 0xfc9   : > { %v2328_v28 = vmul.f32 %v2326_v41, %v5142_v1  ;;  %v4444_v41 = vld [vmem:[%s5260_s16 + $0x158] sm:$0xff] }
 0xfcb   : > { %v2333_v31 = vmul.f32 %v4523_v22, %v2328_v28  ;;  %v4451_v22 = vld [vmem:[%s5260_s16 + $0x190] sm:$0xff] }
 0xfcc   : > { %v4435_v28 = vld [vmem:[%s5260_s16 + $0x110] sm:$0xff] }
 0xfcd   : > { %v5264_v33 = vadd.f32 %v4524_v25, %v2333_v31  ;;  %v4450_v25 = vld [vmem:[%s5260_s16 + $0x188] sm:$0xff]  ;;  %v4443_v31 = vld [vmem:[%s5260_s16 + $0x150] sm:$0xff] }
 0xfcf   : > { %v2380_v1 = vpack.c.bf16 %v5264_v33, %v5262_v62 }
 0xfd1   : > { %4051 = vmatmul.msk.bf16.vlgmr.msra.gmra.mxu2 %vm540_vm0, %v2380_v1  ;;  %4052 = vmatmul.msk.bf16.vlgmr.msra.gmra.mxu3 %vm540_vm0, %v2380_v1 }
 0xfd2   : > { %4053 = vmatmul.msk.bf16.vlgmr.msrb.gmra.mxu0 %vm540_vm0, %v2380_v1  ;;  %4054 = vmatmul.msk.bf16.vlgmr.msrb.gmra.mxu1 %vm540_vm0, %v2380_v1 }
 0xfd3   : > { %3282 = vmatpush.bf16.msrb.mxu0 %v4424_v34  ;;  %3296 = vmatpush.bf16.msrb.mxu1 %v4432_v36  ;;  %v4457_v34 = vld [vmem:[%s5260_s16 + $0x1c0] sm:$0xff]  ;;  %v4434_v36 = vld [vmem:[%s5260_s16 + $0x108] sm:$0xff] }
 0xfd4   : > { %3254 = vmatpush.bf16.msra.mxu2 %v4408_v5  ;;  %3268 = vmatpush.bf16.msra.mxu3 %v4416_v38  ;;  %v4442_v5 = vld [vmem:[%s5260_s16 + $0x148] sm:$0xff]  ;;  %v5342_v38 = vld [vmem:[%s473_s23] sm:$0xff] }
 0xfd7   : > { %3283 = vmatpush.bf16.msrb.mxu0 %v4423_v42  ;;  %3297 = vmatpush.bf16.msrb.mxu1 %v4431_v44 }
 0xfd8   : > { %3255 = vmatpush.bf16.msra.mxu2 %v4407_v8  ;;  %3269 = vmatpush.bf16.msra.mxu3 %v4415_v45  ;;  %v4433_v8 = vld [vmem:[%s5260_s16 + $0x100] sm:$0xff] }
 0xfd9   : > { %v4441_v45 = vld [vmem:[%s5260_s16 + $0x140] sm:$0xff] }
 0xfdb   : > { %3284 = vmatpush.bf16.msrb.mxu0 %v4422_v15  ;;  %3298 = vmatpush.bf16.msrb.mxu1 %v4430_v48  ;;  %v2384_v15 = vperm.slane %v5342_v38, 2  ;;  %v2385_v48 = vperm.slane %v5342_v38, 3 }
 0xfdc   : > { %3256 = vmatpush.bf16.msra.mxu2 %v4406_v50  ;;  %3270 = vmatpush.bf16.msra.mxu3 %v4414_v51 }
 0xfdf   : > { %3285 = vmatpush.bf16.msrb.mxu0 %v4421_v29  ;;  %3299 = vmatpush.bf16.msrb.mxu1 %v4429_v54 }
 0xfe0   : > { %3257 = vmatpush.bf16.msra.mxu2 %v4405_v55  ;;  %3271 = vmatpush.bf16.msra.mxu3 %v4413_v56  ;;  %v2382_v55 = vperm.slane %v5342_v38, 0  ;;  %v2383_v56 = vperm.slane %v5342_v38, 1 }
 0xfe1   : > { %4055 = vmatmul.msk.bf16.vlgmr.msrb.gmra.mxu2 %vm540_vm0, %v2380_v1  ;;  %4056 = vmatmul.msk.bf16.vlgmr.msrb.gmra.mxu3 %vm540_vm0, %v2380_v1 }
 0xfe2   : > { %4057 = vmatmul.msk.bf16.vlgmr.msra.gmra.mxu0 %vm540_vm0, %v2380_v1  ;;  %4058 = vmatmul.msk.bf16.vlgmr.msra.gmra.mxu1 %vm540_vm0, %v2380_v1  ;;  %v4449_v1 = vld [vmem:[%s5260_s16 + $0x180] sm:$0xff] }
 0xfe3   : > { %3286 = vmatpush.bf16.msrb.mxu0 %v4420_v23  ;;  %3300 = vmatpush.bf16.msrb.mxu1 %v4428_v57 }
 0xfe4   : > { %3258 = vmatpush.bf16.msra.mxu2 %v4404_v58  ;;  %3272 = vmatpush.bf16.msra.mxu3 %v4412_v59 }
 0xfe7   : > { %3287 = vmatpush.bf16.msrb.mxu0 %v4419_v30  ;;  %3301 = vmatpush.bf16.msrb.mxu1 %v4427_v60 }
 0xfe8   : > { %3259 = vmatpush.bf16.msra.mxu2 %v4403_v49  ;;  %3273 = vmatpush.bf16.msra.mxu3 %v4411_v61 }
 0xfeb   : > { %3288 = vmatpush.bf16.msrb.mxu0 %v4418_v40  ;;  %3302 = vmatpush.bf16.msrb.mxu1 %v4426_v32 }
 0xfec   : > { %3260 = vmatpush.bf16.msra.mxu2 %v4402_v2  ;;  %3274 = vmatpush.bf16.msra.mxu3 %v4410_v43 }
 0xfef   : > { %3289 = vmatpush.bf16.msrb.mxu0 %v4417_v63  ;;  %3303 = vmatpush.bf16.msrb.mxu1 %v4425_v0 }
 0xff0   : > { %3261 = vmatpush.bf16.msra.mxu2 %v4401_v6  ;;  %3275 = vmatpush.bf16.msra.mxu3 %v4409_v7 }
 0xff3   : > { %3338 = vmatpush.bf16.msra.mxu0 %v4456_v35  ;;  %3352 = vmatpush.bf16.msra.mxu1 %v4464_v47 }
 0xff4   : > { %3310 = vmatpush.bf16.msrb.mxu2 %v4440_v27  ;;  %3324 = vmatpush.bf16.msrb.mxu3 %v4448_v9 }
 0xff7   : > { %3339 = vmatpush.bf16.msra.mxu0 %v4455_v3  ;;  %3353 = vmatpush.bf16.msra.mxu1 %v4463_v4 }
 0xff8   : > { %3311 = vmatpush.bf16.msrb.mxu2 %v4439_v52  ;;  %3325 = vmatpush.bf16.msrb.mxu3 %v4447_v53  ;;  %v2388_v52 = vperm.slane %v5342_v38, 6  ;;  %v2389_v53 = vperm.slane %v5342_v38, 7 }
 0xffb   : > { %3340 = vmatpush.bf16.msra.mxu0 %v4454_v14  ;;  %3354 = vmatpush.bf16.msra.mxu1 %v4462_v10 }
 0xffc   : > { %3312 = vmatpush.bf16.msrb.mxu2 %v4438_v13  ;;  %3326 = vmatpush.bf16.msrb.mxu3 %v4446_v16 }
 0xfff   : > { %3341 = vmatpush.bf16.msra.mxu0 %v4453_v11  ;;  %3355 = vmatpush.bf16.msra.mxu1 %v4461_v12 }
0x1000   : > { %3313 = vmatpush.bf16.msrb.mxu2 %v4437_v20  ;;  %3327 = vmatpush.bf16.msrb.mxu3 %v4445_v21 }
0x1003   : > { %3342 = vmatpush.bf16.msra.mxu0 %v4452_v17  ;;  %3356 = vmatpush.bf16.msra.mxu1 %v4460_v19  ;;  %v2386_v17 = vperm.slane %v5342_v38, 4  ;;  %v2387_v19 = vperm.slane %v5342_v38, 5 }
0x1004   : > { %3314 = vmatpush.bf16.msrb.mxu2 %v4436_v24  ;;  %3328 = vmatpush.bf16.msrb.mxu3 %v4444_v41 }
0x1007   : > { %3343 = vmatpush.bf16.msra.mxu0 %v4451_v22  ;;  %3357 = vmatpush.bf16.msra.mxu1 %v4459_v18 }
0x1008   : > { %3315 = vmatpush.bf16.msrb.mxu2 %v4435_v28  ;;  %3329 = vmatpush.bf16.msrb.mxu3 %v4443_v31 }
0x100b   : > { %3344 = vmatpush.bf16.msra.mxu0 %v4450_v25  ;;  %3358 = vmatpush.bf16.msra.mxu1 %v4458_v26 }
0x100c   : > { %3316 = vmatpush.bf16.msrb.mxu2 %v4434_v36  ;;  %3330 = vmatpush.bf16.msrb.mxu3 %v4442_v5 }
0x100f   : > { %3345 = vmatpush.bf16.msra.mxu0 %v4449_v1  ;;  %3359 = vmatpush.bf16.msra.mxu1 %v4457_v34 }
0x1010   : > { %3317 = vmatpush.bf16.msrb.mxu2 %v4433_v8  ;;  %3331 = vmatpush.bf16.msrb.mxu3 %v4441_v45 }
0x104f   : > { %v2638_v42 = vpop.f32.mrf.mxu0  ;;  %v2652_v44 = vpop.f32.mrf.mxu1 }
0x1050   : > { %v2639_v29 = vadd.f32 %v2638_v42, %v2384_v15  ;;  %v2653_v54 = vadd.f32 %v2652_v44, %v2385_v48 }
0x1052   : > { %v2715_v30 = vmax.f32 %v2639_v29, 0.0  ;;  %v2716_v60 = vmax.f32 %v2653_v54, 0.0  ;;  %v4525_v54 = vld [vmem:[%s4933_s25 + $0x2] ss:$0 sm:$0xff] }
0x1054   : > { %v2610_v50 = vpop.f32.mrf.mxu2  ;;  %v2624_v51 = vpop.f32.mrf.mxu3 }
0x1055   : > { %v2611_v40 = vadd.f32 %v2610_v50, %v2382_v55  ;;  %v2625_v32 = vadd.f32 %v2624_v51, %v2383_v56 }
0x1057   : > { %v2640_v23 = vpop.f32.mrf.mxu0  ;;  %v2654_v57 = vpop.f32.mrf.mxu1  ;;  %v2713_v3 = vmax.f32 %v2611_v40, 0.0  ;;  %v2714_v4 = vmax.f32 %v2625_v32, 0.0 }
0x1058   : > { %v2641_v58 = vadd.f32 %v2640_v23, %v2384_v15  ;;  %v2655_v59 = vadd.f32 %v2654_v57, %v2385_v48 }
0x105a   : > { %v2723_v49 = vmax.f32 %v2641_v58, 0.0  ;;  %v2724_v61 = vmax.f32 %v2655_v59, 0.0 }
0x105c   : > { %v2861_v63 = vpack.c.bf16 %v2723_v49, %v2715_v30  ;;  %v2862_v0 = vpack.c.bf16 %v2724_v61, %v2716_v60  ;;  %v2612_v35 = vpop.f32.mrf.mxu2  ;;  %v2626_v47 = vpop.f32.mrf.mxu3 }
0x105d   : > { %v2613_v2 = vadd.f32 %v2612_v35, %v2382_v55  ;;  %v2627_v43 = vadd.f32 %v2626_v47, %v2383_v56 }
0x105e   : > { %3290 = vmatmul.bf16.vlgmr.msrb.gmra.mxu0 %v2861_v63  ;;  %3304 = vmatmul.bf16.vlgmr.msrb.gmra.mxu1 %v2862_v0 }
0x105f   : > { %v2721_v6 = vmax.f32 %v2613_v2, 0.0  ;;  %v2722_v7 = vmax.f32 %v2627_v43, 0.0  ;;  %v2694_v27 = vpop.f32.mrf.mxu0  ;;  %v2708_v9 = vpop.f32.mrf.mxu1 }
0x1060   : > { %v2695_v13 = vadd.f32 %v2694_v27, %v2388_v52  ;;  %v2709_v16 = vadd.f32 %v2708_v9, %v2389_v53 }
0x1061   : > { %v2859_v14 = vpack.c.bf16 %v2721_v6, %v2713_v3  ;;  %v2860_v10 = vpack.c.bf16 %v2722_v7, %v2714_v4 }
0x1062   : > { %v2719_v24 = vmax.f32 %v2695_v13, 0.0  ;;  %v2720_v41 = vmax.f32 %v2709_v16, 0.0 }
0x1063   : > { %3262 = vmatmul.bf16.vlgmr.msra.gmra.mxu2 %v2859_v14  ;;  %3276 = vmatmul.bf16.vlgmr.msra.gmra.mxu3 %v2860_v10 }
0x1064   : > { %v2666_v11 = vpop.f32.mrf.mxu2  ;;  %v2680_v12 = vpop.f32.mrf.mxu3 }
0x1065   : > { %v2667_v28 = vadd.f32 %v2666_v11, %v2386_v17  ;;  %v2681_v31 = vadd.f32 %v2680_v12, %v2387_v19 }
0x1067   : > { %v2696_v20 = vpop.f32.mrf.mxu0  ;;  %v2710_v21 = vpop.f32.mrf.mxu1  ;;  %v2717_v38 = vmax.f32 %v2667_v28, 0.0  ;;  %v2718_v8 = vmax.f32 %v2681_v31, 0.0 }
0x1068   : > { %v2697_v22 = vadd.f32 %v2696_v20, %v2388_v52  ;;  %v2711_v18 = vadd.f32 %v2710_v21, %v2389_v53 }
0x106a   : > { %v2727_v25 = vmax.f32 %v2697_v22, 0.0  ;;  %v2728_v26 = vmax.f32 %v2711_v18, 0.0 }
0x106c   : > { %v2865_v1 = vpack.c.bf16 %v2727_v25, %v2719_v24  ;;  %v2866_v34 = vpack.c.bf16 %v2728_v26, %v2720_v41  ;;  %v2668_v36 = vpop.f32.mrf.mxu2  ;;  %v2682_v5 = vpop.f32.mrf.mxu3 }
0x106d   : > { %v2669_v42 = vadd.f32 %v2668_v36, %v2386_v17  ;;  %v2683_v44 = vadd.f32 %v2682_v5, %v2387_v19 }
0x106e   : > { %3346 = vmatmul.bf16.vlgmr.msra.gmra.mxu0 %v2865_v1  ;;  %3360 = vmatmul.bf16.vlgmr.msra.gmra.mxu1 %v2866_v34 }
0x106f   : > { %v2725_v45 = vmax.f32 %v2669_v42, 0.0  ;;  %v2726_v15 = vmax.f32 %v2683_v44, 0.0 }
0x1071   : > { %v2863_v48 = vpack.c.bf16 %v2725_v45, %v2717_v38  ;;  %v2864_v50 = vpack.c.bf16 %v2726_v15, %v2718_v8 }
0x1073   : > { %3318 = vmatmul.bf16.vlgmr.msrb.gmra.mxu2 %v2863_v48  ;;  %3332 = vmatmul.bf16.vlgmr.msrb.gmra.mxu3 %v2864_v50  ;;  %v491_v48 = vshrl.u32 %v485_v37, 7 }
0x1075   : > { %vm492_vm7 = vcmp.lt.s32.totalorder %v491_v48, %v487_v39 }
0x10db   : > { %v3291_v51 = vpop.f32.mrf.mxu0  ;;  %v3305_v29 = vpop.f32.mrf.mxu1 }
0x10e3   : > { %v3293_v57 = vpop.f32.mrf.mxu0  ;;  %v3307_v60 = vpop.f32.mrf.mxu1 }
0x10e6   : > { %v3263_v55 = vpop.f32.mrf.mxu2  ;;  %v3277_v56 = vpop.f32.mrf.mxu3 }
0x10e7   : > { %v3264_v23 = vadd.f32 %v4525_v54, %v3263_v55  ;;  %v4527_v55 = vld [vmem:[%s4933_s25 + $0x8] ss:$0 sm:$0xff] }
0x10e9   : > { %v3278_v58 = vadd.f32 %v3277_v56, %v3264_v23 }
0x10eb   : > { %v3292_v49 = vadd.f32 %v3291_v51, %v3278_v58  ;;  %v3347_v47 = vpop.f32.mrf.mxu0  ;;  %v3361_v3 = vpop.f32.mrf.mxu1  ;;  %v4666_v58 = vmov 0.0  }
0x10ed   : > { %v3306_v32 = vadd.f32 %v3305_v29, %v3292_v49  ;;  %v4526_v29 = vld [vmem:[%s4933_s25 + $0x7] ss:$0 sm:$0xff] }
0x10ee   : > { %v3265_v59 = vpop.f32.mrf.mxu2  ;;  %v3279_v30 = vpop.f32.mrf.mxu3 }
0x10ef   : > { %v3266_v61 = vadd.f32 %v4525_v54, %v3265_v59  ;;  %v3622_v59 = vsel %vm492_vm7, 1.0, %v4666_v58 }
0x10f1   : > { %v3280_v40 = vadd.f32 %v3279_v30, %v3266_v61 }
0x10f3   : > { %v3294_v2 = vadd.f32 %v3293_v57, %v3280_v40  ;;  %v3349_v11 = vpop.f32.mrf.mxu0  ;;  %v3363_v13 = vpop.f32.mrf.mxu1 }
0x10f5   : > { %v3308_v6 = vadd.f32 %v3307_v60, %v3294_v2 }
0x10f6   : > { %v3319_v63 = vpop.f32.mrf.mxu2  ;;  %v3333_v0 = vpop.f32.mrf.mxu3 }
0x10f7   : > { %v3320_v35 = vadd.f32 %v3319_v63, %v3306_v32 }
0x10f9   : > { %v3334_v43 = vadd.f32 %v3333_v0, %v3320_v35 }
0x10fb   : > { %v3348_v4 = vadd.f32 %v3347_v47, %v3334_v43 }
0x10fd   : > { %v3362_v7 = vadd.f32 %v3361_v3, %v3348_v4 }
0x10fe   : > { %v3321_v27 = vpop.f32.mrf.mxu2  ;;  %v3335_v10 = vpop.f32.mrf.mxu3 }
0x10ff   : > { %v3322_v9 = vadd.f32 %v3321_v27, %v3308_v6  ;;  %v3366_v14 = vadd.f32 %v3362_v7, %v5262_v62 }
0x1101   : > { %v3336_v52 = vadd.f32 %v3335_v10, %v3322_v9  ;;  %v3372_v53 = vsel %vm540_vm0, %v3366_v14, 0.0 }
0x1102   : > { %3373 = vadd.xlane.f32.xlu0 %v3372_v53 }
0x1103   : > { %v3350_v12 = vadd.f32 %v3349_v11, %v3336_v52 }
0x1105   : > { %v3364_v16 = vadd.f32 %v3363_v13, %v3350_v12 }
0x1107   : > { %v3367_v17 = vadd.f32 %v3364_v16, %v5264_v33 }
0x1109   : > { %v3375_v19 = vsel %vm540_vm0, %v3367_v17, 0.0 }
0x110a   : > { %3376 = vadd.xlane.f32.xlu2 %v3375_v19 }
0x1175   : > { %v3374_v20 = vpop.xlane.xlu0 %3373 }
0x1176   : > { %v3378_v21 = vmul.f32 %v3374_v20, %v4945_v46 }
0x1178   : > { %v3380_v22 = vsub.f32 %v3366_v14, %v3378_v21 }
0x117a   : > { %v3382_v18 = vmul.f32 %v3380_v22, %v3380_v22 }
0x117c   : > { %v3384_v62 = vsel %vm540_vm0, %v3382_v18, 0.0 }
0x117d   : > { %v3377_v24 = vpop.xlane.xlu2 %3376  ;;  %3385 = vadd.xlane.f32.xlu0 %v3384_v62 }
0x117e   : > { %v3379_v41 = vmul.f32 %v3377_v24, %v4945_v46 }
0x1180   : > { %v3381_v25 = vsub.f32 %v3367_v17, %v3379_v41 }
0x1182   : > { %v3383_v26 = vmul.f32 %v3381_v25, %v3381_v25 }
0x1184   : > { %v3387_v28 = vsel %vm540_vm0, %v3383_v26, 0.0 }
0x1185   : > { %3388 = vadd.xlane.f32.xlu1 %v3387_v28 }
0x11f0   : > { %v3386_v33 = vpop.xlane.xlu0 %3385 }
0x11f1   : > { %v3390_v31 = vmul.f32 %v3386_v33, %v4945_v46 }
0x11f3   : > { %v3392_v1 = vadd.f32 1e-05, %v3390_v31 }
0x11f5   : > { %4602 = vrsqrt.f32 %v3392_v1  ;;  %vm3400_vm5 = vweird.f32 %v3392_v1 }
0x11f8   : > { %v3389_v34 = vpop.xlane.xlu1 %3388 }
0x11f9   : > { %v3391_v36 = vmul.f32 %v3389_v34, %v4945_v46 }
0x11fb   : > { %v4603_v5 = vpop.eup %4602  ;;  %v3393_v42 = vadd.f32 1e-05, %v3391_v36 }
0x11fc   : > { %v3395_v44 = vmul.f32 %v4603_v5, %v3392_v1  ;;  %vm3401_vm4 = vweird.f32 %v4603_v5 }
0x11fd   : > { %4604 = vrsqrt.f32 %v3393_v42  ;;  %vm3402_vm6 = vmor %vm3400_vm5, %vm3401_vm4  ;;  %vm3410_vm9 = vweird.f32 %v3393_v42 }
0x11fe   : > { %v3396_v38 = vmul.f32 %v4603_v5, %v3395_v44 }
0x1200   : > { %v3397_v8 = vmul.f32 0.5, %v3396_v38 }
0x1202   : > { %v3398_v45 = vsub.f32 1.5, %v3397_v8 }
0x1203   : > { %v4605_v15 = vpop.eup %4604 }
0x1204   : > { %v3399_v50 = vmul.f32 %v4603_v5, %v3398_v45  ;;  %v3405_v51 = vmul.f32 %v4605_v15, %v3393_v42  ;;  %vm3411_vm8 = vweird.f32 %v4605_v15 }
0x1205   : > { %vm3412_vm10 = vmor %vm3410_vm9, %vm3411_vm8 }
0x1206   : > { %v3403_v54 = vsel %vm3402_vm6, %v4603_v5, %v3399_v50  ;;  %v3406_v46 = vmul.f32 %v4605_v15, %v3405_v51 }
0x1207   : > { %v3414_v56 = vmul.f32 %v3403_v54, %v3380_v22 }
0x1208   : > { %v3407_v23 = vmul.f32 0.5, %v3406_v46 }
0x1209   : > { %v3419_v57 = vmul.f32 %v4526_v29, %v3414_v56 }
0x120a   : > { %v3408_v30 = vsub.f32 1.5, %v3407_v23 }
0x120b   : > { %v3424_v60 = vadd.f32 %v4527_v55, %v3419_v57 }
0x120c   : > { %v3409_v49 = vmul.f32 %v4605_v15, %v3408_v30 }
0x120d   : > { %v3426_v37 = vmul.f32 %v3622_v59, %v3424_v60 }
0x120e   : > { %v3413_v61 = vsel %vm3412_vm10, %v4605_v15, %v3409_v49 }
0x120f   : > { %v3428_v40 = vsel %vm540_vm0, %v3426_v37, 0.0  ;;  %v3415_v32 = vmul.f32 %v3413_v61, %v3381_v25 }
0x1210   : > { %v3429_v63 = vrot.slane %v3428_v40, 4 }
0x1211   : > { %v3420_v0 = vmul.f32 %v4526_v29, %v3415_v32 }
0x1212   : > { %v3430_v39 = vadd.f32 %v3429_v63, %v3428_v40 }
0x1213   : > { %v3425_v35 = vadd.f32 %v4527_v55, %v3420_v0 }
0x1214   : > { %v3431_v47 = vrot.slane %v3430_v39, 2 }
0x1215   : > { %v3427_v2 = vmul.f32 %v3622_v59, %v3425_v35 }
0x1216   : > { %v3432_v43 = vadd.f32 %v3431_v47, %v3430_v39 }
0x1217   : > { %v3435_v3 = vsel %vm540_vm0, %v3427_v2, 0.0 }
0x1218   : > { %v3433_v4 = vrot.slane %v3432_v43, 1  ;;  %v3436_v6 = vrot.slane %v3435_v3, 4 }
0x121a   : > { %v3434_v7 = vadd.f32 %v3433_v4, %v3432_v43  ;;  %v3437_v27 = vadd.f32 %v3436_v6, %v3435_v3 }
0x121c   : > { %v3438_v9 = vrot.slane %v3437_v27, 2 }
0x121e   : > { %v3439_v14 = vadd.f32 %v3438_v9, %v3437_v27  ;;  %3445 = sbr.rel (%p4318_p4) target bundleno = 4645 (0x1225), region = 60 }
0x1220   : > { %v3440_v10 = vrot.slane %v3439_v14, 1 }
0x1222   : > { %v3441_v52 = vadd.f32 %v3440_v10, %v3439_v14 }
0x1223   : > { %vm3446_vm11 = vcmask 648192   ;;  %v4667_v53 = vmov 0.0  }
0x1224   : > { %3447 = vst.msk [vmem:[#allocation4] sm:$0x3] %vm3446_vm11, %v4667_v53 }
0x1225 PF: > { %vm3451_vm12 = vcmask 1041409   ;;  %vm3455_vm13 = vcmask 648192   ;;  %p4319_p5 = scmp.ne.s32.totalorder %s4733_s18, 2 }
0x1226   : > { %v3452_v12 = vsel %vm3451_vm12, %v3441_v52, %v3434_v7 }
0x122a   : > { %3460 = sbr.rel (%p4319_p5) target bundleno = 4665 (0x1239), region = 64 }
0x122b   : > { %v3448_v11 = vld [vmem:[#allocation4] sm:$0x3] }
0x122c   : > { %v3454_v13 = vadd.f32 %v3452_v12, %v3448_v11 }
0x122e   : > { %3456 = vst.msk [vmem:[#allocation4] sm:$0x3] %vm3455_vm13, %v3454_v13 }
0x1235   : > { %v3461_v16 = vld [vmem:[#allocation4] sm:$0x3] }
0x1236   : > { %v3462_v17 = vmul.f32 0.071428575, %v3461_v16 }
0x1238   : > { %3463 = vst.msk [vmem:[#allocation4] sm:$0x3] %vm3455_vm13, %v3462_v17 }
0x1239 PF: > { %p4494_p6 = scmp.eq.s32.totalorder %s4733_s18, 2  ;;  %s4668_s0 = smov [#allocation4]  }
0x123a   : > { %s3470_s13 = sshll.u32 %s4668_s0, 4  ;;  %s3472_s28 = sshll.u32 %s5391_s10, 4  ;;  %s3471_s13 = int_to_ptr.vmem [resolvable:$true] %s3470_s13  ;;  %s3473_s28 = int_to_ptr.hbm [resolvable:$true] %s3472_s28 }
0x123b   : > { %4491 = dma.vmem_to_hbm [thread:$0]  (%p4494_p6), %s3471_s13, 32, %s3473_s28, [#allocation5]  }
0x123c   : > { %4653 = dma.done.wait (%p4494_p6), [#allocation5], 32  }
0x123d   : > { %4655 = vsyncadd (%p4494_p6), [#allocation5], 4294967264 }
0x123e PF: > { %s29_s17 = sadd.s32 1, %s4658_s17  }
0x123f   : > { %p26_p7 = scmp.ge.s32.totalorder %s29_s17, 5  }
0x1241   :  { %28 = sbr.rel (!%p26_p7) target bundleno = 7 (0x7), region = 134 }
0x1246   :  { %3486 = vsyncpa [#allocation5], 1 }
0x1247   :  { %3488 = vsyncpa [#allocation5 + $0x1], 1 }

</bundles_post_ra>
